<compile_context>
chip_gen: v6e
topology: v6e:2x2x1
jax: 0.10.0
libtpu: 0.0.40
codegen_flags: <defaults>
</compile_context>

<pallas_src>
import jax
import jax.numpy as jnp
from jax.experimental import pallas as pl
from jax.experimental.pallas import tpu as pltpu


# ----------------------------------------------------------------------------
# Pallas kernels
# ----------------------------------------------------------------------------
def matmul_stats_kernel(a_ref, b_ref, o_ref, sum_ref, sq_ref, acc_ref):
    """bf16 x bf16 -> f32 tiled matmul with fused per-tile column statistics.

    Grid: (M tiles, K tiles); K (reduction) is the last grid axis.  At the
    final K step the f32 accumulator is stored together with its per-column
    sum and sum-of-squares (consumed by the fused BatchNorm outside).
    """
    @pl.when(pl.program_id(1) == 0)
    def _():
        acc_ref[...] = jnp.zeros_like(acc_ref)

    acc_ref[...] += jnp.dot(a_ref[...], b_ref[...],
                            preferred_element_type=jnp.float32)

    @pl.when(pl.program_id(1) == pl.num_programs(1) - 1)
    def _():
        acc = acc_ref[...]
        o_ref[...] = acc.astype(o_ref.dtype)
        sum_ref[...] = jnp.sum(acc, axis=0, keepdims=True).reshape(sum_ref.shape)
        sq_ref[...] = jnp.sum(acc * acc, axis=0, keepdims=True).reshape(sq_ref.shape)


def matmul_tanh_kernel(a_ref, b_ref, o_ref, acc_ref):
    """bf16 x bf16 -> f32 tiled matmul with tanh fused into the epilogue
    (final layer: no BatchNorm, so no stats needed)."""
    @pl.when(pl.program_id(1) == 0)
    def _():
        acc_ref[...] = jnp.zeros_like(acc_ref)

    acc_ref[...] += jnp.dot(a_ref[...], b_ref[...],
                            preferred_element_type=jnp.float32)

    @pl.when(pl.program_id(1) == pl.num_programs(1) - 1)
    def _():
        o_ref[...] = jnp.tanh(acc_ref[...]).astype(o_ref.dtype)


def affine_relu_kernel(x_ref, scale_ref, shift_ref, o_ref):
    """y = relu(x * scale + shift), per-column scale/shift, lane-dense blocks.
    Emits bf16 (feeds the next layer's bf16 matmul directly)."""
    y = x_ref[...] * scale_ref[...] + shift_ref[...]
    o_ref[...] = jnp.maximum(y, 0.0).astype(o_ref.dtype)


# ----------------------------------------------------------------------------
# Tiling helpers
# ----------------------------------------------------------------------------
_TILE_CANDIDATES = (1024, 512, 256, 128, 64, 32, 16)


def _round_up(x, m):
    return (x + m - 1) // m * m


def _row_tile(m, bytes_per_row, budget=4 * 1024 * 1024):
    """Largest divisor of m (<=1024, multiple of 16) whose row-block fits a
    VMEM budget.  Falls back to the full dim (exempt from the (8,128) rule)."""
    for c in _TILE_CANDIDATES:
        if m % c == 0 and c * bytes_per_row <= budget:
            return c
    return m


def _k_tile(k):
    if k <= 1024:
        return k
    for c in (1024, 512, 256, 128):
        if k % c == 0:
            return c
    return k


def _pad_rows_to(a, mult):
    m = a.shape[0]
    m_pad = max(_round_up(m, mult), mult)
    if m_pad != m:
        a = jnp.pad(a, ((0, m_pad - m), (0, 0)))
    return a, m_pad


# ----------------------------------------------------------------------------
# pallas_call wrappers
# ----------------------------------------------------------------------------
def pallas_matmul_stats(a, b):
    """a: (M, K) bf16, b: (K, Npad) bf16 with Npad % 128 == 0.

    Returns (out (Mpad, Npad) f32, colsum (Mt, 1, Npad) f32, colsq (Mt, 1, Npad) f32).
    Zero rows are appended if M is not a multiple of 16; they contribute 0 to
    the statistics and are sliced off by the caller after the activation.
    """
    a, m_pad = _pad_rows_to(a, 16)
    k = a.shape[1]
    npad = b.shape[1]

    tk = _k_tile(k)
    tm = _row_tile(m_pad, k * 2 + npad * 8)
    mt = m_pad // tm

    return pl.pallas_call(
        matmul_stats_kernel,
        out_shape=(jax.ShapeDtypeStruct((m_pad, npad), jnp.float32),
                   jax.ShapeDtypeStruct((mt, 1, npad), jnp.float32),
                   jax.ShapeDtypeStruct((mt, 1, npad), jnp.float32)),
        grid_spec=pltpu.PrefetchScalarGridSpec(
            num_scalar_prefetch=0,
            grid=(mt, k // tk),
            in_specs=[pl.BlockSpec((tm, tk), lambda i, kk: (i, kk)),
                      pl.BlockSpec((tk, npad), lambda i, kk: (kk, 0))],
            out_specs=(pl.BlockSpec((tm, npad), lambda i, kk: (i, 0)),
                       pl.BlockSpec((1, 1, npad), lambda i, kk: (i, 0, 0)),
                       pl.BlockSpec((1, 1, npad), lambda i, kk: (i, 0, 0))),
            scratch_shapes=[pltpu.VMEM((tm, npad), jnp.float32)]),
        compiler_params=pltpu.CompilerParams(
            dimension_semantics=("parallel", "arbitrary")),
    )(a, b)


def pallas_matmul_tanh(a, b):
    """Final layer: bf16 matmul with tanh fused into the epilogue (f32 out)."""
    a, m_pad = _pad_rows_to(a, 16)
    k = a.shape[1]
    npad = b.shape[1]

    tk = _k_tile(k)
    tm = _row_tile(m_pad, k * 2 + npad * 8)
    mt = m_pad // tm

    return pl.pallas_call(
        matmul_tanh_kernel,
        out_shape=jax.ShapeDtypeStruct((m_pad, npad), jnp.float32),
        grid_spec=pltpu.PrefetchScalarGridSpec(
            num_scalar_prefetch=0,
            grid=(mt, k // tk),
            in_specs=[pl.BlockSpec((tm, tk), lambda i, kk: (i, kk)),
                      pl.BlockSpec((tk, npad), lambda i, kk: (kk, 0))],
            out_specs=pl.BlockSpec((tm, npad), lambda i, kk: (i, 0)),
            scratch_shapes=[pltpu.VMEM((tm, npad), jnp.float32)]),
        compiler_params=pltpu.CompilerParams(
            dimension_semantics=("parallel", "arbitrary")),
    )(a, b)


def pallas_affine_relu(x, scale, shift):
    """y = relu(x*scale + shift) on a lane-dense (Mpad, C128) slab -> bf16."""
    m, c = x.shape                       # m multiple of 16, c multiple of 128
    tm = _row_tile(m, c * 10)
    return pl.pallas_call(
        affine_relu_kernel,
        out_shape=jax.ShapeDtypeStruct((m, c), jnp.bfloat16),
        grid_spec=pltpu.PrefetchScalarGridSpec(
            num_scalar_prefetch=0,
            grid=(m // tm,),
            in_specs=[pl.BlockSpec((tm, c), lambda i: (i, 0)),
                      pl.BlockSpec((1, c), lambda i: (0, 0)),
                      pl.BlockSpec((1, c), lambda i: (0, 0))],
            out_specs=pl.BlockSpec((tm, c), lambda i: (i, 0))),
        compiler_params=pltpu.CompilerParams(
            dimension_semantics=("parallel",)),
    )(x, scale, shift)


# ----------------------------------------------------------------------------
# Layer glue (plain JAX: patch extraction, depth-to-space, tiny BN math)
# ----------------------------------------------------------------------------
def _patches_3x3(x):
    """3x3 neighbourhood patches of x (zero-padded by 1), as a (M, 9*C) matrix."""
    # TODO(synk): fuse this im2col into the matmul via halo DMA (pl.ANY +
    # make_async_copy) to avoid materializing the 9x patch matrix in HBM.
    n, h, w, c = x.shape
    xp = jnp.pad(x, ((0, 0), (1, 1), (1, 1), (0, 0)))
    cols = [xp[:, ey:ey + h, ex:ex + w, :] for ey in range(3) for ex in range(3)]
    p = jnp.stack(cols, axis=3)                          # (N, H, W, 9, C)
    return p.reshape(n * h * w, 9 * c)


def _subpixel_weight(w):
    """ConvTranspose2d(K=4, stride=2, pad=1) weight (Cin, Cout, 4, 4) ->
    (9*Cin, 4*Cout) matrix so that
        out[n, 2m+ry, 2l+rx, co] = patches_3x3(x)[(n,m,l), :] @ W[:, (ry,rx,co)]
    (derived from the standard scatter view out[2*iy-1+ky] += x[iy]*w[ky]).
    """
    cin, cout, kh, kw = w.shape
    assert kh == 4 and kw == 4
    wb = jnp.zeros((3, 3, cin, 2, 2, cout), w.dtype)
    for ry in range(2):
        for dy in range(2):
            ey, ky = ry + dy, 3 - ry - 2 * dy
            for rx in range(2):
                for dx in range(2):
                    ex, kx = rx + dx, 3 - rx - 2 * dx
                    wb = wb.at[ey, ex, :, ry, rx, :].set(w[:, :, ky, kx])
    return wb.reshape(9 * cin, 4 * cout)


def _bn_scale_shift(colsum, colsq, groups, cout, count, gamma, beta, eps=1e-5):
    """Per-(padded)-column scale/shift for train-mode BatchNorm2d.

    The matmul columns are `groups` repeats of the Cout channels (plus zero
    padding); partial sums are folded over tiles and groups.
    """
    npad = colsum.shape[-1]
    valid = groups * cout
    s1 = colsum.sum(axis=(0, 1))[:valid].reshape(groups, cout).sum(axis=0)
    s2 = colsq.sum(axis=(0, 1))[:valid].reshape(groups, cout).sum(axis=0)
    mean = s1 / count
    var = s2 / count - mean * mean                       # biased variance
    scale_c = gamma / jnp.sqrt(var + eps)
    shift_c = beta - mean * scale_c
    scale = jnp.pad(jnp.tile(scale_c, groups), (0, npad - valid)).reshape(1, npad)
    shift = jnp.pad(jnp.tile(shift_c, groups), (0, npad - valid)).reshape(1, npad)
    return scale, shift


# ----------------------------------------------------------------------------
# Generator module (parameter setup + forward)
# ----------------------------------------------------------------------------
class GeneratorPallas:
    def __init__(self, img_size, latent_size, n_channels, key):
        ngf, nz, nc = img_size, latent_size, n_channels
        # (in_ch, out_ch, stride, padding) per ConvTranspose2d layer.
        self.cfg = [
            (nz,      ngf * 8, 1, 0),
            (ngf * 8, ngf * 4, 2, 1),
            (ngf * 4, ngf * 2, 2, 1),
            (ngf * 2, ngf,     2, 1),
            (ngf,     nc,      2, 1),
        ]
        keys = jax.random.split(key, len(self.cfg))
        # DCGAN-style init: N(0, 0.02) conv weights; BN gamma=1, beta=0.
        raw = [0.02 * jax.random.normal(kk, (cin, cout, 4, 4), jnp.float32)
               for kk, (cin, cout, _, _) in zip(keys, self.cfg)]

        # Precompute matmul weight matrices once: layer 0 -> (nz, 16*Cout);
        # layers 1..4 -> sub-pixel (9*Cin, 4*Cout).  Columns zero-padded to a
        # multiple of 128 and cast to bf16 (f32 accumulation happens on-MXU).
        self.wmats = []
        self.groups = []
        for idx, ((cin, cout, _, _), w) in enumerate(zip(self.cfg, raw)):
            if idx == 0:
                wm = jnp.transpose(w, (0, 2, 3, 1)).reshape(cin, 16 * cout)
                g = 16
            else:
                wm = _subpixel_weight(w)
                g = 4
            npad = _round_up(wm.shape[1], 128)
            wm = jnp.pad(wm, ((0, 0), (0, npad - wm.shape[1])))
            self.wmats.append(wm.astype(jnp.bfloat16))
            self.groups.append(g)

        self.bn_gamma = [jnp.ones((cout,), jnp.float32)
                         for (_, cout, _, _) in self.cfg[:-1]]
        self.bn_beta = [jnp.zeros((cout,), jnp.float32)
                        for (_, cout, _, _) in self.cfg[:-1]]

    def __call__(self, z_nchw):
        # NCHW (PyTorch) -> NHWC (kernel layout)
        x = jnp.transpose(z_nchw.astype(jnp.float32), (0, 2, 3, 1))
        last = len(self.cfg) - 1
        for i, (cin, cout, stride, padding) in enumerate(self.cfg):
            n, h, w, _ = x.shape
            g = self.groups[i]
            if i == 0:
                # TODO(synk): general H,W>1 stride-1 first layer (DCGAN latents are 1x1).
                assert h == 1 and w == 1, "first layer expects a (N, nz, 1, 1) latent"
                a = x.reshape(n, cin).astype(jnp.bfloat16)
            else:
                a = _patches_3x3(x).astype(jnp.bfloat16)
            m = a.shape[0]

            if i < last:
                o, colsum, colsq = pallas_matmul_stats(a, self.wmats[i])
                scale, shift = _bn_scale_shift(colsum, colsq, g, cout, m * g,
                                               self.bn_gamma[i], self.bn_beta[i])
                y = pallas_affine_relu(o, scale, shift)      # bf16 (Mpad, Npad)
            else:
                y = pallas_matmul_tanh(a, self.wmats[i])     # f32  (Mpad, Npad)

            y = y[:m, :g * cout]
            # Column groups -> spatial (depth-to-space back to NHWC).
            if i == 0:
                x = y.reshape(n, 4, 4, cout)
            else:
                x = y.reshape(n, h, w, 2, 2, cout)
                x = jnp.transpose(x, (0, 1, 3, 2, 4, 5)).reshape(n, 2 * h, 2 * w, cout)
        # NHWC -> NCHW, final output in f32 (tanh already applied in-kernel).
        return jnp.transpose(x.astype(jnp.float32), (0, 3, 1, 2))


if __name__ == "__main__":
    key = jax.random.PRNGKey(0)
    k_params, k_input = jax.random.split(key)

    img_size, latent_size, n_channels = 8, 8, 3   # small ngf/nz for the demo
    gen = GeneratorPallas(img_size, latent_size, n_channels, k_params)

    # DCGAN latent: (N, latent_size, 1, 1), NCHW like PyTorch.
    z = jax.random.normal(k_input, (2, latent_size, 1, 1), jnp.float32)

    fwd = jax.jit(lambda zz: gen(zz))
    out = jax.block_until_ready(fwd(z))

    assert out.shape == (2, n_channels, 64, 64), out.shape
    assert bool(jnp.all(jnp.isfinite(out)))
    assert bool(jnp.all(jnp.abs(out) <= 1.0 + 1e-6))   # tanh range
    print("KERNEL_OK")
</pallas_src>

<mosaic_0001>
module attributes {stable_mosaic.version = 11 : i64} {
  func.func @matmul_stats_kernel(%arg0: i32, %arg1: i32, %arg2: memref<16x8xbf16, #tpu.memory_space<vmem>>, %arg3: memref<8x1024xbf16, #tpu.memory_space<vmem>>, %arg4: memref<16x1024xf32, #tpu.memory_space<vmem>>, %arg5: memref<1x1x1024xf32, #tpu.memory_space<vmem>>, %arg6: memref<1x1x1024xf32, #tpu.memory_space<vmem>>, %arg7: memref<16x1024xf32, #tpu.memory_space<vmem>>) attributes {dimension_semantics = [#tpu.dimension_semantics<parallel>, #tpu.dimension_semantics<arbitrary>], iteration_bounds = array<i64: 1, 1>, scalar_prefetch = 0 : i64, scratch_operands = 1 : i64, tpu.core_type = #tpu.core_type<tc>, window_params = [{transform_indices = @transform_0, window_bounds = array<i64: 16, 8>}, {transform_indices = @transform_1, window_bounds = array<i64: 8, 1024>}, {transform_indices = @transform_2, window_bounds = array<i64: 16, 1024>}, {transform_indices = @transform_3, window_bounds = array<i64: 1, 1, 1024>}, {transform_indices = @transform_4, window_bounds = array<i64: 1, 1, 1024>}]} {
    %c0_i32 = arith.constant 0 : i32
    %0 = arith.cmpi eq, %arg1, %c0_i32 : i32
    %1 = arith.extui %0 : i1 to i32
    %c0_i32_0 = arith.constant 0 : i32
    %2 = arith.cmpi ne, %1, %c0_i32_0 : i32
    scf.if %2 {
      %cst_10 = arith.constant 0.000000e+00 : f32
      %12 = vector.broadcast %cst_10 : f32 to vector<16x1024xf32>
      %c0_11 = arith.constant 0 : index
      %c0_12 = arith.constant 0 : index
      %13 = vector.load %arg7[%c0_11, %c0_12] : memref<16x1024xf32, #tpu.memory_space<vmem>>, vector<16x1024xf32>
      tpu.vector_store %arg7[%c0_11, %c0_12], %12 {strides = array<i32>} : memref<16x1024xf32, #tpu.memory_space<vmem>>, vector<16x1024xf32>,
    } else {
    }
    %c0 = arith.constant 0 : index
    %c0_1 = arith.constant 0 : index
    %3 = vector.load %arg7[%c0, %c0_1] : memref<16x1024xf32, #tpu.memory_space<vmem>>, vector<16x1024xf32>
    %c0_2 = arith.constant 0 : index
    %c0_3 = arith.constant 0 : index
    %4 = vector.load %arg2[%c0_2, %c0_3] : memref<16x8xbf16, #tpu.memory_space<vmem>>, vector<16x8xbf16>
    %c0_4 = arith.constant 0 : index
    %c0_5 = arith.constant 0 : index
    %5 = vector.load %arg3[%c0_4, %c0_5] : memref<8x1024xbf16, #tpu.memory_space<vmem>>, vector<8x1024xbf16>
    %cst = arith.constant dense<0.000000e+00> : vector<16x1024xf32>
    %6 = tpu.matmul %4, %5, %cst {dimension_numbers = #tpu.dot_dimension_numbers<[1], [0], [0], [1], [0, 0, 1, 1], [], []>} : vector<16x8xbf16>, vector<8x1024xbf16>, vector<16x1024xf32> -> vector<16x1024xf32>
    %7 = arith.addf %3, %6 : vector<16x1024xf32>
    %c0_6 = arith.constant 0 : index
    %c0_7 = arith.constant 0 : index
    %8 = vector.load %arg7[%c0_6, %c0_7] : memref<16x1024xf32, #tpu.memory_space<vmem>>, vector<16x1024xf32>
    tpu.vector_store %arg7[%c0_6, %c0_7], %7 {strides = array<i32>} : memref<16x1024xf32, #tpu.memory_space<vmem>>, vector<16x1024xf32>,
    %c0_i32_8 = arith.constant 0 : i32
    %9 = arith.cmpi eq, %arg1, %c0_i32_8 : i32
    %10 = arith.extui %9 : i1 to i32
    %c0_i32_9 = arith.constant 0 : i32
    %11 = arith.cmpi ne, %10, %c0_i32_9 : i32
    scf.if %11 {
      %c0_10 = arith.constant 0 : index
      %c0_11 = arith.constant 0 : index
      %12 = vector.load %arg7[%c0_10, %c0_11] : memref<16x1024xf32, #tpu.memory_space<vmem>>, vector<16x1024xf32>
      %c0_12 = arith.constant 0 : index
      %c0_13 = arith.constant 0 : index
      %13 = vector.load %arg4[%c0_12, %c0_13] : memref<16x1024xf32, #tpu.memory_space<vmem>>, vector<16x1024xf32>
      tpu.vector_store %arg4[%c0_12, %c0_13], %12 {strides = array<i32>} : memref<16x1024xf32, #tpu.memory_space<vmem>>, vector<16x1024xf32>,
      %cst_14 = arith.constant dense<0.000000e+00> : vector<1024xf32>
      %14 = vector.multi_reduction <add>, %12, %cst_14 [0] : vector<16x1024xf32> to vector<1024xf32>
      %15 = vector.shape_cast %14 : vector<1024xf32> to vector<1x1024xf32>
      %16 = vector.shape_cast %15 : vector<1x1024xf32> to vector<1x1x1024xf32>
      %c0_15 = arith.constant 0 : index
      %c0_16 = arith.constant 0 : index
      %c0_17 = arith.constant 0 : index
      %17 = vector.load %arg5[%c0_15, %c0_16, %c0_17] : memref<1x1x1024xf32, #tpu.memory_space<vmem>>, vector<1x1x1024xf32>
      tpu.vector_store %arg5[%c0_15, %c0_16, %c0_17], %16 {strides = array<i32>} : memref<1x1x1024xf32, #tpu.memory_space<vmem>>, vector<1x1x1024xf32>,
      %18 = arith.mulf %12, %12 : vector<16x1024xf32>
      %cst_18 = arith.constant dense<0.000000e+00> : vector<1024xf32>
      %19 = vector.multi_reduction <add>, %18, %cst_18 [0] : vector<16x1024xf32> to vector<1024xf32>
      %20 = vector.shape_cast %19 : vector<1024xf32> to vector<1x1024xf32>
      %21 = vector.shape_cast %20 : vector<1x1024xf32> to vector<1x1x1024xf32>
      %c0_19 = arith.constant 0 : index
      %c0_20 = arith.constant 0 : index
      %c0_21 = arith.constant 0 : index
      %22 = vector.load %arg6[%c0_19, %c0_20, %c0_21] : memref<1x1x1024xf32, #tpu.memory_space<vmem>>, vector<1x1x1024xf32>
      tpu.vector_store %arg6[%c0_19, %c0_20, %c0_21], %21 {strides = array<i32>} : memref<1x1x1024xf32, #tpu.memory_space<vmem>>, vector<1x1x1024xf32>,
    } else {
    }
    return
  }
  func.func @transform_0(%arg0: i32, %arg1: i32) -> (i32, i32) {
    %c0_i32 = arith.constant 0 : i32
    return %arg0, %arg1 : i32, i32
  }
  func.func @transform_1(%arg0: i32, %arg1: i32) -> (i32, i32) {
    %c0_i32 = arith.constant 0 : i32
    %c0_i32_0 = arith.constant 0 : i32
    return %arg1, %c0_i32 : i32, i32
  }
  func.func @transform_2(%arg0: i32, %arg1: i32) -> (i32, i32) {
    %c0_i32 = arith.constant 0 : i32
    %c0_i32_0 = arith.constant 0 : i32
    return %arg0, %c0_i32 : i32, i32
  }
  func.func @transform_3(%arg0: i32, %arg1: i32) -> (i32, i32, i32) {
    %c0_i32 = arith.constant 0 : i32
    %c0_i32_0 = arith.constant 0 : i32
    %c0_i32_1 = arith.constant 0 : i32
    return %arg0, %c0_i32, %c0_i32_0 : i32, i32, i32
  }
  func.func @transform_4(%arg0: i32, %arg1: i32) -> (i32, i32, i32) {
    %c0_i32 = arith.constant 0 : i32
    %c0_i32_0 = arith.constant 0 : i32
    %c0_i32_1 = arith.constant 0 : i32
    return %arg0, %c0_i32, %c0_i32_0 : i32, i32, i32
  }
}

module attributes {stable_mosaic.version = 11 : i64} {
  func.func @affine_relu_kernel(%arg0: i32, %arg1: memref<16x1024xf32, #tpu.memory_space<vmem>>, %arg2: memref<1x1024xf32, #tpu.memory_space<vmem>>, %arg3: memref<1x1024xf32, #tpu.memory_space<vmem>>, %arg4: memref<16x1024xbf16, #tpu.memory_space<vmem>>) attributes {dimension_semantics = [#tpu.dimension_semantics<parallel>], iteration_bounds = array<i64: 1>, scalar_prefetch = 0 : i64, scratch_operands = 0 : i64, tpu.core_type = #tpu.core_type<tc>, window_params = [{transform_indices = @transform_0, window_bounds = array<i64: 16, 1024>}, {pipeline_mode = #tpu.pipeline_mode<synchronous>, transform_indices = @transform_1, window_bounds = array<i64: 1, 1024>}, {pipeline_mode = #tpu.pipeline_mode<synchronous>, transform_indices = @transform_2, window_bounds = array<i64: 1, 1024>}, {transform_indices = @transform_3, window_bounds = array<i64: 16, 1024>}]} {
    %c0 = arith.constant 0 : index
    %c0_0 = arith.constant 0 : index
    %0 = vector.load %arg1[%c0, %c0_0] : memref<16x1024xf32, #tpu.memory_space<vmem>>, vector<16x1024xf32>
    %c0_1 = arith.constant 0 : index
    %c0_2 = arith.constant 0 : index
    %1 = vector.load %arg2[%c0_1, %c0_2] : memref<1x1024xf32, #tpu.memory_space<vmem>>, vector<1x1024xf32>
    %2 = vector.broadcast %1 : vector<1x1024xf32> to vector<16x1024xf32>
    %3 = arith.mulf %0, %2 : vector<16x1024xf32>
    %c0_3 = arith.constant 0 : index
    %c0_4 = arith.constant 0 : index
    %4 = vector.load %arg3[%c0_3, %c0_4] : memref<1x1024xf32, #tpu.memory_space<vmem>>, vector<1x1024xf32>
    %5 = vector.broadcast %4 : vector<1x1024xf32> to vector<16x1024xf32>
    %6 = arith.addf %3, %5 : vector<16x1024xf32>
    %cst = arith.constant 0.000000e+00 : f32
    %7 = vector.broadcast %cst : f32 to vector<16x1024xf32>
    %8 = arith.maximumf %6, %7 : vector<16x1024xf32>
    %9 = arith.truncf %8 : vector<16x1024xf32> to vector<16x1024xbf16>
    %c0_5 = arith.constant 0 : index
    %c0_6 = arith.constant 0 : index
    %10 = vector.load %arg4[%c0_5, %c0_6] : memref<16x1024xbf16, #tpu.memory_space<vmem>>, vector<16x1024xbf16>
    tpu.vector_store %arg4[%c0_5, %c0_6], %9 {strides = array<i32>} : memref<16x1024xbf16, #tpu.memory_space<vmem>>, vector<16x1024xbf16>,
    return
  }
  func.func @transform_0(%arg0: i32) -> (i32, i32) {
    %c0_i32 = arith.constant 0 : i32
    %c0_i32_0 = arith.constant 0 : i32
    return %arg0, %c0_i32 : i32, i32
  }
  func.func @transform_1(%arg0: i32) -> (i32, i32) {
    %c0_i32 = arith.constant 0 : i32
    %c0_i32_0 = arith.constant 0 : i32
    %c0_i32_1 = arith.constant 0 : i32
    return %c0_i32, %c0_i32_0 : i32, i32
  }
  func.func @transform_2(%arg0: i32) -> (i32, i32) {
    %c0_i32 = arith.constant 0 : i32
    %c0_i32_0 = arith.constant 0 : i32
    %c0_i32_1 = arith.constant 0 : i32
    return %c0_i32, %c0_i32_0 : i32, i32
  }
  func.func @transform_3(%arg0: i32) -> (i32, i32) {
    %c0_i32 = arith.constant 0 : i32
    %c0_i32_0 = arith.constant 0 : i32
    return %arg0, %c0_i32 : i32, i32
  }
}

module attributes {stable_mosaic.version = 11 : i64} {
  func.func @matmul_stats_kernel(%arg0: i32, %arg1: i32, %arg2: memref<32x576xbf16, #tpu.memory_space<vmem>>, %arg3: memref<576x128xbf16, #tpu.memory_space<vmem>>, %arg4: memref<32x128xf32, #tpu.memory_space<vmem>>, %arg5: memref<1x1x128xf32, #tpu.memory_space<vmem>>, %arg6: memref<1x1x128xf32, #tpu.memory_space<vmem>>, %arg7: memref<32x128xf32, #tpu.memory_space<vmem>>) attributes {dimension_semantics = [#tpu.dimension_semantics<parallel>, #tpu.dimension_semantics<arbitrary>], iteration_bounds = array<i64: 1, 1>, scalar_prefetch = 0 : i64, scratch_operands = 1 : i64, tpu.core_type = #tpu.core_type<tc>, window_params = [{transform_indices = @transform_0, window_bounds = array<i64: 32, 576>}, {transform_indices = @transform_1, window_bounds = array<i64: 576, 128>}, {transform_indices = @transform_2, window_bounds = array<i64: 32, 128>}, {transform_indices = @transform_3, window_bounds = array<i64: 1, 1, 128>}, {transform_indices = @transform_4, window_bounds = array<i64: 1, 1, 128>}]} {
    %c0_i32 = arith.constant 0 : i32
    %0 = arith.cmpi eq, %arg1, %c0_i32 : i32
    %1 = arith.extui %0 : i1 to i32
    %c0_i32_0 = arith.constant 0 : i32
    %2 = arith.cmpi ne, %1, %c0_i32_0 : i32
    scf.if %2 {
      %cst_10 = arith.constant 0.000000e+00 : f32
      %12 = vector.broadcast %cst_10 : f32 to vector<32x128xf32>
      %c0_11 = arith.constant 0 : index
      %c0_12 = arith.constant 0 : index
      %13 = vector.load %arg7[%c0_11, %c0_12] : memref<32x128xf32, #tpu.memory_space<vmem>>, vector<32x128xf32>
      tpu.vector_store %arg7[%c0_11, %c0_12], %12 {strides = array<i32>} : memref<32x128xf32, #tpu.memory_space<vmem>>, vector<32x128xf32>,
    } else {
    }
    %c0 = arith.constant 0 : index
    %c0_1 = arith.constant 0 : index
    %3 = vector.load %arg7[%c0, %c0_1] : memref<32x128xf32, #tpu.memory_space<vmem>>, vector<32x128xf32>
    %c0_2 = arith.constant 0 : index
    %c0_3 = arith.constant 0 : index
    %4 = vector.load %arg2[%c0_2, %c0_3] : memref<32x576xbf16, #tpu.memory_space<vmem>>, vector<32x576xbf16>
    %c0_4 = arith.constant 0 : index
    %c0_5 = arith.constant 0 : index
    %5 = vector.load %arg3[%c0_4, %c0_5] : memref<576x128xbf16, #tpu.memory_space<vmem>>, vector<576x128xbf16>
    %cst = arith.constant dense<0.000000e+00> : vector<32x128xf32>
    %6 = tpu.matmul %4, %5, %cst {dimension_numbers = #tpu.dot_dimension_numbers<[1], [0], [0], [1], [0, 0, 1, 1], [], []>} : vector<32x576xbf16>, vector<576x128xbf16>, vector<32x128xf32> -> vector<32x128xf32>
    %7 = arith.addf %3, %6 : vector<32x128xf32>
    %c0_6 = arith.constant 0 : index
    %c0_7 = arith.constant 0 : index
    %8 = vector.load %arg7[%c0_6, %c0_7] : memref<32x128xf32, #tpu.memory_space<vmem>>, vector<32x128xf32>
    tpu.vector_store %arg7[%c0_6, %c0_7], %7 {strides = array<i32>} : memref<32x128xf32, #tpu.memory_space<vmem>>, vector<32x128xf32>,
    %c0_i32_8 = arith.constant 0 : i32
    %9 = arith.cmpi eq, %arg1, %c0_i32_8 : i32
    %10 = arith.extui %9 : i1 to i32
    %c0_i32_9 = arith.constant 0 : i32
    %11 = arith.cmpi ne, %10, %c0_i32_9 : i32
    scf.if %11 {
      %c0_10 = arith.constant 0 : index
      %c0_11 = arith.constant 0 : index
      %12 = vector.load %arg7[%c0_10, %c0_11] : memref<32x128xf32, #tpu.memory_space<vmem>>, vector<32x128xf32>
      %c0_12 = arith.constant 0 : index
      %c0_13 = arith.constant 0 : index
      %13 = vector.load %arg4[%c0_12, %c0_13] : memref<32x128xf32, #tpu.memory_space<vmem>>, vector<32x128xf32>
      tpu.vector_store %arg4[%c0_12, %c0_13], %12 {strides = array<i32>} : memref<32x128xf32, #tpu.memory_space<vmem>>, vector<32x128xf32>,
      %cst_14 = arith.constant dense<0.000000e+00> : vector<128xf32>
      %14 = vector.multi_reduction <add>, %12, %cst_14 [0] : vector<32x128xf32> to vector<128xf32>
      %15 = vector.shape_cast %14 : vector<128xf32> to vector<1x128xf32>
      %16 = vector.shape_cast %15 : vector<1x128xf32> to vector<1x1x128xf32>
      %c0_15 = arith.constant 0 : index
      %c0_16 = arith.constant 0 : index
      %c0_17 = arith.constant 0 : index
      %17 = vector.load %arg5[%c0_15, %c0_16, %c0_17] : memref<1x1x128xf32, #tpu.memory_space<vmem>>, vector<1x1x128xf32>
      tpu.vector_store %arg5[%c0_15, %c0_16, %c0_17], %16 {strides = array<i32>} : memref<1x1x128xf32, #tpu.memory_space<vmem>>, vector<1x1x128xf32>,
      %18 = arith.mulf %12, %12 : vector<32x128xf32>
      %cst_18 = arith.constant dense<0.000000e+00> : vector<128xf32>
      %19 = vector.multi_reduction <add>, %18, %cst_18 [0] : vector<32x128xf32> to vector<128xf32>
      %20 = vector.shape_cast %19 : vector<128xf32> to vector<1x128xf32>
      %21 = vector.shape_cast %20 : vector<1x128xf32> to vector<1x1x128xf32>
      %c0_19 = arith.constant 0 : index
      %c0_20 = arith.constant 0 : index
      %c0_21 = arith.constant 0 : index
      %22 = vector.load %arg6[%c0_19, %c0_20, %c0_21] : memref<1x1x128xf32, #tpu.memory_space<vmem>>, vector<1x1x128xf32>
      tpu.vector_store %arg6[%c0_19, %c0_20, %c0_21], %21 {strides = array<i32>} : memref<1x1x128xf32, #tpu.memory_space<vmem>>, vector<1x1x128xf32>,
    } else {
    }
    return
  }
  func.func @transform_0(%arg0: i32, %arg1: i32) -> (i32, i32) {
    %c0_i32 = arith.constant 0 : i32
    return %arg0, %arg1 : i32, i32
  }
  func.func @transform_1(%arg0: i32, %arg1: i32) -> (i32, i32) {
    %c0_i32 = arith.constant 0 : i32
    %c0_i32_0 = arith.constant 0 : i32
    return %arg1, %c0_i32 : i32, i32
  }
  func.func @transform_2(%arg0: i32, %arg1: i32) -> (i32, i32) {
    %c0_i32 = arith.constant 0 : i32
    %c0_i32_0 = arith.constant 0 : i32
    return %arg0, %c0_i32 : i32, i32
  }
  func.func @transform_3(%arg0: i32, %arg1: i32) -> (i32, i32, i32) {
    %c0_i32 = arith.constant 0 : i32
    %c0_i32_0 = arith.constant 0 : i32
    %c0_i32_1 = arith.constant 0 : i32
    return %arg0, %c0_i32, %c0_i32_0 : i32, i32, i32
  }
  func.func @transform_4(%arg0: i32, %arg1: i32) -> (i32, i32, i32) {
    %c0_i32 = arith.constant 0 : i32
    %c0_i32_0 = arith.constant 0 : i32
    %c0_i32_1 = arith.constant 0 : i32
    return %arg0, %c0_i32, %c0_i32_0 : i32, i32, i32
  }
}

module attributes {stable_mosaic.version = 11 : i64} {
  func.func @affine_relu_kernel(%arg0: i32, %arg1: memref<32x128xf32, #tpu.memory_space<vmem>>, %arg2: memref<1x128xf32, #tpu.memory_space<vmem>>, %arg3: memref<1x128xf32, #tpu.memory_space<vmem>>, %arg4: memref<32x128xbf16, #tpu.memory_space<vmem>>) attributes {dimension_semantics = [#tpu.dimension_semantics<parallel>], iteration_bounds = array<i64: 1>, scalar_prefetch = 0 : i64, scratch_operands = 0 : i64, tpu.core_type = #tpu.core_type<tc>, window_params = [{transform_indices = @transform_0, window_bounds = array<i64: 32, 128>}, {pipeline_mode = #tpu.pipeline_mode<synchronous>, transform_indices = @transform_1, window_bounds = array<i64: 1, 128>}, {pipeline_mode = #tpu.pipeline_mode<synchronous>, transform_indices = @transform_2, window_bounds = array<i64: 1, 128>}, {transform_indices = @transform_3, window_bounds = array<i64: 32, 128>}]} {
    %c0 = arith.constant 0 : index
    %c0_0 = arith.constant 0 : index
    %0 = vector.load %arg1[%c0, %c0_0] : memref<32x128xf32, #tpu.memory_space<vmem>>, vector<32x128xf32>
    %c0_1 = arith.constant 0 : index
    %c0_2 = arith.constant 0 : index
    %1 = vector.load %arg2[%c0_1, %c0_2] : memref<1x128xf32, #tpu.memory_space<vmem>>, vector<1x128xf32>
    %2 = vector.broadcast %1 : vector<1x128xf32> to vector<32x128xf32>
    %3 = arith.mulf %0, %2 : vector<32x128xf32>
    %c0_3 = arith.constant 0 : index
    %c0_4 = arith.constant 0 : index
    %4 = vector.load %arg3[%c0_3, %c0_4] : memref<1x128xf32, #tpu.memory_space<vmem>>, vector<1x128xf32>
    %5 = vector.broadcast %4 : vector<1x128xf32> to vector<32x128xf32>
    %6 = arith.addf %3, %5 : vector<32x128xf32>
    %cst = arith.constant 0.000000e+00 : f32
    %7 = vector.broadcast %cst : f32 to vector<32x128xf32>
    %8 = arith.maximumf %6, %7 : vector<32x128xf32>
    %9 = arith.truncf %8 : vector<32x128xf32> to vector<32x128xbf16>
    %c0_5 = arith.constant 0 : index
    %c0_6 = arith.constant 0 : index
    %10 = vector.load %arg4[%c0_5, %c0_6] : memref<32x128xbf16, #tpu.memory_space<vmem>>, vector<32x128xbf16>
    tpu.vector_store %arg4[%c0_5, %c0_6], %9 {strides = array<i32>} : memref<32x128xbf16, #tpu.memory_space<vmem>>, vector<32x128xbf16>,
    return
  }
  func.func @transform_0(%arg0: i32) -> (i32, i32) {
    %c0_i32 = arith.constant 0 : i32
    %c0_i32_0 = arith.constant 0 : i32
    return %arg0, %c0_i32 : i32, i32
  }
  func.func @transform_1(%arg0: i32) -> (i32, i32) {
    %c0_i32 = arith.constant 0 : i32
    %c0_i32_0 = arith.constant 0 : i32
    %c0_i32_1 = arith.constant 0 : i32
    return %c0_i32, %c0_i32_0 : i32, i32
  }
  func.func @transform_2(%arg0: i32) -> (i32, i32) {
    %c0_i32 = arith.constant 0 : i32
    %c0_i32_0 = arith.constant 0 : i32
    %c0_i32_1 = arith.constant 0 : i32
    return %c0_i32, %c0_i32_0 : i32, i32
  }
  func.func @transform_3(%arg0: i32) -> (i32, i32) {
    %c0_i32 = arith.constant 0 : i32
    %c0_i32_0 = arith.constant 0 : i32
    return %arg0, %c0_i32 : i32, i32
  }
}

module attributes {stable_mosaic.version = 11 : i64} {
  func.func @matmul_stats_kernel(%arg0: i32, %arg1: i32, %arg2: memref<128x288xbf16, #tpu.memory_space<vmem>>, %arg3: memref<288x128xbf16, #tpu.memory_space<vmem>>, %arg4: memref<128x128xf32, #tpu.memory_space<vmem>>, %arg5: memref<1x1x128xf32, #tpu.memory_space<vmem>>, %arg6: memref<1x1x128xf32, #tpu.memory_space<vmem>>, %arg7: memref<128x128xf32, #tpu.memory_space<vmem>>) attributes {dimension_semantics = [#tpu.dimension_semantics<parallel>, #tpu.dimension_semantics<arbitrary>], iteration_bounds = array<i64: 1, 1>, scalar_prefetch = 0 : i64, scratch_operands = 1 : i64, tpu.core_type = #tpu.core_type<tc>, window_params = [{transform_indices = @transform_0, window_bounds = array<i64: 128, 288>}, {transform_indices = @transform_1, window_bounds = array<i64: 288, 128>}, {transform_indices = @transform_2, window_bounds = array<i64: 128, 128>}, {transform_indices = @transform_3, window_bounds = array<i64: 1, 1, 128>}, {transform_indices = @transform_4, window_bounds = array<i64: 1, 1, 128>}]} {
    %c0_i32 = arith.constant 0 : i32
    %0 = arith.cmpi eq, %arg1, %c0_i32 : i32
    %1 = arith.extui %0 : i1 to i32
    %c0_i32_0 = arith.constant 0 : i32
    %2 = arith.cmpi ne, %1, %c0_i32_0 : i32
    scf.if %2 {
      %cst_10 = arith.constant 0.000000e+00 : f32
      %12 = vector.broadcast %cst_10 : f32 to vector<128x128xf32>
      %c0_11 = arith.constant 0 : index
      %c0_12 = arith.constant 0 : index
      %13 = vector.load %arg7[%c0_11, %c0_12] : memref<128x128xf32, #tpu.memory_space<vmem>>, vector<128x128xf32>
      tpu.vector_store %arg7[%c0_11, %c0_12], %12 {strides = array<i32>} : memref<128x128xf32, #tpu.memory_space<vmem>>, vector<128x128xf32>,
    } else {
    }
    %c0 = arith.constant 0 : index
    %c0_1 = arith.constant 0 : index
    %3 = vector.load %arg7[%c0, %c0_1] : memref<128x128xf32, #tpu.memory_space<vmem>>, vector<128x128xf32>
    %c0_2 = arith.constant 0 : index
    %c0_3 = arith.constant 0 : index
    %4 = vector.load %arg2[%c0_2, %c0_3] : memref<128x288xbf16, #tpu.memory_space<vmem>>, vector<128x288xbf16>
    %c0_4 = arith.constant 0 : index
    %c0_5 = arith.constant 0 : index
    %5 = vector.load %arg3[%c0_4, %c0_5] : memref<288x128xbf16, #tpu.memory_space<vmem>>, vector<288x128xbf16>
    %cst = arith.constant dense<0.000000e+00> : vector<128x128xf32>
    %6 = tpu.matmul %4, %5, %cst {dimension_numbers = #tpu.dot_dimension_numbers<[1], [0], [0], [1], [0, 0, 1, 1], [], []>} : vector<128x288xbf16>, vector<288x128xbf16>, vector<128x128xf32> -> vector<128x128xf32>
    %7 = arith.addf %3, %6 : vector<128x128xf32>
    %c0_6 = arith.constant 0 : index
    %c0_7 = arith.constant 0 : index
    %8 = vector.load %arg7[%c0_6, %c0_7] : memref<128x128xf32, #tpu.memory_space<vmem>>, vector<128x128xf32>
    tpu.vector_store %arg7[%c0_6, %c0_7], %7 {strides = array<i32>} : memref<128x128xf32, #tpu.memory_space<vmem>>, vector<128x128xf32>,
    %c0_i32_8 = arith.constant 0 : i32
    %9 = arith.cmpi eq, %arg1, %c0_i32_8 : i32
    %10 = arith.extui %9 : i1 to i32
    %c0_i32_9 = arith.constant 0 : i32
    %11 = arith.cmpi ne, %10, %c0_i32_9 : i32
    scf.if %11 {
      %c0_10 = arith.constant 0 : index
      %c0_11 = arith.constant 0 : index
      %12 = vector.load %arg7[%c0_10, %c0_11] : memref<128x128xf32, #tpu.memory_space<vmem>>, vector<128x128xf32>
      %c0_12 = arith.constant 0 : index
      %c0_13 = arith.constant 0 : index
      %13 = vector.load %arg4[%c0_12, %c0_13] : memref<128x128xf32, #tpu.memory_space<vmem>>, vector<128x128xf32>
      tpu.vector_store %arg4[%c0_12, %c0_13], %12 {strides = array<i32>} : memref<128x128xf32, #tpu.memory_space<vmem>>, vector<128x128xf32>,
      %cst_14 = arith.constant dense<0.000000e+00> : vector<128xf32>
      %14 = vector.multi_reduction <add>, %12, %cst_14 [0] : vector<128x128xf32> to vector<128xf32>
      %15 = vector.shape_cast %14 : vector<128xf32> to vector<1x128xf32>
      %16 = vector.shape_cast %15 : vector<1x128xf32> to vector<1x1x128xf32>
      %c0_15 = arith.constant 0 : index
      %c0_16 = arith.constant 0 : index
      %c0_17 = arith.constant 0 : index
      %17 = vector.load %arg5[%c0_15, %c0_16, %c0_17] : memref<1x1x128xf32, #tpu.memory_space<vmem>>, vector<1x1x128xf32>
      tpu.vector_store %arg5[%c0_15, %c0_16, %c0_17], %16 {strides = array<i32>} : memref<1x1x128xf32, #tpu.memory_space<vmem>>, vector<1x1x128xf32>,
      %18 = arith.mulf %12, %12 : vector<128x128xf32>
      %cst_18 = arith.constant dense<0.000000e+00> : vector<128xf32>
      %19 = vector.multi_reduction <add>, %18, %cst_18 [0] : vector<128x128xf32> to vector<128xf32>
      %20 = vector.shape_cast %19 : vector<128xf32> to vector<1x128xf32>
      %21 = vector.shape_cast %20 : vector<1x128xf32> to vector<1x1x128xf32>
      %c0_19 = arith.constant 0 : index
      %c0_20 = arith.constant 0 : index
      %c0_21 = arith.constant 0 : index
      %22 = vector.load %arg6[%c0_19, %c0_20, %c0_21] : memref<1x1x128xf32, #tpu.memory_space<vmem>>, vector<1x1x128xf32>
      tpu.vector_store %arg6[%c0_19, %c0_20, %c0_21], %21 {strides = array<i32>} : memref<1x1x128xf32, #tpu.memory_space<vmem>>, vector<1x1x128xf32>,
    } else {
    }
    return
  }
  func.func @transform_0(%arg0: i32, %arg1: i32) -> (i32, i32) {
    %c0_i32 = arith.constant 0 : i32
    return %arg0, %arg1 : i32, i32
  }
  func.func @transform_1(%arg0: i32, %arg1: i32) -> (i32, i32) {
    %c0_i32 = arith.constant 0 : i32
    %c0_i32_0 = arith.constant 0 : i32
    return %arg1, %c0_i32 : i32, i32
  }
  func.func @transform_2(%arg0: i32, %arg1: i32) -> (i32, i32) {
    %c0_i32 = arith.constant 0 : i32
    %c0_i32_0 = arith.constant 0 : i32
    return %arg0, %c0_i32 : i32, i32
  }
  func.func @transform_3(%arg0: i32, %arg1: i32) -> (i32, i32, i32) {
    %c0_i32 = arith.constant 0 : i32
    %c0_i32_0 = arith.constant 0 : i32
    %c0_i32_1 = arith.constant 0 : i32
    return %arg0, %c0_i32, %c0_i32_0 : i32, i32, i32
  }
  func.func @transform_4(%arg0: i32, %arg1: i32) -> (i32, i32, i32) {
    %c0_i32 = arith.constant 0 : i32
    %c0_i32_0 = arith.constant 0 : i32
    %c0_i32_1 = arith.constant 0 : i32
    return %arg0, %c0_i32, %c0_i32_0 : i32, i32, i32
  }
}

module attributes {stable_mosaic.version = 11 : i64} {
  func.func @affine_relu_kernel(%arg0: i32, %arg1: memref<128x128xf32, #tpu.memory_space<vmem>>, %arg2: memref<1x128xf32, #tpu.memory_space<vmem>>, %arg3: memref<1x128xf32, #tpu.memory_space<vmem>>, %arg4: memref<128x128xbf16, #tpu.memory_space<vmem>>) attributes {dimension_semantics = [#tpu.dimension_semantics<parallel>], iteration_bounds = array<i64: 1>, scalar_prefetch = 0 : i64, scratch_operands = 0 : i64, tpu.core_type = #tpu.core_type<tc>, window_params = [{transform_indices = @transform_0, window_bounds = array<i64: 128, 128>}, {pipeline_mode = #tpu.pipeline_mode<synchronous>, transform_indices = @transform_1, window_bounds = array<i64: 1, 128>}, {pipeline_mode = #tpu.pipeline_mode<synchronous>, transform_indices = @transform_2, window_bounds = array<i64: 1, 128>}, {transform_indices = @transform_3, window_bounds = array<i64: 128, 128>}]} {
    %c0 = arith.constant 0 : index
    %c0_0 = arith.constant 0 : index
    %0 = vector.load %arg1[%c0, %c0_0] : memref<128x128xf32, #tpu.memory_space<vmem>>, vector<128x128xf32>
    %c0_1 = arith.constant 0 : index
    %c0_2 = arith.constant 0 : index
    %1 = vector.load %arg2[%c0_1, %c0_2] : memref<1x128xf32, #tpu.memory_space<vmem>>, vector<1x128xf32>
    %2 = vector.broadcast %1 : vector<1x128xf32> to vector<128x128xf32>
    %3 = arith.mulf %0, %2 : vector<128x128xf32>
    %c0_3 = arith.constant 0 : index
    %c0_4 = arith.constant 0 : index
    %4 = vector.load %arg3[%c0_3, %c0_4] : memref<1x128xf32, #tpu.memory_space<vmem>>, vector<1x128xf32>
    %5 = vector.broadcast %4 : vector<1x128xf32> to vector<128x128xf32>
    %6 = arith.addf %3, %5 : vector<128x128xf32>
    %cst = arith.constant 0.000000e+00 : f32
    %7 = vector.broadcast %cst : f32 to vector<128x128xf32>
    %8 = arith.maximumf %6, %7 : vector<128x128xf32>
    %9 = arith.truncf %8 : vector<128x128xf32> to vector<128x128xbf16>
    %c0_5 = arith.constant 0 : index
    %c0_6 = arith.constant 0 : index
    %10 = vector.load %arg4[%c0_5, %c0_6] : memref<128x128xbf16, #tpu.memory_space<vmem>>, vector<128x128xbf16>
    tpu.vector_store %arg4[%c0_5, %c0_6], %9 {strides = array<i32>} : memref<128x128xbf16, #tpu.memory_space<vmem>>, vector<128x128xbf16>,
    return
  }
  func.func @transform_0(%arg0: i32) -> (i32, i32) {
    %c0_i32 = arith.constant 0 : i32
    %c0_i32_0 = arith.constant 0 : i32
    return %arg0, %c0_i32 : i32, i32
  }
  func.func @transform_1(%arg0: i32) -> (i32, i32) {
    %c0_i32 = arith.constant 0 : i32
    %c0_i32_0 = arith.constant 0 : i32
    %c0_i32_1 = arith.constant 0 : i32
    return %c0_i32, %c0_i32_0 : i32, i32
  }
  func.func @transform_2(%arg0: i32) -> (i32, i32) {
    %c0_i32 = arith.constant 0 : i32
    %c0_i32_0 = arith.constant 0 : i32
    %c0_i32_1 = arith.constant 0 : i32
    return %c0_i32, %c0_i32_0 : i32, i32
  }
  func.func @transform_3(%arg0: i32) -> (i32, i32) {
    %c0_i32 = arith.constant 0 : i32
    %c0_i32_0 = arith.constant 0 : i32
    return %arg0, %c0_i32 : i32, i32
  }
}

module attributes {stable_mosaic.version = 11 : i64} {
  func.func @matmul_stats_kernel(%arg0: i32, %arg1: i32, %arg2: memref<512x144xbf16, #tpu.memory_space<vmem>>, %arg3: memref<144x128xbf16, #tpu.memory_space<vmem>>, %arg4: memref<512x128xf32, #tpu.memory_space<vmem>>, %arg5: memref<1x1x128xf32, #tpu.memory_space<vmem>>, %arg6: memref<1x1x128xf32, #tpu.memory_space<vmem>>, %arg7: memref<512x128xf32, #tpu.memory_space<vmem>>) attributes {dimension_semantics = [#tpu.dimension_semantics<parallel>, #tpu.dimension_semantics<arbitrary>], iteration_bounds = array<i64: 1, 1>, scalar_prefetch = 0 : i64, scratch_operands = 1 : i64, tpu.core_type = #tpu.core_type<tc>, window_params = [{transform_indices = @transform_0, window_bounds = array<i64: 512, 144>}, {transform_indices = @transform_1, window_bounds = array<i64: 144, 128>}, {transform_indices = @transform_2, window_bounds = array<i64: 512, 128>}, {transform_indices = @transform_3, window_bounds = array<i64: 1, 1, 128>}, {transform_indices = @transform_4, window_bounds = array<i64: 1, 1, 128>}]} {
    %c0_i32 = arith.constant 0 : i32
    %0 = arith.cmpi eq, %arg1, %c0_i32 : i32
    %1 = arith.extui %0 : i1 to i32
    %c0_i32_0 = arith.constant 0 : i32
    %2 = arith.cmpi ne, %1, %c0_i32_0 : i32
    scf.if %2 {
      %cst_10 = arith.constant 0.000000e+00 : f32
      %12 = vector.broadcast %cst_10 : f32 to vector<512x128xf32>
      %c0_11 = arith.constant 0 : index
      %c0_12 = arith.constant 0 : index
      %13 = vector.load %arg7[%c0_11, %c0_12] : memref<512x128xf32, #tpu.memory_space<vmem>>, vector<512x128xf32>
      tpu.vector_store %arg7[%c0_11, %c0_12], %12 {strides = array<i32>} : memref<512x128xf32, #tpu.memory_space<vmem>>, vector<512x128xf32>,
    } else {
    }
    %c0 = arith.constant 0 : index
    %c0_1 = arith.constant 0 : index
    %3 = vector.load %arg7[%c0, %c0_1] : memref<512x128xf32, #tpu.memory_space<vmem>>, vector<512x128xf32>
    %c0_2 = arith.constant 0 : index
    %c0_3 = arith.constant 0 : index
    %4 = vector.load %arg2[%c0_2, %c0_3] : memref<512x144xbf16, #tpu.memory_space<vmem>>, vector<512x144xbf16>
    %c0_4 = arith.constant 0 : index
    %c0_5 = arith.constant 0 : index
    %5 = vector.load %arg3[%c0_4, %c0_5] : memref<144x128xbf16, #tpu.memory_space<vmem>>, vector<144x128xbf16>
    %cst = arith.constant dense<0.000000e+00> : vector<512x128xf32>
    %6 = tpu.matmul %4, %5, %cst {dimension_numbers = #tpu.dot_dimension_numbers<[1], [0], [0], [1], [0, 0, 1, 1], [], []>} : vector<512x144xbf16>, vector<144x128xbf16>, vector<512x128xf32> -> vector<512x128xf32>
    %7 = arith.addf %3, %6 : vector<512x128xf32>
    %c0_6 = arith.constant 0 : index
    %c0_7 = arith.constant 0 : index
    %8 = vector.load %arg7[%c0_6, %c0_7] : memref<512x128xf32, #tpu.memory_space<vmem>>, vector<512x128xf32>
    tpu.vector_store %arg7[%c0_6, %c0_7], %7 {strides = array<i32>} : memref<512x128xf32, #tpu.memory_space<vmem>>, vector<512x128xf32>,
    %c0_i32_8 = arith.constant 0 : i32
    %9 = arith.cmpi eq, %arg1, %c0_i32_8 : i32
    %10 = arith.extui %9 : i1 to i32
    %c0_i32_9 = arith.constant 0 : i32
    %11 = arith.cmpi ne, %10, %c0_i32_9 : i32
    scf.if %11 {
      %c0_10 = arith.constant 0 : index
      %c0_11 = arith.constant 0 : index
      %12 = vector.load %arg7[%c0_10, %c0_11] : memref<512x128xf32, #tpu.memory_space<vmem>>, vector<512x128xf32>
      %c0_12 = arith.constant 0 : index
      %c0_13 = arith.constant 0 : index
      %13 = vector.load %arg4[%c0_12, %c0_13] : memref<512x128xf32, #tpu.memory_space<vmem>>, vector<512x128xf32>
      tpu.vector_store %arg4[%c0_12, %c0_13], %12 {strides = array<i32>} : memref<512x128xf32, #tpu.memory_space<vmem>>, vector<512x128xf32>,
      %cst_14 = arith.constant dense<0.000000e+00> : vector<128xf32>
      %14 = vector.multi_reduction <add>, %12, %cst_14 [0] : vector<512x128xf32> to vector<128xf32>
      %15 = vector.shape_cast %14 : vector<128xf32> to vector<1x128xf32>
      %16 = vector.shape_cast %15 : vector<1x128xf32> to vector<1x1x128xf32>
      %c0_15 = arith.constant 0 : index
      %c0_16 = arith.constant 0 : index
      %c0_17 = arith.constant 0 : index
      %17 = vector.load %arg5[%c0_15, %c0_16, %c0_17] : memref<1x1x128xf32, #tpu.memory_space<vmem>>, vector<1x1x128xf32>
      tpu.vector_store %arg5[%c0_15, %c0_16, %c0_17], %16 {strides = array<i32>} : memref<1x1x128xf32, #tpu.memory_space<vmem>>, vector<1x1x128xf32>,
      %18 = arith.mulf %12, %12 : vector<512x128xf32>
      %cst_18 = arith.constant dense<0.000000e+00> : vector<128xf32>
      %19 = vector.multi_reduction <add>, %18, %cst_18 [0] : vector<512x128xf32> to vector<128xf32>
      %20 = vector.shape_cast %19 : vector<128xf32> to vector<1x128xf32>
      %21 = vector.shape_cast %20 : vector<1x128xf32> to vector<1x1x128xf32>
      %c0_19 = arith.constant 0 : index
      %c0_20 = arith.constant 0 : index
      %c0_21 = arith.constant 0 : index
      %22 = vector.load %arg6[%c0_19, %c0_20, %c0_21] : memref<1x1x128xf32, #tpu.memory_space<vmem>>, vector<1x1x128xf32>
      tpu.vector_store %arg6[%c0_19, %c0_20, %c0_21], %21 {strides = array<i32>} : memref<1x1x128xf32, #tpu.memory_space<vmem>>, vector<1x1x128xf32>,
    } else {
    }
    return
  }
  func.func @transform_0(%arg0: i32, %arg1: i32) -> (i32, i32) {
    %c0_i32 = arith.constant 0 : i32
    return %arg0, %arg1 : i32, i32
  }
  func.func @transform_1(%arg0: i32, %arg1: i32) -> (i32, i32) {
    %c0_i32 = arith.constant 0 : i32
    %c0_i32_0 = arith.constant 0 : i32
    return %arg1, %c0_i32 : i32, i32
  }
  func.func @transform_2(%arg0: i32, %arg1: i32) -> (i32, i32) {
    %c0_i32 = arith.constant 0 : i32
    %c0_i32_0 = arith.constant 0 : i32
    return %arg0, %c0_i32 : i32, i32
  }
  func.func @transform_3(%arg0: i32, %arg1: i32) -> (i32, i32, i32) {
    %c0_i32 = arith.constant 0 : i32
    %c0_i32_0 = arith.constant 0 : i32
    %c0_i32_1 = arith.constant 0 : i32
    return %arg0, %c0_i32, %c0_i32_0 : i32, i32, i32
  }
  func.func @transform_4(%arg0: i32, %arg1: i32) -> (i32, i32, i32) {
    %c0_i32 = arith.constant 0 : i32
    %c0_i32_0 = arith.constant 0 : i32
    %c0_i32_1 = arith.constant 0 : i32
    return %arg0, %c0_i32, %c0_i32_0 : i32, i32, i32
  }
}

module attributes {stable_mosaic.version = 11 : i64} {
  func.func @affine_relu_kernel(%arg0: i32, %arg1: memref<512x128xf32, #tpu.memory_space<vmem>>, %arg2: memref<1x128xf32, #tpu.memory_space<vmem>>, %arg3: memref<1x128xf32, #tpu.memory_space<vmem>>, %arg4: memref<512x128xbf16, #tpu.memory_space<vmem>>) attributes {dimension_semantics = [#tpu.dimension_semantics<parallel>], iteration_bounds = array<i64: 1>, scalar_prefetch = 0 : i64, scratch_operands = 0 : i64, tpu.core_type = #tpu.core_type<tc>, window_params = [{transform_indices = @transform_0, window_bounds = array<i64: 512, 128>}, {pipeline_mode = #tpu.pipeline_mode<synchronous>, transform_indices = @transform_1, window_bounds = array<i64: 1, 128>}, {pipeline_mode = #tpu.pipeline_mode<synchronous>, transform_indices = @transform_2, window_bounds = array<i64: 1, 128>}, {transform_indices = @transform_3, window_bounds = array<i64: 512, 128>}]} {
    %c0 = arith.constant 0 : index
    %c0_0 = arith.constant 0 : index
    %0 = vector.load %arg1[%c0, %c0_0] : memref<512x128xf32, #tpu.memory_space<vmem>>, vector<512x128xf32>
    %c0_1 = arith.constant 0 : index
    %c0_2 = arith.constant 0 : index
    %1 = vector.load %arg2[%c0_1, %c0_2] : memref<1x128xf32, #tpu.memory_space<vmem>>, vector<1x128xf32>
    %2 = vector.broadcast %1 : vector<1x128xf32> to vector<512x128xf32>
    %3 = arith.mulf %0, %2 : vector<512x128xf32>
    %c0_3 = arith.constant 0 : index
    %c0_4 = arith.constant 0 : index
    %4 = vector.load %arg3[%c0_3, %c0_4] : memref<1x128xf32, #tpu.memory_space<vmem>>, vector<1x128xf32>
    %5 = vector.broadcast %4 : vector<1x128xf32> to vector<512x128xf32>
    %6 = arith.addf %3, %5 : vector<512x128xf32>
    %cst = arith.constant 0.000000e+00 : f32
    %7 = vector.broadcast %cst : f32 to vector<512x128xf32>
    %8 = arith.maximumf %6, %7 : vector<512x128xf32>
    %9 = arith.truncf %8 : vector<512x128xf32> to vector<512x128xbf16>
    %c0_5 = arith.constant 0 : index
    %c0_6 = arith.constant 0 : index
    %10 = vector.load %arg4[%c0_5, %c0_6] : memref<512x128xbf16, #tpu.memory_space<vmem>>, vector<512x128xbf16>
    tpu.vector_store %arg4[%c0_5, %c0_6], %9 {strides = array<i32>} : memref<512x128xbf16, #tpu.memory_space<vmem>>, vector<512x128xbf16>,
    return
  }
  func.func @transform_0(%arg0: i32) -> (i32, i32) {
    %c0_i32 = arith.constant 0 : i32
    %c0_i32_0 = arith.constant 0 : i32
    return %arg0, %c0_i32 : i32, i32
  }
  func.func @transform_1(%arg0: i32) -> (i32, i32) {
    %c0_i32 = arith.constant 0 : i32
    %c0_i32_0 = arith.constant 0 : i32
    %c0_i32_1 = arith.constant 0 : i32
    return %c0_i32, %c0_i32_0 : i32, i32
  }
  func.func @transform_2(%arg0: i32) -> (i32, i32) {
    %c0_i32 = arith.constant 0 : i32
    %c0_i32_0 = arith.constant 0 : i32
    %c0_i32_1 = arith.constant 0 : i32
    return %c0_i32, %c0_i32_0 : i32, i32
  }
  func.func @transform_3(%arg0: i32) -> (i32, i32) {
    %c0_i32 = arith.constant 0 : i32
    %c0_i32_0 = arith.constant 0 : i32
    return %arg0, %c0_i32 : i32, i32
  }
}

module attributes {stable_mosaic.version = 11 : i64} {
  func.func @matmul_tanh_kernel(%arg0: i32, %arg1: i32, %arg2: memref<1024x72xbf16, #tpu.memory_space<vmem>>, %arg3: memref<72x128xbf16, #tpu.memory_space<vmem>>, %arg4: memref<1024x128xf32, #tpu.memory_space<vmem>>, %arg5: memref<1024x128xf32, #tpu.memory_space<vmem>>) attributes {dimension_semantics = [#tpu.dimension_semantics<parallel>, #tpu.dimension_semantics<arbitrary>], iteration_bounds = array<i64: 2, 1>, scalar_prefetch = 0 : i64, scratch_operands = 1 : i64, tpu.core_type = #tpu.core_type<tc>, window_params = [{transform_indices = @transform_0, window_bounds = array<i64: 1024, 72>}, {transform_indices = @transform_1, window_bounds = array<i64: 72, 128>}, {transform_indices = @transform_2, window_bounds = array<i64: 1024, 128>}]} {
    %c0_i32 = arith.constant 0 : i32
    %0 = arith.cmpi eq, %arg1, %c0_i32 : i32
    %1 = arith.extui %0 : i1 to i32
    %c0_i32_0 = arith.constant 0 : i32
    %2 = arith.cmpi ne, %1, %c0_i32_0 : i32
    scf.if %2 {
      %cst_10 = arith.constant 0.000000e+00 : f32
      %12 = vector.broadcast %cst_10 : f32 to vector<1024x128xf32>
      %c0_11 = arith.constant 0 : index
      %c0_12 = arith.constant 0 : index
      %13 = vector.load %arg5[%c0_11, %c0_12] : memref<1024x128xf32, #tpu.memory_space<vmem>>, vector<1024x128xf32>
      tpu.vector_store %arg5[%c0_11, %c0_12], %12 {strides = array<i32>} : memref<1024x128xf32, #tpu.memory_space<vmem>>, vector<1024x128xf32>,
    } else {
    }
    %c0 = arith.constant 0 : index
    %c0_1 = arith.constant 0 : index
    %3 = vector.load %arg5[%c0, %c0_1] : memref<1024x128xf32, #tpu.memory_space<vmem>>, vector<1024x128xf32>
    %c0_2 = arith.constant 0 : index
    %c0_3 = arith.constant 0 : index
    %4 = vector.load %arg2[%c0_2, %c0_3] : memref<1024x72xbf16, #tpu.memory_space<vmem>>, vector<1024x72xbf16>
    %c0_4 = arith.constant 0 : index
    %c0_5 = arith.constant 0 : index
    %5 = vector.load %arg3[%c0_4, %c0_5] : memref<72x128xbf16, #tpu.memory_space<vmem>>, vector<72x128xbf16>
    %cst = arith.constant dense<0.000000e+00> : vector<1024x128xf32>
    %6 = tpu.matmul %4, %5, %cst {dimension_numbers = #tpu.dot_dimension_numbers<[1], [0], [0], [1], [0, 0, 1, 1], [], []>} : vector<1024x72xbf16>, vector<72x128xbf16>, vector<1024x128xf32> -> vector<1024x128xf32>
    %7 = arith.addf %3, %6 : vector<1024x128xf32>
    %c0_6 = arith.constant 0 : index
    %c0_7 = arith.constant 0 : index
    %8 = vector.load %arg5[%c0_6, %c0_7] : memref<1024x128xf32, #tpu.memory_space<vmem>>, vector<1024x128xf32>
    tpu.vector_store %arg5[%c0_6, %c0_7], %7 {strides = array<i32>} : memref<1024x128xf32, #tpu.memory_space<vmem>>, vector<1024x128xf32>,
    %c0_i32_8 = arith.constant 0 : i32
    %9 = arith.cmpi eq, %arg1, %c0_i32_8 : i32
    %10 = arith.extui %9 : i1 to i32
    %c0_i32_9 = arith.constant 0 : i32
    %11 = arith.cmpi ne, %10, %c0_i32_9 : i32
    scf.if %11 {
      %c0_10 = arith.constant 0 : index
      %c0_11 = arith.constant 0 : index
      %12 = vector.load %arg5[%c0_10, %c0_11] : memref<1024x128xf32, #tpu.memory_space<vmem>>, vector<1024x128xf32>
      %13 = math.tanh %12 : vector<1024x128xf32>
      %c0_12 = arith.constant 0 : index
      %c0_13 = arith.constant 0 : index
      %14 = vector.load %arg4[%c0_12, %c0_13] : memref<1024x128xf32, #tpu.memory_space<vmem>>, vector<1024x128xf32>
      tpu.vector_store %arg4[%c0_12, %c0_13], %13 {strides = array<i32>} : memref<1024x128xf32, #tpu.memory_space<vmem>>, vector<1024x128xf32>,
    } else {
    }
    return
  }
  func.func @transform_0(%arg0: i32, %arg1: i32) -> (i32, i32) {
    %c0_i32 = arith.constant 0 : i32
    return %arg0, %arg1 : i32, i32
  }
  func.func @transform_1(%arg0: i32, %arg1: i32) -> (i32, i32) {
    %c0_i32 = arith.constant 0 : i32
    %c0_i32_0 = arith.constant 0 : i32
    return %arg1, %c0_i32 : i32, i32
  }
  func.func @transform_2(%arg0: i32, %arg1: i32) -> (i32, i32) {
    %c0_i32 = arith.constant 0 : i32
    %c0_i32_0 = arith.constant 0 : i32
    return %arg0, %c0_i32 : i32, i32
  }
}

</mosaic_0001>

<bundles_post_ra>
// kernel: tile.48
= control target key start
LH: loop header
LB: loop body
LE: loop exit
PB: predicated region body
PF: predicated region fallthrough
CT: control target
= control target key end

     0   :  { %s28_s0 = inlined_call_operand.vmem [shape: f32[64], index: 0, kind: input, shape index: {}]   ;;  %s29_s1 = inlined_call_operand.vmem [shape: f32[16,64], index: 1, kind: output, shape index: {}]  }
   0x1   :  { %v4_v0 = vld [vmem:[%s28_s0] ss:$0 sm:$0xff] }
   0x2   :  { %5 = vst [vmem:[%s29_s1] sm:$0xff] %v4_v0  ;;  %8 = vst [vmem:[%s29_s1 + $0x8] sm:$0xff] %v4_v0 }

// kernel: tile.58
= control target key start
LH: loop header
LB: loop body
LE: loop exit
PB: predicated region body
PF: predicated region fallthrough
CT: control target
= control target key end

     0   :  { %s22_s0 = inlined_call_operand.vmem [shape: f32[32], index: 0, kind: input, shape index: {}]   ;;  %s23_s1 = inlined_call_operand.vmem [shape: f32[4,32], index: 1, kind: output, shape index: {}]  }
   0x1   :  { %v4_v0 = vld [vmem:[%s22_s0] ss:$0 sm:$0xff] }
   0x2   :  { %5 = vst [vmem:[%s23_s1] sm:$0xf] %v4_v0 }

// kernel: _lambda_.10
= control target key start
LH: loop header
LB: loop body
LE: loop exit
PB: predicated region body
PF: predicated region fallthrough
CT: control target
= control target key end

     0   :  { %v32_v0 = vlaneseq  ;;  %s346_s1 = inlined_call_operand.vmem [shape: f32[1,1024], index: 1, kind: input, shape index: {}]   ;;  %s347_s2 = inlined_call_operand.vmem [shape: f32[1,1024], index: 2, kind: input, shape index: {}]   ;;  %s348_s0 = inlined_call_operand.vmem [shape: f32[16,1024], index: 0, kind: input, shape index: {}]   ;;  %s349_s3 = inlined_call_operand.vmem [shape: bf16[16,1024], index: 3, kind: output, shape index: {}]  }
   0x1   :  { %v30_v2 = vld [vmem:[%s346_s1] sm:$0xff]  ;;  %v15_v9 = vld [vmem:[%s348_s0 + $0x8] sm:$0xff]  ;;  %v16_v18 = vld [vmem:[%s348_s0 + $0x10] sm:$0xff] }
   0x2   :  { %v258_v1 = vshrl.u32 %v32_v0, 7  ;;  %v88_v3 = vld [vmem:[%s347_s2] sm:$0xff]  ;;  %v17_v19 = vld [vmem:[%s348_s0 + $0x18] sm:$0xff]  ;;  %v19_v25 = vld [vmem:[%s348_s0 + $0x28] sm:$0xff] }
   0x3   :  { %v14_v8 = vld [vmem:[%s348_s0] sm:$0xff]  ;;  %v20_v38 = vld [vmem:[%s348_s0 + $0x30] sm:$0xff]  ;;  %v21_v39 = vld [vmem:[%s348_s0 + $0x38] sm:$0xff] }
   0x4   :  { %v34_v4 = vsub.s32 0, %v258_v1  ;;  %v38_v5 = vsub.s32 1, %v258_v1  ;;  %v42_v6 = vsub.s32 2, %v258_v1  ;;  %v46_v7 = vsub.s32 3, %v258_v1  ;;  %v18_v24 = vld [vmem:[%s348_s0 + $0x20] sm:$0xff]  ;;  %v23_v49 = vld [vmem:[%s348_s0 + $0x48] sm:$0xff] }
   0x5   :  { %v50_v10 = vsub.s32 4, %v258_v1  ;;  %v54_v11 = vsub.s32 5, %v258_v1  ;;  %v58_v12 = vsub.s32 6, %v258_v1  ;;  %v62_v13 = vsub.s32 7, %v258_v1  ;;  %v22_v48 = vld [vmem:[%s348_s0 + $0x40] sm:$0xff]  ;;  %v24_v54 = vld [vmem:[%s348_s0 + $0x50] sm:$0xff] }
   0x6   :  { %v35_v14 = vrot.slane %v30_v2, %v34_v4  ;;  %v39_v15 = vrot.slane %v30_v2, %v38_v5  ;;  %v93_v16 = vrot.slane %v88_v3, %v34_v4  ;;  %v97_v17 = vrot.slane %v88_v3, %v38_v5  ;;  %v25_v55 = vld [vmem:[%s348_s0 + $0x58] sm:$0xff]  ;;  %v26_v60 = vld [vmem:[%s348_s0 + $0x60] sm:$0xff]  ;;  %v27_v1 = vld [vmem:[%s348_s0 + $0x68] sm:$0xff] }
   0x7   :  { %v43_v20 = vrot.slane %v30_v2, %v42_v6  ;;  %v47_v21 = vrot.slane %v30_v2, %v46_v7  ;;  %v101_v22 = vrot.slane %v88_v3, %v42_v6  ;;  %v105_v23 = vrot.slane %v88_v3, %v46_v7 }
   0x8   :  { %v72_v26 = vmul.f32 %v35_v14, %v14_v8  ;;  %v73_v27 = vmul.f32 %v39_v15, %v15_v9  ;;  %v51_v28 = vrot.slane %v30_v2, %v50_v10  ;;  %v55_v29 = vrot.slane %v30_v2, %v54_v11 }
   0x9   :  { %v74_v30 = vmul.f32 %v43_v20, %v16_v18  ;;  %v75_v31 = vmul.f32 %v47_v21, %v17_v19  ;;  %v109_v32 = vrot.slane %v88_v3, %v50_v10  ;;  %v113_v33 = vrot.slane %v88_v3, %v54_v11  ;;  %v28_v10 = vld [vmem:[%s348_s0 + $0x70] sm:$0xff] }
   0xa   :  { %v130_v34 = vadd.f32 %v93_v16, %v72_v26  ;;  %v131_v35 = vadd.f32 %v97_v17, %v73_v27  ;;  %v76_v36 = vmul.f32 %v51_v28, %v18_v24  ;;  %v77_v37 = vmul.f32 %v55_v29, %v19_v25 }
   0xb   :  { %v132_v40 = vadd.f32 %v101_v22, %v74_v30  ;;  %v133_v41 = vadd.f32 %v105_v23, %v75_v31  ;;  %v59_v42 = vrot.slane %v30_v2, %v58_v12  ;;  %v63_v43 = vrot.slane %v30_v2, %v62_v13 }
   0xc   :  { %v146_v44 = vmax.f32 %v130_v34, 0.0  ;;  %v147_v45 = vmax.f32 %v131_v35, 0.0  ;;  %v134_v46 = vadd.f32 %v109_v32, %v76_v36  ;;  %v135_v47 = vadd.f32 %v113_v33, %v77_v37 }
   0xd   :  { %v148_v50 = vmax.f32 %v132_v40, 0.0  ;;  %v149_v51 = vmax.f32 %v133_v41, 0.0  ;;  %v78_v52 = vmul.f32 %v59_v42, %v20_v38  ;;  %v79_v53 = vmul.f32 %v63_v43, %v21_v39 }
   0xe   :  { %v230_v56 = vpack.c.bf16 %v147_v45, %v146_v44  ;;  %v150_v57 = vmax.f32 %v134_v46, 0.0  ;;  %v151_v58 = vmax.f32 %v135_v47, 0.0  ;;  %v117_v59 = vrot.slane %v88_v3, %v58_v12 }
   0xf   :  { %v231_v61 = vpack.c.bf16 %v149_v51, %v148_v50  ;;  %v121_v62 = vrot.slane %v88_v3, %v62_v13  ;;  %v80_v63 = vmul.f32 %v35_v14, %v22_v48  ;;  %v81_v0 = vmul.f32 %v39_v15, %v23_v49  ;;  %v29_v15 = vld [vmem:[%s348_s0 + $0x78] sm:$0xff] }
  0x10   :  { %210 = vst [vmem:[%s349_s3] sm:$0xff] %v230_v56  ;;  %v232_v2 = vpack.c.bf16 %v151_v58, %v150_v57  ;;  %v136_v4 = vadd.f32 %v117_v59, %v78_v52  ;;  %v82_v5 = vmul.f32 %v43_v20, %v24_v54  ;;  %v83_v6 = vmul.f32 %v47_v21, %v25_v55 }
  0x11   :  { %211 = vst [vmem:[%s349_s3 + $0x8] sm:$0xff] %v231_v61  ;;  %v137_v7 = vadd.f32 %v121_v62, %v79_v53  ;;  %v138_v3 = vadd.f32 %v93_v16, %v80_v63  ;;  %v139_v8 = vadd.f32 %v97_v17, %v81_v0  ;;  %v84_v9 = vmul.f32 %v51_v28, %v26_v60 }
  0x12   :  { %212 = vst [vmem:[%s349_s3 + $0x10] sm:$0xff] %v232_v2  ;;  %v152_v11 = vmax.f32 %v136_v4, 0.0  ;;  %v140_v12 = vadd.f32 %v101_v22, %v82_v5  ;;  %v141_v13 = vadd.f32 %v105_v23, %v83_v6  ;;  %v85_v14 = vmul.f32 %v55_v29, %v27_v1 }
  0x13   :  { %v153_v18 = vmax.f32 %v137_v7, 0.0  ;;  %v154_v16 = vmax.f32 %v138_v3, 0.0  ;;  %v155_v17 = vmax.f32 %v139_v8, 0.0  ;;  %v142_v19 = vadd.f32 %v109_v32, %v84_v9 }
  0x14   :  { %v156_v20 = vmax.f32 %v140_v12, 0.0  ;;  %v157_v21 = vmax.f32 %v141_v13, 0.0  ;;  %v143_v24 = vadd.f32 %v113_v33, %v85_v14  ;;  %v86_v25 = vmul.f32 %v59_v42, %v28_v10 }
  0x15   :  { %v233_v26 = vpack.c.bf16 %v153_v18, %v152_v11  ;;  %v234_v27 = vpack.c.bf16 %v155_v17, %v154_v16  ;;  %v158_v28 = vmax.f32 %v142_v19, 0.0  ;;  %v87_v30 = vmul.f32 %v63_v43, %v29_v15 }
  0x16   :  { %v235_v31 = vpack.c.bf16 %v157_v21, %v156_v20  ;;  %v159_v22 = vmax.f32 %v143_v24, 0.0  ;;  %v144_v23 = vadd.f32 %v117_v59, %v86_v25 }
  0x17   :  { %213 = vst [vmem:[%s349_s3 + $0x18] sm:$0xff] %v233_v26  ;;  %214 = vst [vmem:[%s349_s3 + $0x20] sm:$0xff] %v234_v27  ;;  %v145_v29 = vadd.f32 %v121_v62, %v87_v30 }
  0x18   :  { %215 = vst [vmem:[%s349_s3 + $0x28] sm:$0xff] %v235_v31  ;;  %v236_v32 = vpack.c.bf16 %v159_v22, %v158_v28  ;;  %v160_v33 = vmax.f32 %v144_v23, 0.0 }
  0x19   :  { %v161_v34 = vmax.f32 %v145_v29, 0.0 }
  0x1a   :  { %216 = vst [vmem:[%s349_s3 + $0x30] sm:$0xff] %v236_v32 }
  0x1b   :  { %v237_v35 = vpack.c.bf16 %v161_v34, %v160_v33 }
  0x1d   :  { %217 = vst [vmem:[%s349_s3 + $0x38] sm:$0xff] %v237_v35 }

// kernel: _lambda_.9
= control target key start
LH: loop header
LB: loop body
LE: loop exit
PB: predicated region body
PF: predicated region fallthrough
CT: control target
= control target key end

     0   :  { %10 = vsyncpa [#allocation4], 0  ;;  %s672_s15 = smov [#allocation3]   ;;  %s813_s0 = inlined_call_operand.vmem [shape: bf16[16,8], index: 0, kind: input, shape index: {}]   ;;  %s814_s1 = inlined_call_operand.hbm [shape: bf16[8,1024], index: 1, kind: input, shape index: {}]   ;;  %s815_s2 = inlined_call_operand.vmem [shape: f32[16,1024], index: 2, kind: output, shape index: {0}]   ;;  %s816_s3 = inlined_call_operand.vmem [shape: f32[1,1,1024], index: 3, kind: output, shape index: {1}]   ;;  %s817_s4 = inlined_call_operand.vmem [shape: f32[1,1,1024], index: 4, kind: output, shape index: {2}]  }
   0x1   :  { %s19_s16 = sshll.u32 %s672_s15, 4  ;;  %s20_s16 = int_to_ptr.vmem [resolvable:$true] %s19_s16 }
   0x2   :  { %s658_s17 = scalar_lea.vmem %s20_s16, 512  ;;  %p663_p1 = scmp.lt.s32.totalorder %s20_s16, %s20_s16 }
   0x3   :  { %p659_p0 = scmp.ne.s32.totalorder %s20_s16, %s658_s17  ;;  %p664_p2 = scmp.lt.s32.totalorder %s658_s17, %s658_s17 }
   0x5   :  { %p665_p3 = por %p664_p2, %p663_p1 }
   0x7   :  { %p666_p4 = pnand %p665_p3, %p659_p0 }
   0x9   :  { %669 = shalt.err (!%p666_p4)
}
   0xa   :  { %22 = dma.hbm_to_vmem [thread:$0]  %s814_s1, 512, %s20_s16, [#allocation4]  }
   0xb   :  { %670 = dma.done.wait [#allocation4], 512  }
   0xc   :  { %671 = vsyncadd [#allocation4], 4294966784  ;;  %v673_v0 = vmov 0   ;;  %v65_v1 = vld [vmem:[#allocation3] sm:$0xff]  ;;  %vm98_vm0 = vcmask 1043456   ;;  %v66_v2 = vld [vmem:[#allocation3 + $0x8] sm:$0xff]  ;;  %v433_v57 = vlaneseq }
   0xd   :  { %155 = vmatprep.mubr.bf16.mxu0 %v673_v0  ;;  %198 = vmatprep.mubr.bf16.mxu1 %v673_v0  ;;  %v623_v3 = vcombine.high %v65_v1, %v65_v1  ;;  %v625_v4 = vcombine.high %v66_v2, %v66_v2  ;;  %v622_v5 = vcombine.low %v65_v1, %v65_v1  ;;  %v67_v7 = vld [vmem:[#allocation3 + $0x10] sm:$0xff]  ;;  %v68_v9 = vld [vmem:[#allocation3 + $0x18] sm:$0xff]  ;;  %v645_v13 = vld [vmem:[%s813_s0] sm:$0xff]   ;;  %vm94_vm1 = vcmask 64512  }
   0xe   :  { %v624_v6 = vcombine.low %v66_v2, %v66_v2  ;;  %v627_v8 = vcombine.high %v67_v7, %v67_v7  ;;  %v626_v10 = vcombine.low %v67_v7, %v67_v7  ;;  %v629_v14 = vcombine.high %v68_v9, %v68_v9 }
   0xf   :  { %630 = vmatprep.subr.msk.bf16.mxu0 %vm98_vm0, %v623_v3  ;;  %632 = vmatprep.subr.msk.bf16.mxu1 %vm98_vm0, %v625_v4  ;;  %v100_v11 = vsel %vm98_vm0, %v622_v5, 0  ;;  %v628_v15 = vcombine.low %v68_v9, %v68_v9  ;;  %v674_v55 = vmov 1966171168   ;;  %v434_v7 = vshrl.u32 %v433_v57, 7 }
  0x10   :  { %v106_v12 = vsel %vm98_vm0, %v624_v6, 0  ;;  %138 = vmatpush1.bf16.msra.mxu0 %v100_v11  ;;  %v112_v16 = vsel %vm98_vm0, %v626_v10, 0  ;;  %v431_v56 = vunpack.c.l.s4 %v674_v55 }
  0x11   :  { %181 = vmatpush1.bf16.msra.mxu1 %v106_v12  ;;  %634 = vmatprep.subr.msk.bf16.mxu0 %vm98_vm0, %v627_v8  ;;  %v118_v17 = vsel %vm98_vm0, %v628_v15, 0 }
  0x12   :  { %636 = vmatprep.subr.msk.bf16.mxu1 %vm98_vm0, %v629_v14  ;;  %v432_v6 = vunpack.c.0.s8 %v431_v56 }
  0x13   :  { %631 = vmatmul.mubr.msk.bf16.vlgmr.msra.gmra.mxu0 %vm94_vm1, %v645_v13 }
  0x14   :  { %633 = vmatmul.mubr.msk.bf16.vlgmr.msra.gmra.mxu1 %vm94_vm1, %v645_v13  ;;  %224 = vmatpush1.bf16.msra.mxu0 %v112_v16  ;;  %v771_v16 = vsub.s32 %v432_v6, %v434_v7 }
  0x15   :  { %267 = vmatpush1.bf16.msra.mxu1 %v118_v17  ;;  %241 = vmatprep.mubr.bf16.mxu0 %v673_v0 }
  0x16   :  { %284 = vmatprep.mubr.bf16.mxu1 %v673_v0 }
  0x1b   :  { %635 = vmatmul.mubr.msk.bf16.vlgmr.msra.gmra.mxu0 %vm94_vm1, %v645_v13 }
  0x1c   :  { %637 = vmatmul.mubr.msk.bf16.vlgmr.msra.gmra.mxu1 %vm94_vm1, %v645_v13 }
  0xd3   :  { %v157_v18 = vpop.f32.mrf.mxu0 }
  0xd4   :  { %v200_v19 = vpop.f32.mrf.mxu1  ;;  %346 = vst [vmem:[%s815_s2] sm:$0xff] %v157_v18  ;;  %v477_v22 = vmul.f32 %v157_v18, %v157_v18 }
  0xd5   :  { %348 = vst [vmem:[%s815_s2 + $0x10] sm:$0xff] %v200_v19  ;;  %v159_v20 = vpop.f32.mrf.mxu0  ;;  %v479_v23 = vmul.f32 %v200_v19, %v200_v19 }
  0xd6   :  { %v202_v21 = vpop.f32.mrf.mxu1  ;;  %347 = vst [vmem:[%s815_s2 + $0x8] sm:$0xff] %v159_v20  ;;  %v478_v30 = vmul.f32 %v159_v20, %v159_v20 }
  0xd7   :  { %349 = vst [vmem:[%s815_s2 + $0x18] sm:$0xff] %v202_v21  ;;  %v161_v24 = vpop.f32.mrf.mxu0  ;;  %v480_v31 = vmul.f32 %v202_v21, %v202_v21 }
  0xd8   :  { %v204_v25 = vpop.f32.mrf.mxu1  ;;  %354 = vst [vmem:[%s815_s2 + $0x40] sm:$0xff] %v161_v24  ;;  %v362_v26 = vadd.f32 %v161_v24, %v157_v18  ;;  %v485_v27 = vmul.f32 %v161_v24, %v161_v24 }
  0xd9   :  { %356 = vst [vmem:[%s815_s2 + $0x50] sm:$0xff] %v204_v25  ;;  %v376_v28 = vadd.f32 %v204_v25, %v200_v19  ;;  %v487_v29 = vmul.f32 %v204_v25, %v204_v25  ;;  %v163_v32 = vpop.f32.mrf.mxu0 }
  0xda   :  { %v206_v33 = vpop.f32.mrf.mxu1  ;;  %v363_v34 = vrot.slane %v362_v26, 4  ;;  %v493_v35 = vadd.f32 %v485_v27, %v477_v22  ;;  %355 = vst [vmem:[%s815_s2 + $0x48] sm:$0xff] %v163_v32  ;;  %v369_v38 = vadd.f32 %v163_v32, %v159_v20  ;;  %v486_v39 = vmul.f32 %v163_v32, %v163_v32 }
  0xdb   :  { %v377_v36 = vrot.slane %v376_v28, 4  ;;  %v507_v37 = vadd.f32 %v487_v29, %v479_v23  ;;  %357 = vst [vmem:[%s815_s2 + $0x58] sm:$0xff] %v206_v33  ;;  %v383_v40 = vadd.f32 %v206_v33, %v202_v21  ;;  %v488_v41 = vmul.f32 %v206_v33, %v206_v33  ;;  %v243_v42 = vpop.f32.mrf.mxu0 }
  0xdc   :  { %v286_v43 = vpop.f32.mrf.mxu1  ;;  %v364_v44 = vadd.f32 %v363_v34, %v362_v26  ;;  %v494_v45 = vrot.slane %v493_v35, 4  ;;  %350 = vst [vmem:[%s815_s2 + $0x20] sm:$0xff] %v243_v42  ;;  %v370_v48 = vrot.slane %v369_v38, 4  ;;  %v500_v49 = vadd.f32 %v486_v39, %v478_v30 }
  0xdd   :  { %v378_v46 = vadd.f32 %v377_v36, %v376_v28  ;;  %v508_v47 = vrot.slane %v507_v37, 4  ;;  %352 = vst [vmem:[%s815_s2 + $0x30] sm:$0xff] %v286_v43  ;;  %v384_v50 = vrot.slane %v383_v40, 4  ;;  %v514_v51 = vadd.f32 %v488_v41, %v480_v31  ;;  %v744_v52 = vpop.f32.mrf.mxu0 }
  0xde   :  { %v746_v53 = vpop.f32.mrf.mxu1  ;;  %v365_v54 = vrot.slane %v364_v44, 2  ;;  %351 = vst [vmem:[%s815_s2 + $0x28] sm:$0xff] %v744_v52  ;;  %v495_v58 = vadd.f32 %v494_v45, %v493_v35  ;;  %v371_v61 = vadd.f32 %v370_v48, %v369_v38  ;;  %v501_v0 = vrot.slane %v500_v49, 4 }
  0xdf   :  { %353 = vst [vmem:[%s815_s2 + $0x38] sm:$0xff] %v746_v53  ;;  %v379_v59 = vrot.slane %v378_v46, 2  ;;  %v509_v60 = vadd.f32 %v508_v47, %v507_v37  ;;  %v247_v62 = vpop.f32.mrf.mxu0  ;;  %v385_v2 = vadd.f32 %v384_v50, %v383_v40  ;;  %v515_v3 = vrot.slane %v514_v51, 4 }
  0xe0   :  { %v290_v63 = vpop.f32.mrf.mxu1  ;;  %358 = vst [vmem:[%s815_s2 + $0x60] sm:$0xff] %v247_v62  ;;  %v366_v1 = vadd.f32 %v365_v54, %v364_v44  ;;  %v496_v8 = vrot.slane %v495_v58, 2  ;;  %v372_v11 = vrot.slane %v371_v61, 2  ;;  %v502_v12 = vadd.f32 %v501_v0, %v500_v49 }
  0xe1   :  { %360 = vst [vmem:[%s815_s2 + $0x70] sm:$0xff] %v290_v63  ;;  %v249_v4 = vpop.f32.mrf.mxu0  ;;  %v380_v9 = vadd.f32 %v379_v59, %v378_v46  ;;  %v510_v10 = vrot.slane %v509_v60, 2  ;;  %v386_v14 = vrot.slane %v385_v2, 2  ;;  %v516_v15 = vadd.f32 %v515_v3, %v514_v51 }
  0xe2   :  { %v762_v5 = vpop.f32.mrf.mxu1  ;;  %359 = vst [vmem:[%s815_s2 + $0x68] sm:$0xff] %v249_v4  ;;  %v367_v13 = vrot.slane %v366_v1, 1  ;;  %v497_v17 = vadd.f32 %v496_v8, %v495_v58  ;;  %v373_v20 = vadd.f32 %v372_v11, %v371_v61  ;;  %v503_v21 = vrot.slane %v502_v12, 2 }
  0xe3   :  { %361 = vst [vmem:[%s815_s2 + $0x78] sm:$0xff] %v762_v5  ;;  %v381_v18 = vrot.slane %v380_v9, 1  ;;  %v773_v19 = vadd.f32 %v510_v10, %v509_v60  ;;  %v481_v22 = vmul.f32 %v243_v42, %v243_v42  ;;  %v390_v23 = vadd.f32 %v247_v62, %v243_v42 }
  0xe4   :  { %v489_v24 = vmul.f32 %v247_v62, %v247_v62  ;;  %v775_v25 = vadd.f32 %v367_v13, %v366_v1  ;;  %v387_v26 = vadd.f32 %v386_v14, %v385_v2  ;;  %v517_v27 = vrot.slane %v516_v15, 2 }
  0xe5   :  { %v483_v28 = vmul.f32 %v286_v43, %v286_v43  ;;  %v391_v29 = vrot.slane %v390_v23, 4  ;;  %v404_v31 = vadd.f32 %v290_v63, %v286_v43  ;;  %v491_v32 = vmul.f32 %v290_v63, %v290_v63 }
  0xe6   :  { %v521_v30 = vadd.f32 %v489_v24, %v481_v22  ;;  %v498_v33 = vrot.slane %v497_v17, 1  ;;  %v777_v34 = vadd.f32 %v381_v18, %v380_v9  ;;  %v512_v35 = vrot.slane %v773_v19, 1 }
  0xe7   :  { %v374_v36 = vrot.slane %v373_v20, 1  ;;  %v392_v37 = vadd.f32 %v391_v29, %v390_v23  ;;  %v405_v39 = vrot.slane %v404_v31, 4  ;;  %v535_v40 = vadd.f32 %v491_v32, %v483_v28 }
  0xe8   :  { %v522_v38 = vrot.slane %v521_v30, 4  ;;  %v504_v41 = vadd.f32 %v503_v21, %v502_v12  ;;  %v388_v42 = vrot.slane %v387_v26, 1  ;;  %v518_v44 = vadd.f32 %v517_v27, %v516_v15 }
  0xe9   :  { %v397_v45 = vadd.f32 %v249_v4, %v744_v52  ;;  %v393_v46 = vrot.slane %v392_v37, 2  ;;  %v406_v48 = vadd.f32 %v405_v39, %v404_v31  ;;  %v536_v43 = vrot.slane %v535_v40, 4 }
  0xea   :  { %v523_v47 = vadd.f32 %v522_v38, %v521_v30  ;;  %v781_v49 = vadd.f32 %v498_v33, %v497_v17  ;;  %v482_v50 = vmul.f32 %v744_v52, %v744_v52  ;;  %v490_v54 = vmul.f32 %v249_v4, %v249_v4 }
  0xeb   :  { %v398_v51 = vrot.slane %v397_v45, 4  ;;  %v394_v55 = vadd.f32 %v393_v46, %v392_v37  ;;  %v407_v57 = vrot.slane %v406_v48, 2  ;;  %v537_v58 = vadd.f32 %v536_v43, %v535_v40 }
  0xec   :  { %v524_v56 = vrot.slane %v523_v47, 2  ;;  %v375_v59 = vadd.f32 %v374_v36, %v373_v20  ;;  %v528_v61 = vadd.f32 %v490_v54, %v482_v50  ;;  %v411_v62 = vadd.f32 %v762_v5, %v746_v53 }
  0xed   :  { %v399_v60 = vadd.f32 %v398_v51, %v397_v45  ;;  %v505_v63 = vrot.slane %v504_v41, 1  ;;  %v389_v0 = vadd.f32 %v388_v42, %v387_v26  ;;  %v519_v1 = vrot.slane %v518_v44, 1 }
  0xee   :  { %v484_v2 = vmul.f32 %v746_v53, %v746_v53  ;;  %v529_v52 = vrot.slane %v528_v61, 4  ;;  %v412_v6 = vrot.slane %v411_v62, 4  ;;  %v492_v4 = vmul.f32 %v762_v5, %v762_v5 }
  0xef   :  { %v400_v3 = vrot.slane %v399_v60, 2  ;;  %v395_v7 = vrot.slane %v394_v55, 1  ;;  %v525_v8 = vadd.f32 %v524_v56, %v523_v47  ;;  %v408_v9 = vadd.f32 %v407_v57, %v406_v48 }
  0xf0   :  { %v538_v10 = vrot.slane %v537_v58, 2  ;;  %v530_v12 = vadd.f32 %v529_v52, %v528_v61  ;;  %v413_v13 = vadd.f32 %v412_v6, %v411_v62  ;;  %v542_v14 = vadd.f32 %v492_v4, %v484_v2 }
  0xf1   :  { %v401_v11 = vadd.f32 %v400_v3, %v399_v60  ;;  %v426_v15 = vcombine.low %v775_v25, %v375_v59  ;;  %v506_v17 = vadd.f32 %v505_v63, %v504_v41  ;;  %v427_v18 = vcombine.low %v777_v34, %v389_v0 }
  0xf2   :  { %v520_v53 = vadd.f32 %v519_v1, %v518_v44  ;;  %v531_v21 = vrot.slane %v530_v12, 2  ;;  %v414_v22 = vrot.slane %v413_v13, 2  ;;  %v543_v23 = vrot.slane %v542_v14, 4 }
  0xf3   :  { %v402_v20 = vrot.slane %v401_v11, 1  ;;  %v396_v24 = vadd.f32 %v395_v7, %v394_v55  ;;  %v526_v5 = vrot.slane %v525_v8, 1  ;;  %v409_v26 = vrot.slane %v408_v9, 1 }
  0xf4   :  { %v539_v27 = vadd.f32 %v538_v10, %v537_v58  ;;  %v532_v29 = vadd.f32 %v531_v21, %v530_v12  ;;  %v415_v30 = vadd.f32 %v414_v22, %v413_v13  ;;  %v544_v31 = vadd.f32 %v543_v23, %v542_v14 }
  0xf5   :  { %v403_v28 = vadd.f32 %v402_v20, %v401_v11  ;;  %v513_v32 = vadd.f32 %v512_v35, %v773_v19  ;;  %v436_v25 = vrot.slane %v426_v15, %v771_v16  ;;  %v557_v33 = vcombine.low %v781_v49, %v506_v17 }
  0xf6   :  { %v533_v36 = vrot.slane %v532_v29, 1  ;;  %v416_v37 = vrot.slane %v415_v30, 1  ;;  %v545_v38 = vrot.slane %v544_v31, 2  ;;  %v443_v39 = vrot.slane %v427_v18, %v771_v16 }
  0xf7   :  { %v428_v34 = vcombine.low %v396_v24, %v403_v28  ;;  %v558_v40 = vcombine.low %v513_v32, %v520_v53  ;;  %v527_v41 = vadd.f32 %v526_v5, %v525_v8  ;;  %v410_v42 = vadd.f32 %v409_v26, %v408_v9 }
  0xf8   :  { %v540_v44 = vrot.slane %v539_v27, 1  ;;  %v534_v45 = vadd.f32 %v533_v36, %v532_v29  ;;  %v417_v46 = vadd.f32 %v416_v37, %v415_v30  ;;  %v546_v47 = vadd.f32 %v545_v38, %v544_v31 }
  0xf9   :  { %v450_v48 = vrot.slane %v428_v34, %v771_v16  ;;  %v567_v49 = vrot.slane %v557_v33, %v771_v16  ;;  %v458_v50 = vcombine.low %v436_v25, %v443_v39  ;;  %v574_v51 = vrot.slane %v558_v40, %v771_v16 }
  0xfa   :  { %v559_v19 = vcombine.low %v527_v41, %v534_v45  ;;  %v429_v35 = vcombine.low %v410_v42, %v417_v46  ;;  %v547_v43 = vrot.slane %v546_v47, 1  ;;  %v541_v54 = vadd.f32 %v540_v44, %v539_v27 }
  0xfb   :  { %v466_v60 = vrot.slane %v458_v50, %v771_v16  ;;  %v589_v61 = vcombine.low %v567_v49, %v574_v51 }
  0xfc   :  { %v457_v55 = vrot.slane %v429_v35, %v771_v16  ;;  %v548_v56 = vadd.f32 %v547_v43, %v546_v47  ;;  %v581_v57 = vrot.slane %v559_v19, %v771_v16 }
  0xfd   :  { %v597_v2 = vrot.slane %v589_v61, %v771_v16 }
  0xfe   :  { %v459_v58 = vcombine.low %v450_v48, %v457_v55  ;;  %v560_v59 = vcombine.low %v541_v54, %v548_v56 }
 0x100   :  { %v473_v62 = vrot.slane %v459_v58, %v771_v16  ;;  %v588_v63 = vrot.slane %v560_v59, %v771_v16 }
 0x102   :  { %v474_v0 = vcombine.low %v466_v60, %v473_v62  ;;  %v590_v1 = vcombine.low %v581_v57, %v588_v63 }
 0x104   :  { %476 = vst [vmem:[%s816_s3] sm:$0xff] %v474_v0  ;;  %v604_v3 = vrot.slane %v590_v1, %v771_v16 }
 0x106   :  { %v605_v52 = vcombine.low %v597_v2, %v604_v3 }
 0x108   :  { %607 = vst [vmem:[%s817_s4] sm:$0xff] %v605_v52 }
 0x109   :  { %620 = vsyncpa [#allocation4], 1 }

// kernel: _lambda_.11
= control target key start
LH: loop header
LB: loop body
LE: loop exit
PB: predicated region body
PF: predicated region fallthrough
CT: control target
= control target key end

     0   :  { %10 = vsyncpa [#allocation4], 0  ;;  %s798_s15 = smov [#allocation3]   ;;  %s877_s0 = inlined_call_operand.vmem [shape: bf16[32,576], index: 0, kind: input, shape index: {}]   ;;  %s878_s1 = inlined_call_operand.hbm [shape: bf16[576,128], index: 1, kind: input, shape index: {}]   ;;  %s879_s2 = inlined_call_operand.vmem [shape: f32[32,128], index: 2, kind: output, shape index: {0}]   ;;  %s880_s3 = inlined_call_operand.vmem [shape: f32[1,1,128], index: 3, kind: output, shape index: {1}]   ;;  %s881_s4 = inlined_call_operand.vmem [shape: f32[1,1,128], index: 4, kind: output, shape index: {2}]  }
   0x1   :  { %s18_s16 = sshll.u32 %s798_s15, 4  ;;  %s19_s16 = int_to_ptr.vmem [resolvable:$true] %s18_s16 }
   0x2   :  { %s784_s17 = scalar_lea.vmem %s19_s16, 4608  ;;  %p789_p1 = scmp.lt.s32.totalorder %s19_s16, %s19_s16 }
   0x3   :  { %p785_p0 = scmp.ne.s32.totalorder %s19_s16, %s784_s17  ;;  %p790_p2 = scmp.lt.s32.totalorder %s784_s17, %s784_s17 }
   0x5   :  { %p791_p3 = por %p790_p2, %p789_p1 }
   0x7   :  { %p792_p4 = pnand %p791_p3, %p785_p0 }
   0x9   :  { %795 = shalt.err (!%p792_p4)
}
   0xa   :  { %s799_s18 = smov 64   ;;  %s800_s19 = smov 4  }
   0xb   :  { %24 = dma.hbm_to_vmem [thread:$0]  %s878_s1, 4608, %s19_s16, [#allocation4], %s799_s18, %s799_s18, %s800_s19  }
   0xc   :  { %796 = dma.done.wait [#allocation4], 4608  }
   0xd   :  { %797 = vsyncadd [#allocation4], 4294962688  ;;  %v726_v0 = vld [vmem:[#allocation3 + $0x78] sm:$0xff]   ;;  %v730_v4 = vld [vmem:[#allocation3 + $0x70] sm:$0xff]   ;;  %vm391_vm0 = vcmask 523264  }
   0xe   :  { %v727_v1 = vld [vmem:[#allocation3 + $0xf8] sm:$0xff]   ;;  %649 = vmatprep.subr.bf16.mxu0 %v726_v0  ;;  %v731_v5 = vld [vmem:[#allocation3 + $0xf0] sm:$0xff]   ;;  %v734_v8 = vld [vmem:[#allocation3 + $0x68] sm:$0xff]  }
   0xf   :  { %v728_v2 = vld [vmem:[#allocation3 + $0x38] sm:$0xff]   ;;  %677 = vmatprep.subr.bf16.mxu1 %v727_v1  ;;  %v732_v6 = vld [vmem:[#allocation3 + $0x30] sm:$0xff]   ;;  %v735_v9 = vld [vmem:[#allocation3 + $0xe8] sm:$0xff]  }
  0x10   :  { %v729_v3 = vld [vmem:[#allocation3 + $0xb8] sm:$0xff]   ;;  %650 = vmatpush3.bf16.msra.mxu0 %v728_v2  ;;  %v733_v7 = vld [vmem:[#allocation3 + $0xb0] sm:$0xff]   ;;  %v736_v10 = vld [vmem:[#allocation3 + $0x28] sm:$0xff]  }
  0x11   :  { %678 = vmatpush3.bf16.msra.mxu1 %v729_v3  ;;  %651 = vmatprep.subr.bf16.mxu0 %v730_v4  ;;  %v737_v11 = vld [vmem:[#allocation3 + $0xa8] sm:$0xff]   ;;  %v738_v12 = vld [vmem:[#allocation3 + $0x60] sm:$0xff]   ;;  %v742_v16 = vld [vmem:[#allocation3 + $0x58] sm:$0xff]  }
  0x12   :  { %679 = vmatprep.subr.bf16.mxu1 %v731_v5  ;;  %v739_v13 = vld [vmem:[#allocation3 + $0xe0] sm:$0xff]   ;;  %v743_v17 = vld [vmem:[#allocation3 + $0xd8] sm:$0xff]   ;;  %v746_v20 = vld [vmem:[#allocation3 + $0x50] sm:$0xff]  }
  0x13   :  { %v740_v14 = vld [vmem:[#allocation3 + $0x20] sm:$0xff]   ;;  %v744_v18 = vld [vmem:[#allocation3 + $0x18] sm:$0xff]   ;;  %v747_v21 = vld [vmem:[#allocation3 + $0xd0] sm:$0xff]  }
  0x14   :  { %652 = vmatpush3.bf16.msra.mxu0 %v732_v6  ;;  %v741_v15 = vld [vmem:[#allocation3 + $0xa0] sm:$0xff]   ;;  %v745_v19 = vld [vmem:[#allocation3 + $0x98] sm:$0xff]   ;;  %v748_v22 = vld [vmem:[#allocation3 + $0x10] sm:$0xff]  }
  0x15   :  { %680 = vmatpush3.bf16.msra.mxu1 %v733_v7  ;;  %653 = vmatprep.subr.bf16.mxu0 %v734_v8  ;;  %v749_v23 = vld [vmem:[#allocation3 + $0x90] sm:$0xff]   ;;  %v750_v24 = vld [vmem:[#allocation3 + $0x48] sm:$0xff]   ;;  %v754_v28 = vld [vmem:[#allocation3 + $0x40] sm:$0xff]  }
  0x16   :  { %681 = vmatprep.subr.bf16.mxu1 %v735_v9  ;;  %v751_v25 = vld [vmem:[#allocation3 + $0xc8] sm:$0xff]   ;;  %v755_v29 = vld [vmem:[#allocation3 + $0xc0] sm:$0xff]   ;;  %v764_v36 = vld [vmem:[#allocation3 + $0x118] sm:$0xff]  }
  0x17   :  { %v752_v26 = vld [vmem:[#allocation3 + $0x8] sm:$0xff]   ;;  %v756_v30 = vld [vmem:[#allocation3] sm:$0xff]   ;;  %v765_v37 = vld [vmem:[#allocation3 + $0x110] sm:$0xff]  }
  0x18   :  { %654 = vmatpush3.bf16.msra.mxu0 %v736_v10  ;;  %v753_v27 = vld [vmem:[#allocation3 + $0x88] sm:$0xff]   ;;  %v757_v31 = vld [vmem:[#allocation3 + $0x80] sm:$0xff]  }
  0x19   :  { %682 = vmatpush3.bf16.msra.mxu1 %v737_v11  ;;  %655 = vmatprep.subr.bf16.mxu0 %v738_v12  ;;  %v758_v32 = vld [vmem:[%s877_s0] ss:$20 sps:$4 sm:$0xff]   ;;  %v760_v33 = vld [vmem:[%s877_s0 + $0x4] ss:$20 sps:$4 sm:$0xff]   ;;  %v761_v34 = vld [vmem:[%s877_s0 + $0x8] ss:$20 sps:$4 sm:$0xff]  }
  0x1a   :  { %683 = vmatprep.subr.bf16.mxu1 %v739_v13  ;;  %v763_v35 = vld [vmem:[%s877_s0 + $0xc] ss:$20 sps:$4 sm:$0xff]   ;;  %430 = vmatprep.mubr.bf16.mxu0 %v760_v33  ;;  %v768_v39 = vld [vmem:[%s877_s0 + $0x34] ss:$20 sps:$4 sm:$0xff]   ;;  %v771_v42 = vld [vmem:[%s877_s0 + $0x30] ss:$20 sps:$4 sm:$0xff]  }
  0x1b   :  { %479 = vmatprep.mubr.bf16.mxu1 %v763_v35  ;;  %v766_v38 = vld [vmem:[%s877_s0 + $0x2c] ss:$20 sps:$4 sm:$0xff]   ;;  %v770_v40 = vld [vmem:[%s877_s0 + $0x28] ss:$20 sps:$4 sm:$0xff]   ;;  %v774_v43 = vld [vmem:[%s877_s0 + $0x10] ss:$20 sps:$4 sm:$0xff]  }
  0x1c   :  { %656 = vmatpush3.bf16.msra.mxu0 %v740_v14  ;;  %v772_v41 = vld [vmem:[#allocation3 + $0x108] sm:$0xff]   ;;  %v773_v44 = vld [vmem:[#allocation3 + $0x100] sm:$0xff]  }
  0x1d   :  { %684 = vmatpush3.bf16.msra.mxu1 %v741_v15  ;;  %657 = vmatprep.subr.bf16.mxu0 %v742_v16  ;;  %v775_v45 = vld [vmem:[%s877_s0 + $0x38] ss:$20 sps:$4 sm:$0xff]  }
  0x1e   :  { %685 = vmatprep.subr.bf16.mxu1 %v743_v17 }
  0x20   :  { %658 = vmatpush3.bf16.msra.mxu0 %v744_v18 }
  0x21   :  { %686 = vmatpush3.bf16.msra.mxu1 %v745_v19  ;;  %659 = vmatprep.subr.bf16.mxu0 %v746_v20 }
  0x22   :  { %687 = vmatprep.subr.bf16.mxu1 %v747_v21 }
  0x24   :  { %660 = vmatpush3.bf16.msra.mxu0 %v748_v22 }
  0x25   :  { %688 = vmatpush3.bf16.msra.mxu1 %v749_v23  ;;  %661 = vmatprep.subr.bf16.mxu0 %v750_v24 }
  0x26   :  { %689 = vmatprep.subr.bf16.mxu1 %v751_v25 }
  0x28   :  { %662 = vmatpush3.bf16.msra.mxu0 %v752_v26 }
  0x29   :  { %690 = vmatpush3.bf16.msra.mxu1 %v753_v27  ;;  %663 = vmatprep.subr.bf16.mxu0 %v754_v28 }
  0x2a   :  { %691 = vmatprep.subr.bf16.mxu1 %v755_v29 }
  0x2c   :  { %664 = vmatpush3.bf16.msra.mxu0 %v756_v30 }
  0x2d   :  { %692 = vmatpush3.bf16.msra.mxu1 %v757_v31  ;;  %711 = vmatprep.subr.bf16.mxu0 %v764_v36 }
  0x2f   :  { %431 = vmatmul.mubr.bf16.vlgmr.msra.gmra.mxu0 %v758_v32 }
  0x30   :  { %480 = vmatmul.mubr.bf16.vlgmr.msra.gmra.mxu1 %v761_v34  ;;  %712 = vmatpush3.bf16.msra.mxu0 %v764_v36 }
  0x31   :  { %713 = vmatprep.subr.bf16.mxu0 %v765_v37  ;;  %438 = vmatprep.mubr.bf16.mxu0 %v766_v38 }
  0x32   :  { %487 = vmatprep.mubr.bf16.mxu1 %v768_v39 }
  0x34   :  { %714 = vmatpush3.bf16.msra.mxu0 %v765_v37 }
  0x35   :  { %715 = vmatprep.subr.bf16.mxu0 %v772_v41 }
  0x37   :  { %439 = vmatmul.mubr.bf16.gmra.mxu0 %v770_v40 }
  0x38   :  { %488 = vmatmul.mubr.bf16.gmra.mxu1 %v771_v42  ;;  %719 = vmatprep.mubr.msk.bf16.mxu0 %vm391_vm0, %v774_v43 }
  0x39   :  { %716 = vmatpush3.bf16.msra.mxu0 %v772_v41 }
  0x3a   :  { %717 = vmatprep.subr.bf16.mxu0 %v773_v44 }
  0x3d   :  { %718 = vmatpush3.bf16.msra.mxu0 %v773_v44 }
  0x40   :  { %720 = vmatmul.mubr.msk.bf16.vlgmr.msra.gmra.mxu0 %vm391_vm0, %v775_v45 }
  0xef   :  { %v665_v46 = vpop.f32.mrf.mxu0 }
  0xf0   :  { %v693_v47 = vpop.f32.mrf.mxu1 }
  0xf1   :  { %v666_v48 = vpop.f32.mrf.mxu0 }
  0xf2   :  { %v694_v49 = vpop.f32.mrf.mxu1  ;;  %v667_v62 = vadd.f32 %v666_v48, %v665_v46 }
  0xf3   :  { %v668_v50 = vpop.f32.mrf.mxu0  ;;  %v695_v63 = vadd.f32 %v694_v49, %v693_v47 }
  0xf4   :  { %v696_v51 = vpop.f32.mrf.mxu1 }
  0xf5   :  { %v669_v52 = vpop.f32.mrf.mxu0  ;;  %v482_v9 = vadd.f32 %v695_v63, %v667_v62 }
  0xf6   :  { %v697_v53 = vpop.f32.mrf.mxu1  ;;  %v670_v6 = vadd.f32 %v669_v52, %v668_v50 }
  0xf7   :  { %v671_v54 = vpop.f32.mrf.mxu0  ;;  %v698_v7 = vadd.f32 %v697_v53, %v696_v51 }
  0xf8   :  { %v699_v55 = vpop.f32.mrf.mxu1 }
  0xf9   :  { %v672_v56 = vpop.f32.mrf.mxu0  ;;  %v485_v15 = vadd.f32 %v698_v7, %v670_v6 }
  0xfa   :  { %v700_v57 = vpop.f32.mrf.mxu1  ;;  %v673_v58 = vadd.f32 %v672_v56, %v671_v54 }
  0xfb   :  { %v701_v59 = vadd.f32 %v700_v57, %v699_v55  ;;  %v674_v60 = vpop.f32.mrf.mxu0 }
  0xfc   :  { %v702_v61 = vpop.f32.mrf.mxu1 }
  0xfd   :  { %v675_v0 = vpop.f32.mrf.mxu0  ;;  %v490_v4 = vadd.f32 %v701_v59, %v673_v58 }
  0xfe   :  { %v703_v1 = vpop.f32.mrf.mxu1  ;;  %v676_v2 = vadd.f32 %v675_v0, %v674_v60 }
  0xff   :  { %v704_v3 = vadd.f32 %v703_v1, %v702_v61 }
 0x100   :  { %v721_v5 = vpop.f32.mrf.mxu0 }
 0x101   :  { %v539_v8 = vadd.f32 %v721_v5, %v490_v4  ;;  %v493_v12 = vadd.f32 %v704_v3, %v676_v2 }
 0x102   :  { %v530_v10 = vpop.f32.mrf.mxu0 }
 0x103   :  { %562 = vst [vmem:[%s879_s2 + $0x10] sm:$0xff] %v539_v8  ;;  %v531_v11 = vadd.f32 %v530_v10, %v482_v9  ;;  %v576_v21 = vmul.f32 %v539_v8, %v539_v8 }
 0x104   :  { %v722_v13 = vpop.f32.mrf.mxu0 }
 0x105   :  { %560 = vst [vmem:[%s879_s2] sm:$0xff] %v531_v11  ;;  %v542_v14 = vadd.f32 %v722_v13, %v493_v12  ;;  %v574_v18 = vmul.f32 %v531_v11, %v531_v11 }
 0x106   :  { %v533_v16 = vpop.f32.mrf.mxu0 }
 0x107   :  { %563 = vst [vmem:[%s879_s2 + $0x18] sm:$0xff] %v542_v14  ;;  %v534_v17 = vadd.f32 %v533_v16, %v485_v15  ;;  %v577_v24 = vmul.f32 %v542_v14, %v542_v14 }
 0x109   :  { %561 = vst [vmem:[%s879_s2 + $0x8] sm:$0xff] %v534_v17  ;;  %v564_v19 = vadd.f32 %v534_v17, %v531_v11  ;;  %v575_v20 = vmul.f32 %v534_v17, %v534_v17 }
 0x10b   :  { %v565_v22 = vadd.f32 %v564_v19, %v539_v8  ;;  %v578_v23 = vadd.f32 %v575_v20, %v574_v18 }
 0x10d   :  { %v566_v25 = vadd.f32 %v565_v22, %v542_v14  ;;  %v579_v26 = vadd.f32 %v578_v23, %v576_v21 }
 0x10f   :  { %v567_v27 = vrot.slane %v566_v25, 4  ;;  %v580_v28 = vadd.f32 %v579_v26, %v577_v24 }
 0x111   :  { %v568_v29 = vadd.f32 %v567_v27, %v566_v25  ;;  %v581_v30 = vrot.slane %v580_v28, 4 }
 0x113   :  { %v569_v31 = vrot.slane %v568_v29, 2  ;;  %v582_v32 = vadd.f32 %v581_v30, %v580_v28 }
 0x115   :  { %v570_v33 = vadd.f32 %v569_v31, %v568_v29  ;;  %v583_v34 = vrot.slane %v582_v32, 2 }
 0x117   :  { %v571_v35 = vrot.slane %v570_v33, 1  ;;  %v584_v36 = vadd.f32 %v583_v34, %v582_v32 }
 0x119   :  { %v572_v37 = vadd.f32 %v571_v35, %v570_v33  ;;  %v585_v38 = vrot.slane %v584_v36, 1 }
 0x11b   :  { %573 = vst [vmem:[%s880_s3] sm:$0x1] %v572_v37  ;;  %v586_v39 = vadd.f32 %v585_v38, %v584_v36 }
 0x11d   :  { %587 = vst [vmem:[%s881_s4] sm:$0x1] %v586_v39 }
 0x11e   :  { %600 = vsyncpa [#allocation4], 1 }

// kernel: _lambda_.12
= control target key start
LH: loop header
LB: loop body
LE: loop exit
PB: predicated region body
PF: predicated region fallthrough
CT: control target
= control target key end

     0   :  { %s133_s0 = inlined_call_operand.vmem [shape: f32[32,128], index: 0, kind: input, shape index: {}]   ;;  %s134_s1 = inlined_call_operand.vmem [shape: f32[1,128], index: 1, kind: input, shape index: {}]   ;;  %s135_s2 = inlined_call_operand.vmem [shape: f32[1,128], index: 2, kind: input, shape index: {}]   ;;  %s136_s3 = inlined_call_operand.vmem [shape: bf16[32,128], index: 3, kind: output, shape index: {}]  }
   0x1   :  { %v14_v0 = vld [vmem:[%s133_s0] sm:$0xff]  ;;  %v15_v1 = vld [vmem:[%s133_s0 + $0x8] sm:$0xff]  ;;  %v16_v6 = vld [vmem:[%s133_s0 + $0x10] sm:$0xff] }
   0x2   :  { %v68_v2 = vld [vmem:[%s134_s1] ss:$0 sm:$0xff]  ;;  %v17_v7 = vld [vmem:[%s133_s0 + $0x18] sm:$0xff] }
   0x3   :  { %v25_v3 = vmul.f32 %v68_v2, %v14_v0  ;;  %v26_v4 = vmul.f32 %v68_v2, %v15_v1  ;;  %v69_v5 = vld [vmem:[%s135_s2] ss:$0 sm:$0xff]  ;;  %v27_v8 = vmul.f32 %v68_v2, %v16_v6  ;;  %v28_v9 = vmul.f32 %v68_v2, %v17_v7 }
   0x5   :  { %v36_v10 = vadd.f32 %v69_v5, %v25_v3  ;;  %v37_v11 = vadd.f32 %v69_v5, %v26_v4  ;;  %v38_v12 = vadd.f32 %v69_v5, %v27_v8  ;;  %v39_v13 = vadd.f32 %v69_v5, %v28_v9 }
   0x7   :  { %v40_v14 = vmax.f32 %v36_v10, 0.0  ;;  %v41_v15 = vmax.f32 %v37_v11, 0.0  ;;  %v42_v16 = vmax.f32 %v38_v12, 0.0  ;;  %v43_v17 = vmax.f32 %v39_v13, 0.0 }
   0x9   :  { %v81_v18 = vpack.c.bf16 %v41_v15, %v40_v14  ;;  %v86_v19 = vpack.c.bf16 %v43_v17, %v42_v16 }
   0xb   :  { %82 = vst [vmem:[%s136_s3] sm:$0xff] %v81_v18   ;;  %88 = vst [vmem:[%s136_s3 + $0x8] sm:$0xff] %v86_v19  }

// kernel: tile.68
= control target key start
LH: loop header
LB: loop body
LE: loop exit
PB: predicated region body
PF: predicated region fallthrough
CT: control target
= control target key end

     0   :  { %s22_s0 = inlined_call_operand.vmem [shape: f32[16], index: 0, kind: input, shape index: {}]   ;;  %s23_s1 = inlined_call_operand.vmem [shape: f32[4,16], index: 1, kind: output, shape index: {}]  }
   0x1   :  { %v4_v0 = vld [vmem:[%s22_s0] ss:$0 sm:$0xff] }
   0x2   :  { %5 = vst [vmem:[%s23_s1] sm:$0xf] %v4_v0 }

// kernel: tile.69
= control target key start
LH: loop header
LB: loop body
LE: loop exit
PB: predicated region body
PF: predicated region fallthrough
CT: control target
= control target key end

     0   :  { %vm8_vm0 = vcmask 130048   ;;  %s40_s8 = smov 16   ;;  %s41_s9 = smov 32   ;;  %vm14_vm1 = vcmask 523648   ;;  %vm20_vm2 = vcmask 392448   ;;  %vm26_vm3 = vcmask 261248   ;;  %s58_s0 = inlined_call_operand.vmem [shape: f32[4,16], index: 0, kind: input, shape index: {}]   ;;  %s59_s1 = inlined_call_operand.vmem [shape: f32[64], index: 1, kind: output, shape index: {}]  }
   0x1   :  { %v5_v0 = vld [vmem:[%s58_s0] sm:$0xf]  ;;  %s39_s0 = smov 48  }
   0x2   :  { %6 = vst [vmem:[#allocation1] sm:$0xf] %v5_v0 }
   0x9   :  { %v11_v1 = vld [vmem:[#allocation1 + $0x3] sm:$0x1]   ;;  %v23_v2 = vld [vmem:[#allocation1 + $0x1] sm:$0x1]   ;;  %v7_v3 = vld [vmem:[#allocation1] sm:$0x1]  }
   0xa   :  { %12 = vrot.lane.b32.xlu0 %v11_v1, %s39_s0  ;;  %24 = vrot.lane.b32.xlu1 %v23_v2, %s40_s8  ;;  %v17_v4 = vld [vmem:[#allocation1 + $0x2] sm:$0x1]   ;;  %9 = vst.msk [vmem:[#allocation0] sm:$0x1] %vm8_vm0, %v7_v3  }
   0xe   :  { %18 = vrot.lane.b32.xlu0 %v17_v4, %s41_s9 }
  0x7c   :  { %v13_v5 = vpop.permute.xlu0 %12   ;;  %v25_v6 = vpop.permute.xlu1 %24  }
  0x7d   :  { %15 = vst.msk [vmem:[#allocation0] sm:$0x1] %vm14_vm1, %v13_v5  }
  0x80   :  { %v19_v7 = vpop.permute.xlu0 %18  }
  0x81   :  { %21 = vst.msk [vmem:[#allocation0] sm:$0x1] %vm20_vm2, %v19_v7  }
  0x82   :  { %27 = vst.msk [vmem:[#allocation0] sm:$0x1] %vm26_vm3, %v25_v6  }
  0x89   :  { %v32_v8 = vld [vmem:[#allocation0] sm:$0x1] }
  0x8a   :  { %35 = vst [vmem:[%s59_s1] sm:$0x1] %v32_v8 }

// kernel: _lambda_.14
= control target key start
LH: loop header
LB: loop body
LE: loop exit
PB: predicated region body
PF: predicated region fallthrough
CT: control target
= control target key end

     0   :  { %s391_s0 = inlined_call_operand.vmem [shape: f32[128,128], index: 0, kind: input, shape index: {}]   ;;  %s392_s1 = inlined_call_operand.vmem [shape: f32[1,128], index: 1, kind: input, shape index: {}]   ;;  %s393_s2 = inlined_call_operand.vmem [shape: f32[1,128], index: 2, kind: input, shape index: {}]   ;;  %s394_s3 = inlined_call_operand.vmem [shape: bf16[128,128], index: 3, kind: output, shape index: {}]  }
   0x1   :  { %v14_v0 = vld [vmem:[%s391_s0] sm:$0xff]  ;;  %v15_v1 = vld [vmem:[%s391_s0 + $0x8] sm:$0xff]  ;;  %v16_v6 = vld [vmem:[%s391_s0 + $0x10] sm:$0xff] }
   0x2   :  { %v286_v2 = vld [vmem:[%s392_s1] ss:$0 sm:$0xff]  ;;  %v17_v7 = vld [vmem:[%s391_s0 + $0x18] sm:$0xff]  ;;  %v19_v11 = vld [vmem:[%s391_s0 + $0x28] sm:$0xff] }
   0x3   :  { %v37_v3 = vmul.f32 %v286_v2, %v14_v0  ;;  %v38_v4 = vmul.f32 %v286_v2, %v15_v1  ;;  %v293_v5 = vld [vmem:[%s393_s2] ss:$0 sm:$0xff]  ;;  %v39_v8 = vmul.f32 %v286_v2, %v16_v6  ;;  %v40_v9 = vmul.f32 %v286_v2, %v17_v7  ;;  %v20_v12 = vld [vmem:[%s391_s0 + $0x30] sm:$0xff]  ;;  %v21_v17 = vld [vmem:[%s391_s0 + $0x38] sm:$0xff] }
   0x4   :  { %v18_v10 = vld [vmem:[%s391_s0 + $0x20] sm:$0xff]  ;;  %v42_v16 = vmul.f32 %v286_v2, %v19_v11  ;;  %v43_v20 = vmul.f32 %v286_v2, %v20_v12  ;;  %v44_v21 = vmul.f32 %v286_v2, %v21_v17  ;;  %v23_v27 = vld [vmem:[%s391_s0 + $0x48] sm:$0xff]  ;;  %v24_v32 = vld [vmem:[%s391_s0 + $0x50] sm:$0xff] }
   0x5   :  { %v60_v13 = vadd.f32 %v293_v5, %v37_v3  ;;  %v61_v14 = vadd.f32 %v293_v5, %v38_v4  ;;  %v41_v15 = vmul.f32 %v286_v2, %v18_v10  ;;  %v62_v18 = vadd.f32 %v293_v5, %v39_v8  ;;  %v22_v22 = vld [vmem:[%s391_s0 + $0x40] sm:$0xff]  ;;  %v25_v33 = vld [vmem:[%s391_s0 + $0x58] sm:$0xff]  ;;  %v27_v39 = vld [vmem:[%s391_s0 + $0x68] sm:$0xff] }
   0x6   :  { %v63_v19 = vadd.f32 %v293_v5, %v40_v9  ;;  %v65_v26 = vadd.f32 %v293_v5, %v42_v16  ;;  %v66_v30 = vadd.f32 %v293_v5, %v43_v20  ;;  %v67_v31 = vadd.f32 %v293_v5, %v44_v21  ;;  %v26_v38 = vld [vmem:[%s391_s0 + $0x60] sm:$0xff]  ;;  %v28_v44 = vld [vmem:[%s391_s0 + $0x70] sm:$0xff]  ;;  %v29_v49 = vld [vmem:[%s391_s0 + $0x78] sm:$0xff] }
   0x7   :  { %v76_v23 = vmax.f32 %v60_v13, 0.0  ;;  %v77_v24 = vmax.f32 %v61_v14, 0.0  ;;  %v64_v25 = vadd.f32 %v293_v5, %v41_v15  ;;  %v78_v28 = vmax.f32 %v62_v18, 0.0 }
   0x8   :  { %v79_v29 = vmax.f32 %v63_v19, 0.0  ;;  %v81_v36 = vmax.f32 %v65_v26, 0.0  ;;  %v45_v37 = vmul.f32 %v286_v2, %v22_v22  ;;  %v82_v41 = vmax.f32 %v66_v30, 0.0 }
   0x9   :  { %v213_v34 = vpack.c.bf16 %v77_v24, %v76_v23  ;;  %v80_v35 = vmax.f32 %v64_v25, 0.0  ;;  %v83_v42 = vmax.f32 %v67_v31, 0.0  ;;  %v46_v43 = vmul.f32 %v286_v2, %v23_v27 }
   0xa   :  { %v218_v40 = vpack.c.bf16 %v79_v29, %v78_v28  ;;  %v68_v46 = vadd.f32 %v293_v5, %v45_v37  ;;  %v47_v47 = vmul.f32 %v286_v2, %v24_v32  ;;  %v48_v48 = vmul.f32 %v286_v2, %v25_v33 }
   0xb   :  { %214 = vst [vmem:[%s394_s3] sm:$0xff] %v213_v34   ;;  %v223_v45 = vpack.c.bf16 %v81_v36, %v80_v35  ;;  %v228_v50 = vpack.c.bf16 %v83_v42, %v82_v41  ;;  %v69_v51 = vadd.f32 %v293_v5, %v46_v43  ;;  %v49_v52 = vmul.f32 %v286_v2, %v26_v38 }
   0xc   :  { %250 = vst [vmem:[%s394_s3 + $0x8] sm:$0xff] %v218_v40   ;;  %v50_v53 = vmul.f32 %v286_v2, %v27_v39  ;;  %v84_v54 = vmax.f32 %v68_v46, 0.0  ;;  %v70_v55 = vadd.f32 %v293_v5, %v47_v47  ;;  %v71_v56 = vadd.f32 %v293_v5, %v48_v48 }
   0xd   :  { %251 = vst [vmem:[%s394_s3 + $0x10] sm:$0xff] %v223_v45   ;;  %v51_v57 = vmul.f32 %v286_v2, %v28_v44  ;;  %252 = vst [vmem:[%s394_s3 + $0x18] sm:$0xff] %v228_v50   ;;  %v85_v58 = vmax.f32 %v69_v51, 0.0  ;;  %v72_v59 = vadd.f32 %v293_v5, %v49_v52  ;;  %v52_v61 = vmul.f32 %v286_v2, %v29_v49 }
   0xe   :  { %v73_v60 = vadd.f32 %v293_v5, %v50_v53  ;;  %v86_v62 = vmax.f32 %v70_v55, 0.0  ;;  %v87_v63 = vmax.f32 %v71_v56, 0.0 }
   0xf   :  { %v74_v0 = vadd.f32 %v293_v5, %v51_v57  ;;  %v233_v1 = vpack.c.bf16 %v85_v58, %v84_v54  ;;  %v88_v3 = vmax.f32 %v72_v59, 0.0  ;;  %v75_v6 = vadd.f32 %v293_v5, %v52_v61 }
  0x10   :  { %v89_v4 = vmax.f32 %v73_v60, 0.0  ;;  %v238_v7 = vpack.c.bf16 %v87_v63, %v86_v62 }
  0x11   :  { %v90_v8 = vmax.f32 %v74_v0, 0.0  ;;  %253 = vst [vmem:[%s394_s3 + $0x20] sm:$0xff] %v233_v1   ;;  %v91_v10 = vmax.f32 %v75_v6, 0.0 }
  0x12   :  { %v243_v9 = vpack.c.bf16 %v89_v4, %v88_v3  ;;  %254 = vst [vmem:[%s394_s3 + $0x28] sm:$0xff] %v238_v7  }
  0x13   :  { %v248_v2 = vpack.c.bf16 %v91_v10, %v90_v8 }
  0x14   :  { %255 = vst [vmem:[%s394_s3 + $0x30] sm:$0xff] %v243_v9  }
  0x15   :  { %256 = vst [vmem:[%s394_s3 + $0x38] sm:$0xff] %v248_v2  }

// kernel: _lambda_.13
= control target key start
LH: loop header
LB: loop body
LE: loop exit
PB: predicated region body
PF: predicated region fallthrough
CT: control target
= control target key end

     0   :  { %vm347_vm0 = vcmask 261120   ;;  %s1152_s1 = inlined_call_operand.vmem [shape: bf16[288,128], index: 1, kind: input, shape index: {}]   ;;  %s1153_s0 = inlined_call_operand.vmem [shape: bf16[128,288], index: 0, kind: input, shape index: {}]   ;;  %s1154_s2 = inlined_call_operand.vmem [shape: f32[128,128], index: 2, kind: output, shape index: {0}]   ;;  %s1155_s3 = inlined_call_operand.vmem [shape: f32[1,1,128], index: 3, kind: output, shape index: {1}]   ;;  %s1156_s4 = inlined_call_operand.vmem [shape: f32[1,1,128], index: 4, kind: output, shape index: {2}]  }
   0x1   :  { %v865_v0 = vld [vmem:[%s1152_s1 + $0x78] sm:$0xff]   ;;  %v867_v2 = vld [vmem:[%s1152_s1 + $0x70] sm:$0xff]   ;;  %v869_v4 = vld [vmem:[%s1152_s1 + $0x68] sm:$0xff]  }
   0x2   :  { %v866_v1 = vld [vmem:[%s1152_s1 + $0x38] sm:$0xff]   ;;  %755 = vmatprep.subr.bf16.mxu0 %v865_v0  ;;  %849 = vmatprep.subr.bf16.mxu1 %v865_v0  ;;  %v868_v3 = vld [vmem:[%s1152_s1 + $0x30] sm:$0xff]   ;;  %v870_v5 = vld [vmem:[%s1152_s1 + $0x28] sm:$0xff]  }
   0x3   :  { %756 = vmatpush3.bf16.msra.mxu0 %v866_v1  ;;  %857 = vmatpush3.bf16.msra.mxu1 %v866_v1  ;;  %v871_v6 = vld [vmem:[%s1152_s1 + $0x60] sm:$0xff]   ;;  %v873_v8 = vld [vmem:[%s1152_s1 + $0x58] sm:$0xff]   ;;  %v875_v10 = vld [vmem:[%s1152_s1 + $0x50] sm:$0xff]  }
   0x4   :  { %757 = vmatprep.subr.bf16.mxu0 %v867_v2  ;;  %850 = vmatprep.subr.bf16.mxu1 %v867_v2  ;;  %v872_v7 = vld [vmem:[%s1152_s1 + $0x20] sm:$0xff]   ;;  %v874_v9 = vld [vmem:[%s1152_s1 + $0x18] sm:$0xff]   ;;  %v876_v13 = vld [vmem:[%s1152_s1 + $0x10] sm:$0xff]  }
   0x5   :  { %v883_v11 = vld [vmem:[%s1153_s0 + $0x4] ss:$12 sps:$4 sm:$0xff]   ;;  %v886_v12 = vld [vmem:[%s1153_s0 + $0x94] ss:$12 sps:$4 sm:$0xff]   ;;  %v877_v14 = vld [vmem:[%s1152_s1 + $0x48] sm:$0xff]  }
   0x6   :  { %404 = vmatprep.mubr.bf16.mxu0 %v883_v11  ;;  %452 = vmatprep.mubr.bf16.mxu1 %v886_v12  ;;  %v878_v15 = vld [vmem:[%s1152_s1 + $0x8] sm:$0xff]   ;;  %v879_v16 = vld [vmem:[%s1152_s1 + $0x40] sm:$0xff]   ;;  %v884_v20 = vld [vmem:[%s1153_s0 + $0x90] ss:$12 sps:$4 sm:$0xff]  }
   0x7   :  { %758 = vmatpush3.bf16.msra.mxu0 %v868_v3  ;;  %858 = vmatpush3.bf16.msra.mxu1 %v868_v3  ;;  %v880_v17 = vld [vmem:[%s1152_s1] sm:$0xff]   ;;  %v887_v19 = vld [vmem:[%s1152_s1 + $0x88] sm:$0xff]   ;;  %v898_v28 = vld [vmem:[%s1153_s0 + $0x30] ss:$12 sps:$4 sm:$0xff]  }
   0x8   :  { %759 = vmatprep.subr.bf16.mxu0 %v869_v4  ;;  %851 = vmatprep.subr.bf16.mxu1 %v869_v4  ;;  %v881_v18 = vld [vmem:[%s1153_s0] ss:$12 sps:$4 sm:$0xff]   ;;  %v888_v21 = vld [vmem:[%s1153_s0 + $0x1c] ss:$12 sps:$4 sm:$0xff]   ;;  %v892_v24 = vld [vmem:[%s1153_s0 + $0x18] ss:$12 sps:$4 sm:$0xff]  }
   0x9   :  { %v890_v22 = vld [vmem:[%s1153_s0 + $0xac] ss:$12 sps:$4 sm:$0xff]   ;;  %v894_v23 = vld [vmem:[%s1152_s1 + $0x80] sm:$0xff]   ;;  %v893_v25 = vld [vmem:[%s1153_s0 + $0xa8] ss:$12 sps:$4 sm:$0xff]  }
   0xa   :  { %v895_v26 = vld [vmem:[%s1153_s0 + $0x34] ss:$12 sps:$4 sm:$0xff]   ;;  %v900_v30 = vld [vmem:[%s1153_s0 + $0x4c] ss:$12 sps:$4 sm:$0xff]   ;;  %v904_v33 = vld [vmem:[%s1153_s0 + $0x50] ss:$12 sps:$4 sm:$0xff]  }
   0xb   :  { %760 = vmatpush3.bf16.msra.mxu0 %v870_v5  ;;  %859 = vmatpush3.bf16.msra.mxu1 %v870_v5  ;;  %v897_v27 = vld [vmem:[%s1153_s0 + $0x8] ss:$12 sps:$4 sm:$0xff]   ;;  %v899_v29 = vld [vmem:[%s1153_s0 + $0x20] ss:$12 sps:$4 sm:$0xff]   ;;  %v902_v31 = vld [vmem:[%s1153_s0 + $0x38] ss:$12 sps:$4 sm:$0xff]  }
   0xc   :  { %761 = vmatprep.subr.bf16.mxu0 %v871_v6  ;;  %852 = vmatprep.subr.bf16.mxu1 %v871_v6  ;;  %v903_v32 = vld [vmem:[%s1153_s0 + $0x48] ss:$12 sps:$4 sm:$0xff]   ;;  %v905_v34 = vld [vmem:[%s1153_s0 + $0x64] ss:$12 sps:$4 sm:$0xff]   ;;  %v908_v36 = vld [vmem:[%s1153_s0 + $0x60] ss:$12 sps:$4 sm:$0xff]  }
   0xd   :  { %v907_v35 = vld [vmem:[%s1153_s0 + $0x68] ss:$12 sps:$4 sm:$0xff]   ;;  %v909_v37 = vld [vmem:[%s1153_s0 + $0x80] ss:$12 sps:$4 sm:$0xff]   ;;  %v912_v39 = vld [vmem:[%s1153_s0 + $0x98] ss:$12 sps:$4 sm:$0xff]  }
   0xe   :  { %v910_v38 = vld [vmem:[%s1153_s0 + $0x7c] ss:$12 sps:$4 sm:$0xff]   ;;  %v913_v40 = vld [vmem:[%s1153_s0 + $0x78] ss:$12 sps:$4 sm:$0xff]  }
   0xf   :  { %762 = vmatpush3.bf16.msra.mxu0 %v872_v7  ;;  %860 = vmatpush3.bf16.msra.mxu1 %v872_v7  ;;  %v914_v41 = vld [vmem:[%s1153_s0 + $0xb0] ss:$12 sps:$4 sm:$0xff]  }
  0x10   :  { %763 = vmatprep.subr.bf16.mxu0 %v873_v8  ;;  %853 = vmatprep.subr.bf16.mxu1 %v873_v8 }
  0x13   :  { %764 = vmatpush3.bf16.msra.mxu0 %v874_v9  ;;  %861 = vmatpush3.bf16.msra.mxu1 %v874_v9 }
  0x14   :  { %765 = vmatprep.subr.bf16.mxu0 %v875_v10  ;;  %854 = vmatprep.subr.bf16.mxu1 %v875_v10 }
  0x17   :  { %766 = vmatpush3.bf16.msra.mxu0 %v876_v13  ;;  %862 = vmatpush3.bf16.msra.mxu1 %v876_v13 }
  0x18   :  { %767 = vmatprep.subr.bf16.mxu0 %v877_v14  ;;  %855 = vmatprep.subr.bf16.mxu1 %v877_v14 }
  0x1b   :  { %768 = vmatpush3.bf16.msra.mxu0 %v878_v15  ;;  %863 = vmatpush3.bf16.msra.mxu1 %v878_v15 }
  0x1c   :  { %769 = vmatprep.subr.bf16.mxu0 %v879_v16  ;;  %856 = vmatprep.subr.bf16.mxu1 %v879_v16 }
  0x1f   :  { %770 = vmatpush3.bf16.msra.mxu0 %v880_v17  ;;  %864 = vmatpush3.bf16.msra.mxu1 %v880_v17 }
  0x20   :  { %829 = vmatprep.subr.bf16.mxu1 %v887_v19 }
  0x22   :  { %405 = vmatmul.mubr.bf16.vlgmr.msra.gmra.mxu0 %v881_v18  ;;  %453 = vmatmul.mubr.bf16.vlgmr.msra.gmra.mxu1 %v884_v20 }
  0x23   :  { %830 = vmatpush3.bf16.msra.mxu1 %v887_v19  ;;  %412 = vmatprep.mubr.bf16.mxu0 %v888_v21 }
  0x24   :  { %460 = vmatprep.mubr.bf16.mxu1 %v890_v22  ;;  %831 = vmatprep.subr.bf16.mxu1 %v894_v23 }
  0x27   :  { %832 = vmatpush3.bf16.msra.mxu1 %v894_v23 }
  0x2a   :  { %413 = vmatmul.mubr.bf16.gmra.mxu0 %v892_v24  ;;  %461 = vmatmul.mubr.bf16.gmra.mxu1 %v893_v25 }
  0x2b   :  { %420 = vmatprep.mubr.bf16.mxu0 %v895_v26  ;;  %833 = vmatprep.mubr.msk.bf16.mxu1 %vm347_vm0, %v897_v27 }
  0x32   :  { %421 = vmatmul.mubr.bf16.gmra.mxu0 %v898_v28  ;;  %834 = vmatmul.mubr.msk.bf16.vlgmr.msra.gmra.mxu1 %vm347_vm0, %v899_v29 }
  0x33   :  { %428 = vmatprep.mubr.bf16.mxu0 %v900_v30  ;;  %837 = vmatprep.mubr.msk.bf16.mxu1 %vm347_vm0, %v902_v31 }
  0x3a   :  { %429 = vmatmul.mubr.bf16.gmra.mxu0 %v903_v32  ;;  %838 = vmatmul.mubr.msk.bf16.gmra.mxu1 %vm347_vm0, %v904_v33 }
  0x3b   :  { %436 = vmatprep.mubr.bf16.mxu0 %v905_v34  ;;  %841 = vmatprep.mubr.msk.bf16.mxu1 %vm347_vm0, %v907_v35 }
  0x42   :  { %437 = vmatmul.mubr.bf16.gmra.mxu0 %v908_v36  ;;  %842 = vmatmul.mubr.msk.bf16.gmra.mxu1 %vm347_vm0, %v909_v37 }
  0x43   :  { %444 = vmatprep.mubr.bf16.mxu0 %v910_v38  ;;  %845 = vmatprep.mubr.msk.bf16.mxu1 %vm347_vm0, %v912_v39 }
  0x4a   :  { %445 = vmatmul.mubr.bf16.gmra.mxu0 %v913_v40  ;;  %846 = vmatmul.mubr.msk.bf16.gmra.mxu1 %vm347_vm0, %v914_v41 }
  0xe2   :  { %v771_v42 = vpop.f32.mrf.mxu0  ;;  %v1074_v43 = vpop.f32.mrf.mxu1 }
  0xe4   :  { %v772_v44 = vpop.f32.mrf.mxu0  ;;  %v1076_v45 = vpop.f32.mrf.mxu1 }
  0xe5   :  { %v773_v61 = vadd.f32 %v772_v44, %v771_v42 }
  0xe6   :  { %v774_v46 = vpop.f32.mrf.mxu0  ;;  %v1078_v47 = vpop.f32.mrf.mxu1 }
  0xe8   :  { %v775_v48 = vpop.f32.mrf.mxu0  ;;  %v1080_v49 = vpop.f32.mrf.mxu1 }
  0xe9   :  { %v776_v5 = vadd.f32 %v775_v48, %v774_v46 }
  0xea   :  { %v777_v50 = vpop.f32.mrf.mxu0  ;;  %v1082_v51 = vpop.f32.mrf.mxu1 }
  0xec   :  { %v778_v52 = vpop.f32.mrf.mxu0  ;;  %v1084_v53 = vpop.f32.mrf.mxu1 }
  0xed   :  { %v779_v58 = vadd.f32 %v778_v52, %v777_v50 }
  0xee   :  { %v780_v54 = vpop.f32.mrf.mxu0  ;;  %v1086_v55 = vpop.f32.mrf.mxu1 }
  0xf0   :  { %v781_v56 = vpop.f32.mrf.mxu0  ;;  %v1088_v57 = vpop.f32.mrf.mxu1 }
  0xf1   :  { %v782_v1 = vadd.f32 %v781_v56, %v780_v54 }
  0xf2   :  { %v783_v59 = vpop.f32.mrf.mxu0  ;;  %v835_v60 = vpop.f32.mrf.mxu1 }
  0xf3   :  { %v512_v62 = vadd.f32 %v835_v60, %v779_v58 }
  0xf4   :  { %v784_v63 = vpop.f32.mrf.mxu0  ;;  %v503_v0 = vpop.f32.mrf.mxu1 }
  0xf5   :  { %619 = vst [vmem:[%s1154_s2 + $0x10] sm:$0xff] %v512_v62  ;;  %v504_v2 = vadd.f32 %v773_v61, %v503_v0  ;;  %v785_v12 = vadd.f32 %v784_v63, %v783_v59  ;;  %v657_v16 = vmul.f32 %v512_v62, %v512_v62 }
  0xf6   :  { %v786_v3 = vpop.f32.mrf.mxu0  ;;  %v836_v4 = vpop.f32.mrf.mxu1 }
  0xf7   :  { %617 = vst [vmem:[%s1154_s2] sm:$0xff] %v504_v2  ;;  %v515_v6 = vadd.f32 %v836_v4, %v782_v1  ;;  %v655_v13 = vmul.f32 %v504_v2, %v504_v2 }
  0xf8   :  { %v787_v7 = vpop.f32.mrf.mxu0  ;;  %v506_v8 = vpop.f32.mrf.mxu1 }
  0xf9   :  { %620 = vst [vmem:[%s1154_s2 + $0x18] sm:$0xff] %v515_v6  ;;  %v507_v9 = vadd.f32 %v776_v5, %v506_v8  ;;  %v658_v25 = vmul.f32 %v515_v6, %v515_v6  ;;  %v788_v29 = vadd.f32 %v787_v7, %v786_v3  ;;  %v809_v7 = vadd.f32 %v1076_v45, %v1074_v43 }
  0xfa   :  { %v789_v10 = vpop.f32.mrf.mxu0  ;;  %v839_v11 = vpop.f32.mrf.mxu1 }
  0xfb   :  { %618 = vst [vmem:[%s1154_s2 + $0x8] sm:$0xff] %v507_v9  ;;  %v633_v14 = vadd.f32 %v507_v9, %v504_v2  ;;  %v656_v15 = vmul.f32 %v507_v9, %v507_v9 }
  0xfc   :  { %v790_v17 = vpop.f32.mrf.mxu0  ;;  %v519_v18 = vpop.f32.mrf.mxu1 }
  0xfd   :  { %v634_v19 = vadd.f32 %v633_v14, %v512_v62  ;;  %v671_v20 = vadd.f32 %v656_v15, %v655_v13  ;;  %v791_v21 = vadd.f32 %v790_v17, %v789_v10  ;;  %v520_v22 = vadd.f32 %v785_v12, %v519_v18 }
  0xfe   :  { %v792_v23 = vpop.f32.mrf.mxu0  ;;  %v840_v24 = vpop.f32.mrf.mxu1  ;;  %v815_v62 = vadd.f32 %v1084_v53, %v1082_v51  ;;  %v818_v51 = vadd.f32 %v1088_v57, %v1086_v55  ;;  %v812_v55 = vadd.f32 %v1080_v49, %v1078_v47 }
  0xff   :  { %v672_v26 = vadd.f32 %v671_v20, %v657_v16  ;;  %v528_v27 = vadd.f32 %v839_v11, %v791_v21  ;;  %621 = vst [vmem:[%s1154_s2 + $0x20] sm:$0xff] %v520_v22  ;;  %v635_v28 = vadd.f32 %v634_v19, %v515_v6  ;;  %v659_v33 = vmul.f32 %v520_v22, %v520_v22 }
 0x100   :  { %v793_v30 = vpop.f32.mrf.mxu0  ;;  %v522_v31 = vpop.f32.mrf.mxu1 }
 0x101   :  { %623 = vst [vmem:[%s1154_s2 + $0x30] sm:$0xff] %v528_v27  ;;  %v636_v32 = vadd.f32 %v635_v28, %v520_v22  ;;  %v673_v34 = vadd.f32 %v672_v26, %v658_v25  ;;  %v794_v35 = vadd.f32 %v793_v30, %v792_v23  ;;  %v523_v36 = vadd.f32 %v788_v29, %v522_v31 }
 0x102   :  { %v795_v37 = vpop.f32.mrf.mxu0  ;;  %v843_v38 = vpop.f32.mrf.mxu1  ;;  %v661_v56 = vmul.f32 %v528_v27, %v528_v27 }
 0x103   :  { %v674_v39 = vadd.f32 %v673_v34, %v659_v33  ;;  %v531_v40 = vadd.f32 %v840_v24, %v794_v35  ;;  %622 = vst [vmem:[%s1154_s2 + $0x28] sm:$0xff] %v523_v36  ;;  %v637_v41 = vadd.f32 %v636_v32, %v523_v36  ;;  %v660_v42 = vmul.f32 %v523_v36, %v523_v36 }
 0x104   :  { %v796_v44 = vpop.f32.mrf.mxu0  ;;  %v535_v46 = vpop.f32.mrf.mxu1 }
 0x105   :  { %624 = vst [vmem:[%s1154_s2 + $0x38] sm:$0xff] %v531_v40  ;;  %v797_v48 = vadd.f32 %v796_v44, %v795_v37  ;;  %v675_v50 = vadd.f32 %v674_v39, %v660_v42  ;;  %v638_v58 = vadd.f32 %v637_v41, %v528_v27  ;;  %v662_v3 = vmul.f32 %v531_v40, %v531_v40 }
 0x106   :  { %v798_v52 = vpop.f32.mrf.mxu0  ;;  %v844_v54 = vpop.f32.mrf.mxu1 }
 0x107   :  { %v536_v59 = vadd.f32 %v797_v48, %v535_v46  ;;  %v676_v63 = vadd.f32 %v675_v50, %v661_v56  ;;  %v639_v4 = vadd.f32 %v638_v58, %v531_v40 }
 0x108   :  { %v799_v60 = vpop.f32.mrf.mxu0  ;;  %v538_v61 = vpop.f32.mrf.mxu1 }
 0x109   :  { %625 = vst [vmem:[%s1154_s2 + $0x40] sm:$0xff] %v536_v59  ;;  %v800_v0 = vadd.f32 %v799_v60, %v798_v52  ;;  %v663_v53 = vmul.f32 %v536_v59, %v536_v59  ;;  %v677_v10 = vadd.f32 %v676_v63, %v662_v3  ;;  %v640_v43 = vadd.f32 %v639_v4, %v536_v59 }
 0x10a   :  { %v801_v1 = vpop.f32.mrf.mxu0  ;;  %v847_v2 = vpop.f32.mrf.mxu1 }
 0x10b   :  { %v539_v5 = vadd.f32 %v800_v0, %v538_v61  ;;  %v560_v6 = vadd.f32 %v847_v2, %v815_v62  ;;  %v678_v18 = vadd.f32 %v677_v10, %v663_v53 }
 0x10c   :  { %v802_v8 = vpop.f32.mrf.mxu0  ;;  %v551_v9 = vpop.f32.mrf.mxu1 }
 0x10d   :  { %626 = vst [vmem:[%s1154_s2 + $0x48] sm:$0xff] %v539_v5  ;;  %631 = vst [vmem:[%s1154_s2 + $0x70] sm:$0xff] %v560_v6  ;;  %v803_v11 = vadd.f32 %v802_v8, %v801_v1  ;;  %v552_v12 = vadd.f32 %v809_v7, %v551_v9  ;;  %v664_v45 = vmul.f32 %v539_v5, %v539_v5 }
 0x10e   :  { %v804_v13 = vpop.f32.mrf.mxu0  ;;  %v848_v14 = vpop.f32.mrf.mxu1  ;;  %v641_v19 = vadd.f32 %v640_v43, %v539_v5  ;;  %v669_v33 = vmul.f32 %v560_v6, %v560_v6 }
 0x10f   :  { %v544_v15 = vadd.f32 %v843_v38, %v803_v11  ;;  %v563_v16 = vadd.f32 %v848_v14, %v818_v51  ;;  %629 = vst [vmem:[%s1154_s2 + $0x60] sm:$0xff] %v552_v12  ;;  %v679_v47 = vadd.f32 %v678_v18, %v664_v45  ;;  %v667_v27 = vmul.f32 %v552_v12, %v552_v12 }
 0x110   :  { %v805_v57 = vpop.f32.mrf.mxu0  ;;  %v554_v17 = vpop.f32.mrf.mxu1 }
 0x111   :  { %627 = vst [vmem:[%s1154_s2 + $0x50] sm:$0xff] %v544_v15  ;;  %v665_v20 = vmul.f32 %v544_v15, %v544_v15  ;;  %632 = vst [vmem:[%s1154_s2 + $0x78] sm:$0xff] %v563_v16  ;;  %v806_v21 = vadd.f32 %v805_v57, %v804_v13  ;;  %v555_v22 = vadd.f32 %v812_v55, %v554_v17 }
 0x112   :  { %v642_v49 = vadd.f32 %v641_v19, %v544_v15  ;;  %v670_v36 = vmul.f32 %v563_v16, %v563_v16 }
 0x113   :  { %v547_v23 = vadd.f32 %v844_v54, %v806_v21  ;;  %630 = vst [vmem:[%s1154_s2 + $0x68] sm:$0xff] %v555_v22  ;;  %v680_v24 = vadd.f32 %v679_v47, %v665_v20  ;;  %v668_v31 = vmul.f32 %v555_v22, %v555_v22 }
 0x115   :  { %628 = vst [vmem:[%s1154_s2 + $0x58] sm:$0xff] %v547_v23  ;;  %v643_v25 = vadd.f32 %v642_v49, %v547_v23  ;;  %v666_v26 = vmul.f32 %v547_v23, %v547_v23 }
 0x117   :  { %v681_v28 = vadd.f32 %v680_v24, %v666_v26  ;;  %v644_v29 = vadd.f32 %v643_v25, %v552_v12 }
 0x119   :  { %v645_v30 = vadd.f32 %v644_v29, %v555_v22  ;;  %v682_v32 = vadd.f32 %v681_v28, %v667_v27 }
 0x11b   :  { %v646_v34 = vadd.f32 %v645_v30, %v560_v6  ;;  %v683_v35 = vadd.f32 %v682_v32, %v668_v31 }
 0x11d   :  { %v647_v37 = vadd.f32 %v646_v34, %v563_v16  ;;  %v684_v38 = vadd.f32 %v683_v35, %v669_v33 }
 0x11f   :  { %v648_v39 = vrot.slane %v647_v37, 4  ;;  %v685_v40 = vadd.f32 %v684_v38, %v670_v36 }
 0x121   :  { %v649_v41 = vadd.f32 %v648_v39, %v647_v37  ;;  %v686_v42 = vrot.slane %v685_v40, 4 }
 0x123   :  { %v650_v44 = vrot.slane %v649_v41, 2  ;;  %v687_v46 = vadd.f32 %v686_v42, %v685_v40 }
 0x125   :  { %v651_v48 = vadd.f32 %v650_v44, %v649_v41  ;;  %v688_v50 = vrot.slane %v687_v46, 2 }
 0x127   :  { %v652_v52 = vrot.slane %v651_v48, 1  ;;  %v689_v54 = vadd.f32 %v688_v50, %v687_v46 }
 0x129   :  { %v653_v56 = vadd.f32 %v652_v52, %v651_v48  ;;  %v690_v58 = vrot.slane %v689_v54, 1 }
 0x12b   :  { %654 = vst [vmem:[%s1155_s3] sm:$0x1] %v653_v56  ;;  %v691_v59 = vadd.f32 %v690_v58, %v689_v54 }
 0x12d   :  { %692 = vst [vmem:[%s1156_s4] sm:$0x1] %v691_v59 }

// kernel: tile.78
= control target key start
LH: loop header
LB: loop body
LE: loop exit
PB: predicated region body
PF: predicated region fallthrough
CT: control target
= control target key end

     0   :  { %s22_s0 = inlined_call_operand.vmem [shape: f32[8], index: 0, kind: input, shape index: {}]   ;;  %s23_s1 = inlined_call_operand.vmem [shape: f32[4,8], index: 1, kind: output, shape index: {}]  }
   0x1   :  { %v4_v0 = vld [vmem:[%s22_s0] ss:$0 sm:$0xff] }
   0x2   :  { %5 = vst [vmem:[%s23_s1] sm:$0xf] %v4_v0 }

// kernel: tile.79
= control target key start
LH: loop header
LB: loop body
LE: loop exit
PB: predicated region body
PF: predicated region fallthrough
CT: control target
= control target key end

     0   :  { %vm8_vm0 = vcmask 64512   ;;  %s40_s8 = smov 8   ;;  %s41_s9 = smov 16   ;;  %vm14_vm1 = vcmask 261312   ;;  %vm20_vm2 = vcmask 195712   ;;  %vm26_vm3 = vcmask 130112   ;;  %s58_s0 = inlined_call_operand.vmem [shape: f32[4,8], index: 0, kind: input, shape index: {}]   ;;  %s59_s1 = inlined_call_operand.vmem [shape: f32[32], index: 1, kind: output, shape index: {}]  }
   0x1   :  { %v5_v0 = vld [vmem:[%s58_s0] sm:$0xf]  ;;  %s39_s0 = smov 24  }
   0x2   :  { %6 = vst [vmem:[#allocation1] sm:$0xf] %v5_v0 }
   0x9   :  { %v11_v1 = vld [vmem:[#allocation1 + $0x3] sm:$0x1]   ;;  %v23_v2 = vld [vmem:[#allocation1 + $0x1] sm:$0x1]   ;;  %v7_v3 = vld [vmem:[#allocation1] sm:$0x1]  }
   0xa   :  { %12 = vrot.lane.b32.xlu0 %v11_v1, %s39_s0  ;;  %24 = vrot.lane.b32.xlu1 %v23_v2, %s40_s8  ;;  %v17_v4 = vld [vmem:[#allocation1 + $0x2] sm:$0x1]   ;;  %9 = vst.msk [vmem:[#allocation0] sm:$0x1] %vm8_vm0, %v7_v3  }
   0xe   :  { %18 = vrot.lane.b32.xlu0 %v17_v4, %s41_s9 }
  0x7c   :  { %v13_v5 = vpop.permute.xlu0 %12   ;;  %v25_v6 = vpop.permute.xlu1 %24  }
  0x7d   :  { %15 = vst.msk [vmem:[#allocation0] sm:$0x1] %vm14_vm1, %v13_v5  }
  0x80   :  { %v19_v7 = vpop.permute.xlu0 %18  }
  0x81   :  { %21 = vst.msk [vmem:[#allocation0] sm:$0x1] %vm20_vm2, %v19_v7  }
  0x82   :  { %27 = vst.msk [vmem:[#allocation0] sm:$0x1] %vm26_vm3, %v25_v6  }
  0x89   :  { %v32_v8 = vld [vmem:[#allocation0] sm:$0x1] }
  0x8a   :  { %35 = vst [vmem:[%s59_s1] sm:$0x1] %v32_v8 }

// kernel: _lambda_.16
= control target key start
LH: loop header
LB: loop body
LE: loop exit
PB: predicated region body
PF: predicated region fallthrough
CT: control target
= control target key end

     0   :  { %s1375_s0 = inlined_call_operand.vmem [shape: f32[512,128], index: 0, kind: input, shape index: {}]   ;;  %s1376_s1 = inlined_call_operand.vmem [shape: f32[1,128], index: 1, kind: input, shape index: {}]   ;;  %s1377_s2 = inlined_call_operand.vmem [shape: f32[1,128], index: 2, kind: input, shape index: {}]   ;;  %s1378_s3 = inlined_call_operand.vmem [shape: bf16[512,128], index: 3, kind: output, shape index: {}]  }
   0x1   :  { %v14_v0 = vld [vmem:[%s1375_s0] sm:$0xff]  ;;  %v15_v1 = vld [vmem:[%s1375_s0 + $0x8] sm:$0xff]  ;;  %v16_v6 = vld [vmem:[%s1375_s0 + $0x10] sm:$0xff] }
   0x2   :  { %v958_v2 = vld [vmem:[%s1376_s1] ss:$0 sm:$0xff]  ;;  %v17_v7 = vld [vmem:[%s1375_s0 + $0x18] sm:$0xff]  ;;  %v19_v11 = vld [vmem:[%s1375_s0 + $0x28] sm:$0xff] }
   0x3   :  { %v85_v3 = vmul.f32 %v958_v2, %v14_v0  ;;  %v86_v4 = vmul.f32 %v958_v2, %v15_v1  ;;  %v965_v5 = vld [vmem:[%s1377_s2] ss:$0 sm:$0xff]  ;;  %v87_v8 = vmul.f32 %v958_v2, %v16_v6  ;;  %v88_v9 = vmul.f32 %v958_v2, %v17_v7  ;;  %v20_v12 = vld [vmem:[%s1375_s0 + $0x30] sm:$0xff]  ;;  %v21_v17 = vld [vmem:[%s1375_s0 + $0x38] sm:$0xff] }
   0x4   :  { %v18_v10 = vld [vmem:[%s1375_s0 + $0x20] sm:$0xff]  ;;  %v90_v16 = vmul.f32 %v958_v2, %v19_v11  ;;  %v91_v20 = vmul.f32 %v958_v2, %v20_v12  ;;  %v92_v21 = vmul.f32 %v958_v2, %v21_v17  ;;  %v23_v27 = vld [vmem:[%s1375_s0 + $0x48] sm:$0xff]  ;;  %v24_v32 = vld [vmem:[%s1375_s0 + $0x50] sm:$0xff] }
   0x5   :  { %v156_v13 = vadd.f32 %v965_v5, %v85_v3  ;;  %v157_v14 = vadd.f32 %v965_v5, %v86_v4  ;;  %v89_v15 = vmul.f32 %v958_v2, %v18_v10  ;;  %v158_v18 = vadd.f32 %v965_v5, %v87_v8  ;;  %v22_v22 = vld [vmem:[%s1375_s0 + $0x40] sm:$0xff]  ;;  %v25_v33 = vld [vmem:[%s1375_s0 + $0x58] sm:$0xff]  ;;  %v27_v39 = vld [vmem:[%s1375_s0 + $0x68] sm:$0xff] }
   0x6   :  { %v159_v19 = vadd.f32 %v965_v5, %v88_v9  ;;  %v161_v26 = vadd.f32 %v965_v5, %v90_v16  ;;  %v162_v30 = vadd.f32 %v965_v5, %v91_v20  ;;  %v163_v31 = vadd.f32 %v965_v5, %v92_v21  ;;  %v26_v38 = vld [vmem:[%s1375_s0 + $0x60] sm:$0xff]  ;;  %v28_v44 = vld [vmem:[%s1375_s0 + $0x70] sm:$0xff]  ;;  %v29_v49 = vld [vmem:[%s1375_s0 + $0x78] sm:$0xff] }
   0x7   :  { %v220_v23 = vmax.f32 %v156_v13, 0.0  ;;  %v221_v24 = vmax.f32 %v157_v14, 0.0  ;;  %v160_v25 = vadd.f32 %v965_v5, %v89_v15  ;;  %v222_v28 = vmax.f32 %v158_v18, 0.0  ;;  %v30_v54 = vld [vmem:[%s1375_s0 + $0x80] sm:$0xff]  ;;  %v31_v63 = vld [vmem:[%s1375_s0 + $0x88] sm:$0xff]  ;;  %v32_v6 = vld [vmem:[%s1375_s0 + $0x90] sm:$0xff] }
   0x8   :  { %v223_v29 = vmax.f32 %v159_v19, 0.0  ;;  %v225_v36 = vmax.f32 %v161_v26, 0.0  ;;  %v93_v37 = vmul.f32 %v958_v2, %v22_v22  ;;  %v226_v41 = vmax.f32 %v162_v30, 0.0  ;;  %v33_v7 = vld [vmem:[%s1375_s0 + $0x98] sm:$0xff]  ;;  %v34_v12 = vld [vmem:[%s1375_s0 + $0xa0] sm:$0xff]  ;;  %v35_v13 = vld [vmem:[%s1375_s0 + $0xa8] sm:$0xff] }
   0x9   :  { %v741_v34 = vpack.c.bf16 %v221_v24, %v220_v23  ;;  %v224_v35 = vmax.f32 %v160_v25, 0.0  ;;  %v227_v42 = vmax.f32 %v163_v31, 0.0  ;;  %v94_v43 = vmul.f32 %v958_v2, %v23_v27  ;;  %v36_v18 = vld [vmem:[%s1375_s0 + $0xb0] sm:$0xff]  ;;  %v37_v23 = vld [vmem:[%s1375_s0 + $0xb8] sm:$0xff] }
   0xa   :  { %v746_v40 = vpack.c.bf16 %v223_v29, %v222_v28  ;;  %v164_v46 = vadd.f32 %v965_v5, %v93_v37  ;;  %v95_v47 = vmul.f32 %v958_v2, %v24_v32  ;;  %v96_v48 = vmul.f32 %v958_v2, %v25_v33  ;;  %v38_v28 = vld [vmem:[%s1375_s0 + $0xc0] sm:$0xff]  ;;  %v39_v37 = vld [vmem:[%s1375_s0 + $0xc8] sm:$0xff] }
   0xb   :  { %742 = vst [vmem:[%s1378_s3] sm:$0xff] %v741_v34   ;;  %v751_v45 = vpack.c.bf16 %v225_v36, %v224_v35  ;;  %v756_v50 = vpack.c.bf16 %v227_v42, %v226_v41  ;;  %v165_v51 = vadd.f32 %v965_v5, %v94_v43  ;;  %v97_v52 = vmul.f32 %v958_v2, %v26_v38  ;;  %v40_v42 = vld [vmem:[%s1375_s0 + $0xd0] sm:$0xff]  ;;  %v41_v43 = vld [vmem:[%s1375_s0 + $0xd8] sm:$0xff] }
   0xc   :  { %898 = vst [vmem:[%s1378_s3 + $0x8] sm:$0xff] %v746_v40   ;;  %v98_v53 = vmul.f32 %v958_v2, %v27_v39  ;;  %v228_v55 = vmax.f32 %v164_v46, 0.0  ;;  %v166_v56 = vadd.f32 %v965_v5, %v95_v47  ;;  %v167_v57 = vadd.f32 %v965_v5, %v96_v48  ;;  %v42_v48 = vld [vmem:[%s1375_s0 + $0xe0] sm:$0xff] }
   0xd   :  { %899 = vst [vmem:[%s1378_s3 + $0x10] sm:$0xff] %v751_v45   ;;  %v99_v58 = vmul.f32 %v958_v2, %v28_v44  ;;  %900 = vst [vmem:[%s1378_s3 + $0x18] sm:$0xff] %v756_v50   ;;  %v229_v59 = vmax.f32 %v165_v51, 0.0  ;;  %v168_v60 = vadd.f32 %v965_v5, %v97_v52  ;;  %v100_v62 = vmul.f32 %v958_v2, %v29_v49  ;;  %v43_v49 = vld [vmem:[%s1375_s0 + $0xe8] sm:$0xff] }
   0xe   :  { %v169_v61 = vadd.f32 %v965_v5, %v98_v53  ;;  %v230_v0 = vmax.f32 %v166_v56, 0.0  ;;  %v231_v1 = vmax.f32 %v167_v57, 0.0  ;;  %v101_v4 = vmul.f32 %v958_v2, %v30_v54  ;;  %v44_v54 = vld [vmem:[%s1375_s0 + $0xf0] sm:$0xff] }
   0xf   :  { %v170_v3 = vadd.f32 %v965_v5, %v99_v58  ;;  %v761_v8 = vpack.c.bf16 %v229_v59, %v228_v55  ;;  %v232_v9 = vmax.f32 %v168_v60, 0.0  ;;  %v171_v11 = vadd.f32 %v965_v5, %v100_v62  ;;  %v45_v59 = vld [vmem:[%s1375_s0 + $0xf8] sm:$0xff] }
  0x10   :  { %v233_v10 = vmax.f32 %v169_v61, 0.0  ;;  %v766_v14 = vpack.c.bf16 %v231_v1, %v230_v0  ;;  %v102_v16 = vmul.f32 %v958_v2, %v31_v63  ;;  %v172_v17 = vadd.f32 %v965_v5, %v101_v4  ;;  %v46_v0 = vld [vmem:[%s1375_s0 + $0x100] sm:$0xff] }
  0x11   :  { %v234_v15 = vmax.f32 %v170_v3, 0.0  ;;  %901 = vst [vmem:[%s1378_s3 + $0x20] sm:$0xff] %v761_v8   ;;  %v235_v20 = vmax.f32 %v171_v11, 0.0  ;;  %v103_v21 = vmul.f32 %v958_v2, %v32_v6  ;;  %v104_v22 = vmul.f32 %v958_v2, %v33_v7  ;;  %v47_v11 = vld [vmem:[%s1375_s0 + $0x108] sm:$0xff] }
  0x12   :  { %v771_v19 = vpack.c.bf16 %v233_v10, %v232_v9  ;;  %902 = vst [vmem:[%s1378_s3 + $0x28] sm:$0xff] %v766_v14   ;;  %v173_v24 = vadd.f32 %v965_v5, %v102_v16  ;;  %v236_v25 = vmax.f32 %v172_v17, 0.0  ;;  %v105_v26 = vmul.f32 %v958_v2, %v34_v12  ;;  %v48_v16 = vld [vmem:[%s1375_s0 + $0x110] sm:$0xff]  ;;  %v49_v17 = vld [vmem:[%s1375_s0 + $0x118] sm:$0xff] }
  0x13   :  { %v106_v27 = vmul.f32 %v958_v2, %v35_v13  ;;  %v776_v29 = vpack.c.bf16 %v235_v20, %v234_v15  ;;  %v174_v30 = vadd.f32 %v965_v5, %v103_v21  ;;  %v175_v31 = vadd.f32 %v965_v5, %v104_v22  ;;  %v50_v22 = vld [vmem:[%s1375_s0 + $0x120] sm:$0xff] }
  0x14   :  { %903 = vst [vmem:[%s1378_s3 + $0x30] sm:$0xff] %v771_v19   ;;  %v107_v32 = vmul.f32 %v958_v2, %v36_v18  ;;  %v237_v33 = vmax.f32 %v173_v24, 0.0  ;;  %v176_v34 = vadd.f32 %v965_v5, %v105_v26  ;;  %v108_v36 = vmul.f32 %v958_v2, %v37_v23  ;;  %v51_v23 = vld [vmem:[%s1375_s0 + $0x128] sm:$0xff] }
  0x15   :  { %v177_v35 = vadd.f32 %v965_v5, %v106_v27  ;;  %904 = vst [vmem:[%s1378_s3 + $0x38] sm:$0xff] %v776_v29   ;;  %v238_v38 = vmax.f32 %v174_v30, 0.0  ;;  %v239_v39 = vmax.f32 %v175_v31, 0.0  ;;  %v109_v41 = vmul.f32 %v958_v2, %v38_v28  ;;  %v52_v28 = vld [vmem:[%s1375_s0 + $0x130] sm:$0xff] }
  0x16   :  { %v178_v40 = vadd.f32 %v965_v5, %v107_v32  ;;  %v781_v44 = vpack.c.bf16 %v237_v33, %v236_v25  ;;  %v240_v45 = vmax.f32 %v176_v34, 0.0  ;;  %v179_v47 = vadd.f32 %v965_v5, %v108_v36  ;;  %v53_v33 = vld [vmem:[%s1375_s0 + $0x138] sm:$0xff] }
  0x17   :  { %v241_v46 = vmax.f32 %v177_v35, 0.0  ;;  %v786_v50 = vpack.c.bf16 %v239_v39, %v238_v38  ;;  %v110_v52 = vmul.f32 %v958_v2, %v39_v37  ;;  %v180_v53 = vadd.f32 %v965_v5, %v109_v41  ;;  %v54_v38 = vld [vmem:[%s1375_s0 + $0x140] sm:$0xff] }
  0x18   :  { %v242_v51 = vmax.f32 %v178_v40, 0.0  ;;  %905 = vst [vmem:[%s1378_s3 + $0x40] sm:$0xff] %v781_v44   ;;  %v243_v56 = vmax.f32 %v179_v47, 0.0  ;;  %v111_v57 = vmul.f32 %v958_v2, %v40_v42  ;;  %v112_v58 = vmul.f32 %v958_v2, %v41_v43  ;;  %v55_v47 = vld [vmem:[%s1375_s0 + $0x148] sm:$0xff] }
  0x19   :  { %v791_v55 = vpack.c.bf16 %v241_v46, %v240_v45  ;;  %906 = vst [vmem:[%s1378_s3 + $0x48] sm:$0xff] %v786_v50   ;;  %v181_v60 = vadd.f32 %v965_v5, %v110_v52  ;;  %v244_v61 = vmax.f32 %v180_v53, 0.0  ;;  %v113_v62 = vmul.f32 %v958_v2, %v42_v48  ;;  %v56_v52 = vld [vmem:[%s1375_s0 + $0x150] sm:$0xff]  ;;  %v57_v53 = vld [vmem:[%s1375_s0 + $0x158] sm:$0xff] }
  0x1a   :  { %v114_v63 = vmul.f32 %v958_v2, %v43_v49  ;;  %v796_v1 = vpack.c.bf16 %v243_v56, %v242_v51  ;;  %v182_v3 = vadd.f32 %v965_v5, %v111_v57  ;;  %v183_v4 = vadd.f32 %v965_v5, %v112_v58  ;;  %v58_v58 = vld [vmem:[%s1375_s0 + $0x160] sm:$0xff] }
  0x1b   :  { %907 = vst [vmem:[%s1378_s3 + $0x50] sm:$0xff] %v791_v55   ;;  %v115_v6 = vmul.f32 %v958_v2, %v44_v54  ;;  %v245_v7 = vmax.f32 %v181_v60, 0.0  ;;  %v184_v8 = vadd.f32 %v965_v5, %v113_v62  ;;  %v116_v10 = vmul.f32 %v958_v2, %v45_v59  ;;  %v59_v59 = vld [vmem:[%s1375_s0 + $0x168] sm:$0xff] }
  0x1c   :  { %v185_v9 = vadd.f32 %v965_v5, %v114_v63  ;;  %908 = vst [vmem:[%s1378_s3 + $0x58] sm:$0xff] %v796_v1   ;;  %v246_v12 = vmax.f32 %v182_v3, 0.0  ;;  %v247_v13 = vmax.f32 %v183_v4, 0.0  ;;  %v117_v15 = vmul.f32 %v958_v2, %v46_v0  ;;  %v60_v0 = vld [vmem:[%s1375_s0 + $0x170] sm:$0xff] }
  0x1d   :  { %v186_v14 = vadd.f32 %v965_v5, %v115_v6  ;;  %v801_v18 = vpack.c.bf16 %v245_v7, %v244_v61  ;;  %v248_v19 = vmax.f32 %v184_v8, 0.0  ;;  %v187_v21 = vadd.f32 %v965_v5, %v116_v10  ;;  %v61_v7 = vld [vmem:[%s1375_s0 + $0x178] sm:$0xff] }
  0x1e   :  { %v249_v20 = vmax.f32 %v185_v9, 0.0  ;;  %v806_v24 = vpack.c.bf16 %v247_v13, %v246_v12  ;;  %v118_v26 = vmul.f32 %v958_v2, %v47_v11  ;;  %v188_v27 = vadd.f32 %v965_v5, %v117_v15  ;;  %v62_v12 = vld [vmem:[%s1375_s0 + $0x180] sm:$0xff] }
  0x1f   :  { %v250_v25 = vmax.f32 %v186_v14, 0.0  ;;  %909 = vst [vmem:[%s1378_s3 + $0x60] sm:$0xff] %v801_v18   ;;  %v251_v30 = vmax.f32 %v187_v21, 0.0  ;;  %v119_v31 = vmul.f32 %v958_v2, %v48_v16  ;;  %v120_v32 = vmul.f32 %v958_v2, %v49_v17  ;;  %v63_v21 = vld [vmem:[%s1375_s0 + $0x188] sm:$0xff] }
  0x20   :  { %v811_v29 = vpack.c.bf16 %v249_v20, %v248_v19  ;;  %910 = vst [vmem:[%s1378_s3 + $0x68] sm:$0xff] %v806_v24   ;;  %v189_v34 = vadd.f32 %v965_v5, %v118_v26  ;;  %v252_v35 = vmax.f32 %v188_v27, 0.0  ;;  %v121_v36 = vmul.f32 %v958_v2, %v50_v22  ;;  %v64_v26 = vld [vmem:[%s1375_s0 + $0x190] sm:$0xff]  ;;  %v65_v27 = vld [vmem:[%s1375_s0 + $0x198] sm:$0xff] }
  0x21   :  { %v122_v37 = vmul.f32 %v958_v2, %v51_v23  ;;  %v816_v39 = vpack.c.bf16 %v251_v30, %v250_v25  ;;  %v190_v40 = vadd.f32 %v965_v5, %v119_v31  ;;  %v191_v41 = vadd.f32 %v965_v5, %v120_v32  ;;  %v66_v32 = vld [vmem:[%s1375_s0 + $0x1a0] sm:$0xff] }
  0x22   :  { %911 = vst [vmem:[%s1378_s3 + $0x70] sm:$0xff] %v811_v29   ;;  %v123_v42 = vmul.f32 %v958_v2, %v52_v28  ;;  %v253_v43 = vmax.f32 %v189_v34, 0.0  ;;  %v192_v44 = vadd.f32 %v965_v5, %v121_v36  ;;  %v124_v46 = vmul.f32 %v958_v2, %v53_v33  ;;  %v67_v33 = vld [vmem:[%s1375_s0 + $0x1a8] sm:$0xff] }
  0x23   :  { %v193_v45 = vadd.f32 %v965_v5, %v122_v37  ;;  %912 = vst [vmem:[%s1378_s3 + $0x78] sm:$0xff] %v816_v39   ;;  %v254_v48 = vmax.f32 %v190_v40, 0.0  ;;  %v255_v49 = vmax.f32 %v191_v41, 0.0  ;;  %v125_v51 = vmul.f32 %v958_v2, %v54_v38  ;;  %v68_v38 = vld [vmem:[%s1375_s0 + $0x1b0] sm:$0xff] }
  0x24   :  { %v194_v50 = vadd.f32 %v965_v5, %v123_v42  ;;  %v821_v54 = vpack.c.bf16 %v253_v43, %v252_v35  ;;  %v256_v55 = vmax.f32 %v192_v44, 0.0  ;;  %v195_v57 = vadd.f32 %v965_v5, %v124_v46  ;;  %v69_v43 = vld [vmem:[%s1375_s0 + $0x1b8] sm:$0xff] }
  0x25   :  { %v257_v56 = vmax.f32 %v193_v45, 0.0  ;;  %v826_v60 = vpack.c.bf16 %v255_v49, %v254_v48  ;;  %v126_v62 = vmul.f32 %v958_v2, %v55_v47  ;;  %v196_v63 = vadd.f32 %v965_v5, %v125_v51  ;;  %v70_v48 = vld [vmem:[%s1375_s0 + $0x1c0] sm:$0xff] }
  0x26   :  { %v258_v61 = vmax.f32 %v194_v50, 0.0  ;;  %913 = vst [vmem:[%s1378_s3 + $0x80] sm:$0xff] %v821_v54   ;;  %v259_v3 = vmax.f32 %v195_v57, 0.0  ;;  %v127_v4 = vmul.f32 %v958_v2, %v56_v52  ;;  %v128_v6 = vmul.f32 %v958_v2, %v57_v53  ;;  %v71_v57 = vld [vmem:[%s1375_s0 + $0x1c8] sm:$0xff] }
  0x27   :  { %v831_v1 = vpack.c.bf16 %v257_v56, %v256_v55  ;;  %914 = vst [vmem:[%s1378_s3 + $0x88] sm:$0xff] %v826_v60   ;;  %v197_v8 = vadd.f32 %v965_v5, %v126_v62  ;;  %v260_v9 = vmax.f32 %v196_v63, 0.0  ;;  %v129_v10 = vmul.f32 %v958_v2, %v58_v58  ;;  %v72_v62 = vld [vmem:[%s1375_s0 + $0x1d0] sm:$0xff]  ;;  %v73_v63 = vld [vmem:[%s1375_s0 + $0x1d8] sm:$0xff] }
  0x28   :  { %v130_v11 = vmul.f32 %v958_v2, %v59_v59  ;;  %v836_v13 = vpack.c.bf16 %v259_v3, %v258_v61  ;;  %v198_v14 = vadd.f32 %v965_v5, %v127_v4  ;;  %v199_v15 = vadd.f32 %v965_v5, %v128_v6  ;;  %v74_v6 = vld [vmem:[%s1375_s0 + $0x1e0] sm:$0xff] }
  0x29   :  { %915 = vst [vmem:[%s1378_s3 + $0x90] sm:$0xff] %v831_v1   ;;  %v131_v16 = vmul.f32 %v958_v2, %v60_v0  ;;  %v261_v17 = vmax.f32 %v197_v8, 0.0  ;;  %v200_v18 = vadd.f32 %v965_v5, %v129_v10  ;;  %v132_v20 = vmul.f32 %v958_v2, %v61_v7  ;;  %v75_v7 = vld [vmem:[%s1375_s0 + $0x1e8] sm:$0xff] }
  0x2a   :  { %v201_v19 = vadd.f32 %v965_v5, %v130_v11  ;;  %916 = vst [vmem:[%s1378_s3 + $0x98] sm:$0xff] %v836_v13   ;;  %v262_v22 = vmax.f32 %v198_v14, 0.0  ;;  %v263_v23 = vmax.f32 %v199_v15, 0.0  ;;  %v133_v25 = vmul.f32 %v958_v2, %v62_v12  ;;  %v76_v12 = vld [vmem:[%s1375_s0 + $0x1f0] sm:$0xff] }
  0x2b   :  { %v202_v24 = vadd.f32 %v965_v5, %v131_v16  ;;  %v841_v28 = vpack.c.bf16 %v261_v17, %v260_v9  ;;  %v264_v29 = vmax.f32 %v200_v18, 0.0  ;;  %v203_v31 = vadd.f32 %v965_v5, %v132_v20  ;;  %v77_v17 = vld [vmem:[%s1375_s0 + $0x1f8] sm:$0xff] }
  0x2c   :  { %v265_v30 = vmax.f32 %v201_v19, 0.0  ;;  %v846_v34 = vpack.c.bf16 %v263_v23, %v262_v22  ;;  %v134_v36 = vmul.f32 %v958_v2, %v63_v21  ;;  %v204_v37 = vadd.f32 %v965_v5, %v133_v25 }
  0x2d   :  { %v266_v35 = vmax.f32 %v202_v24, 0.0  ;;  %917 = vst [vmem:[%s1378_s3 + $0xa0] sm:$0xff] %v841_v28   ;;  %v267_v40 = vmax.f32 %v203_v31, 0.0  ;;  %v135_v41 = vmul.f32 %v958_v2, %v64_v26  ;;  %v136_v42 = vmul.f32 %v958_v2, %v65_v27 }
  0x2e   :  { %v851_v39 = vpack.c.bf16 %v265_v30, %v264_v29  ;;  %918 = vst [vmem:[%s1378_s3 + $0xa8] sm:$0xff] %v846_v34   ;;  %v205_v44 = vadd.f32 %v965_v5, %v134_v36  ;;  %v268_v45 = vmax.f32 %v204_v37, 0.0  ;;  %v137_v46 = vmul.f32 %v958_v2, %v66_v32 }
  0x2f   :  { %v138_v47 = vmul.f32 %v958_v2, %v67_v33  ;;  %v856_v49 = vpack.c.bf16 %v267_v40, %v266_v35  ;;  %v206_v50 = vadd.f32 %v965_v5, %v135_v41  ;;  %v207_v51 = vadd.f32 %v965_v5, %v136_v42 }
  0x30   :  { %919 = vst [vmem:[%s1378_s3 + $0xb0] sm:$0xff] %v851_v39   ;;  %v139_v52 = vmul.f32 %v958_v2, %v68_v38  ;;  %v269_v53 = vmax.f32 %v205_v44, 0.0  ;;  %v208_v54 = vadd.f32 %v965_v5, %v137_v46  ;;  %v140_v56 = vmul.f32 %v958_v2, %v69_v43 }
  0x31   :  { %v209_v55 = vadd.f32 %v965_v5, %v138_v47  ;;  %920 = vst [vmem:[%s1378_s3 + $0xb8] sm:$0xff] %v856_v49   ;;  %v270_v58 = vmax.f32 %v206_v50, 0.0  ;;  %v271_v59 = vmax.f32 %v207_v51, 0.0  ;;  %v141_v61 = vmul.f32 %v958_v2, %v70_v48 }
  0x32   :  { %v210_v60 = vadd.f32 %v965_v5, %v139_v52  ;;  %v861_v0 = vpack.c.bf16 %v269_v53, %v268_v45  ;;  %v272_v1 = vmax.f32 %v208_v54, 0.0  ;;  %v211_v4 = vadd.f32 %v965_v5, %v140_v56 }
  0x33   :  { %v273_v3 = vmax.f32 %v209_v55, 0.0  ;;  %v866_v8 = vpack.c.bf16 %v271_v59, %v270_v58  ;;  %v142_v10 = vmul.f32 %v958_v2, %v71_v57  ;;  %v212_v11 = vadd.f32 %v965_v5, %v141_v61 }
  0x34   :  { %v274_v9 = vmax.f32 %v210_v60, 0.0  ;;  %921 = vst [vmem:[%s1378_s3 + $0xc0] sm:$0xff] %v861_v0   ;;  %v275_v14 = vmax.f32 %v211_v4, 0.0  ;;  %v143_v15 = vmul.f32 %v958_v2, %v72_v62  ;;  %v144_v16 = vmul.f32 %v958_v2, %v73_v63 }
  0x35   :  { %v871_v13 = vpack.c.bf16 %v273_v3, %v272_v1  ;;  %922 = vst [vmem:[%s1378_s3 + $0xc8] sm:$0xff] %v866_v8   ;;  %v213_v18 = vadd.f32 %v965_v5, %v142_v10  ;;  %v276_v19 = vmax.f32 %v212_v11, 0.0  ;;  %v145_v20 = vmul.f32 %v958_v2, %v74_v6 }
  0x36   :  { %v146_v21 = vmul.f32 %v958_v2, %v75_v7  ;;  %v876_v22 = vpack.c.bf16 %v275_v14, %v274_v9  ;;  %v214_v23 = vadd.f32 %v965_v5, %v143_v15  ;;  %v215_v24 = vadd.f32 %v965_v5, %v144_v16 }
  0x37   :  { %923 = vst [vmem:[%s1378_s3 + $0xd0] sm:$0xff] %v871_v13   ;;  %v147_v25 = vmul.f32 %v958_v2, %v76_v12  ;;  %v277_v26 = vmax.f32 %v213_v18, 0.0  ;;  %v216_v27 = vadd.f32 %v965_v5, %v145_v20  ;;  %v148_v29 = vmul.f32 %v958_v2, %v77_v17 }
  0x38   :  { %v217_v28 = vadd.f32 %v965_v5, %v146_v21  ;;  %924 = vst [vmem:[%s1378_s3 + $0xd8] sm:$0xff] %v876_v22   ;;  %v278_v30 = vmax.f32 %v214_v23, 0.0  ;;  %v279_v31 = vmax.f32 %v215_v24, 0.0 }
  0x39   :  { %v218_v32 = vadd.f32 %v965_v5, %v147_v25  ;;  %v881_v33 = vpack.c.bf16 %v277_v26, %v276_v19  ;;  %v280_v34 = vmax.f32 %v216_v27, 0.0  ;;  %v219_v36 = vadd.f32 %v965_v5, %v148_v29 }
  0x3a   :  { %v281_v35 = vmax.f32 %v217_v28, 0.0  ;;  %v886_v37 = vpack.c.bf16 %v279_v31, %v278_v30 }
  0x3b   :  { %v282_v38 = vmax.f32 %v218_v32, 0.0  ;;  %925 = vst [vmem:[%s1378_s3 + $0xe0] sm:$0xff] %v881_v33   ;;  %v283_v39 = vmax.f32 %v219_v36, 0.0 }
  0x3c   :  { %v891_v2 = vpack.c.bf16 %v281_v35, %v280_v34  ;;  %926 = vst [vmem:[%s1378_s3 + $0xe8] sm:$0xff] %v886_v37  }
  0x3d   :  { %v896_v40 = vpack.c.bf16 %v283_v39, %v282_v38 }
  0x3e   :  { %927 = vst [vmem:[%s1378_s3 + $0xf0] sm:$0xff] %v891_v2  }
  0x3f   :  { %928 = vst [vmem:[%s1378_s3 + $0xf8] sm:$0xff] %v896_v40  }

// kernel: _lambda_.15
= control target key start
LH: loop header
LB: loop body
LE: loop exit
PB: predicated region body
PF: predicated region fallthrough
CT: control target
= control target key end

     0   :  { %v1661_v0 = vmov 0   ;;  %vm571_vm0 = vcmask 130048   ;;  %s2460_s1 = inlined_call_operand.vmem [shape: bf16[144,128], index: 1, kind: input, shape index: {}]   ;;  %s2461_s0 = inlined_call_operand.vmem [shape: bf16[512,144], index: 0, kind: input, shape index: {}]   ;;  %s2462_s2 = inlined_call_operand.vmem [shape: f32[512,128], index: 2, kind: output, shape index: {0}]   ;;  %s2463_s3 = inlined_call_operand.vmem [shape: f32[1,1,128], index: 3, kind: output, shape index: {1}]   ;;  %s2464_s4 = inlined_call_operand.vmem [shape: f32[1,1,128], index: 4, kind: output, shape index: {2}]  }
   0x1   :  { %668 = vmatprep.subr.bf16.mxu0 %v1661_v0  ;;  %v1556_v1 = vld [vmem:[%s2460_s1 + $0x38] sm:$0xff]   ;;  %1537 = vmatprep.subr.bf16.mxu1 %v1661_v0  ;;  %v1557_v2 = vld [vmem:[%s2460_s1 + $0x30] sm:$0xff]   ;;  %v1558_v3 = vld [vmem:[%s2460_s1 + $0x28] sm:$0xff]  }
   0x2   :  { %669 = vmatpush1.bf16.msra.mxu0 %v1556_v1  ;;  %1546 = vmatpush1.bf16.msra.mxu1 %v1556_v1  ;;  %v1559_v4 = vld [vmem:[%s2460_s1 + $0x20] sm:$0xff]   ;;  %v1560_v6 = vld [vmem:[%s2460_s1 + $0x18] sm:$0xff]   ;;  %v1561_v7 = vld [vmem:[%s2460_s1 + $0x10] sm:$0xff]  }
   0x3   :  { %670 = vmatprep.subr.bf16.mxu0 %v1661_v0  ;;  %1538 = vmatprep.subr.bf16.mxu1 %v1661_v0  ;;  %v1567_v5 = vld [vmem:[%s2461_s0 + $0x4] ss:$8 sps:$4 sm:$0xff]   ;;  %v1565_v12 = vld [vmem:[%s2461_s0] ss:$8 sps:$4 sm:$0xff]   ;;  %v1568_v13 = vld [vmem:[%s2461_s0 + $0x14] ss:$8 sps:$4 sm:$0xff]  }
   0x4   :  { %1505 = vmatprep.mubr.msk.bf16.mxu0 %vm571_vm0, %v1567_v5  ;;  %v1591_v8 = vld [vmem:[%s2461_s0 + $0x104] ss:$8 sps:$4 sm:$0xff]   ;;  %v1589_v14 = vld [vmem:[%s2461_s0 + $0x100] ss:$8 sps:$4 sm:$0xff]   ;;  %v1595_v15 = vld [vmem:[%s2461_s0 + $0x114] ss:$8 sps:$4 sm:$0xff]  }
   0x5   :  { %v1562_v9 = vld [vmem:[%s2460_s1 + $0x8] sm:$0xff]   ;;  %1521 = vmatprep.mubr.msk.bf16.mxu1 %vm571_vm0, %v1591_v8  ;;  %v1563_v10 = vld [vmem:[%s2460_s1] sm:$0xff]   ;;  %v1570_v16 = vld [vmem:[%s2461_s0 + $0x10] ss:$8 sps:$4 sm:$0xff]  }
   0x6   :  { %671 = vmatpush1.bf16.msra.mxu0 %v1557_v2  ;;  %1547 = vmatpush1.bf16.msra.mxu1 %v1557_v2  ;;  %v1564_v11 = vld [vmem:[%s2460_s1 + $0x40] sm:$0xff]   ;;  %v1597_v18 = vld [vmem:[%s2461_s0 + $0x110] ss:$8 sps:$4 sm:$0xff]   ;;  %v1574_v21 = vld [vmem:[%s2461_s0 + $0x34] ss:$8 sps:$4 sm:$0xff]  }
   0x7   :  { %672 = vmatprep.subr.bf16.mxu0 %v1661_v0  ;;  %1539 = vmatprep.subr.bf16.mxu1 %v1661_v0  ;;  %v1571_v17 = vld [vmem:[%s2461_s0 + $0x24] ss:$8 sps:$4 sm:$0xff]   ;;  %v1573_v20 = vld [vmem:[%s2461_s0 + $0x20] ss:$8 sps:$4 sm:$0xff]   ;;  %v1607_v23 = vld [vmem:[%s2461_s0 + $0x134] ss:$8 sps:$4 sm:$0xff]  }
   0x8   :  { %v1601_v19 = vld [vmem:[%s2461_s0 + $0x124] ss:$8 sps:$4 sm:$0xff]   ;;  %v1603_v22 = vld [vmem:[%s2461_s0 + $0x120] ss:$8 sps:$4 sm:$0xff]   ;;  %v1576_v24 = vld [vmem:[%s2461_s0 + $0x30] ss:$8 sps:$4 sm:$0xff]  }
   0x9   :  { %v1609_v25 = vld [vmem:[%s2461_s0 + $0x130] ss:$8 sps:$4 sm:$0xff]   ;;  %v1577_v26 = vld [vmem:[%s2461_s0 + $0x44] ss:$8 sps:$4 sm:$0xff]   ;;  %v1579_v28 = vld [vmem:[%s2461_s0 + $0x40] ss:$8 sps:$4 sm:$0xff]  }
   0xa   :  { %673 = vmatpush1.bf16.msra.mxu0 %v1558_v3  ;;  %1548 = vmatpush1.bf16.msra.mxu1 %v1558_v3  ;;  %v1613_v27 = vld [vmem:[%s2461_s0 + $0x144] ss:$8 sps:$4 sm:$0xff]   ;;  %v1615_v29 = vld [vmem:[%s2461_s0 + $0x140] ss:$8 sps:$4 sm:$0xff]   ;;  %v1580_v30 = vld [vmem:[%s2461_s0 + $0x54] ss:$8 sps:$4 sm:$0xff]  }
   0xb   :  { %674 = vmatprep.subr.bf16.mxu0 %v1661_v0  ;;  %1540 = vmatprep.subr.bf16.mxu1 %v1661_v0  ;;  %v1619_v31 = vld [vmem:[%s2461_s0 + $0x154] ss:$8 sps:$4 sm:$0xff]   ;;  %v1582_v32 = vld [vmem:[%s2461_s0 + $0x50] ss:$8 sps:$4 sm:$0xff]   ;;  %v1583_v34 = vld [vmem:[%s2461_s0 + $0x64] ss:$8 sps:$4 sm:$0xff]  }
   0xc   :  { %v1621_v33 = vld [vmem:[%s2461_s0 + $0x150] ss:$8 sps:$4 sm:$0xff]   ;;  %v1625_v35 = vld [vmem:[%s2461_s0 + $0x164] ss:$8 sps:$4 sm:$0xff]   ;;  %v1585_v36 = vld [vmem:[%s2461_s0 + $0x60] ss:$8 sps:$4 sm:$0xff]  }
   0xd   :  { %v1627_v37 = vld [vmem:[%s2461_s0 + $0x160] ss:$8 sps:$4 sm:$0xff]   ;;  %v1586_v38 = vld [vmem:[%s2461_s0 + $0x74] ss:$8 sps:$4 sm:$0xff]   ;;  %v1588_v40 = vld [vmem:[%s2461_s0 + $0x70] ss:$8 sps:$4 sm:$0xff]  }
   0xe   :  { %675 = vmatpush1.bf16.msra.mxu0 %v1559_v4  ;;  %1549 = vmatpush1.bf16.msra.mxu1 %v1559_v4  ;;  %v1631_v39 = vld [vmem:[%s2461_s0 + $0x174] ss:$8 sps:$4 sm:$0xff]   ;;  %v1633_v41 = vld [vmem:[%s2461_s0 + $0x170] ss:$8 sps:$4 sm:$0xff]   ;;  %v1592_v42 = vld [vmem:[%s2461_s0 + $0x84] ss:$8 sps:$4 sm:$0xff]  }
   0xf   :  { %676 = vmatprep.subr.bf16.mxu0 %v1661_v0  ;;  %1541 = vmatprep.subr.bf16.mxu1 %v1661_v0  ;;  %v1637_v43 = vld [vmem:[%s2461_s0 + $0x184] ss:$8 sps:$4 sm:$0xff]   ;;  %v1594_v44 = vld [vmem:[%s2461_s0 + $0x80] ss:$8 sps:$4 sm:$0xff]   ;;  %v1598_v46 = vld [vmem:[%s2461_s0 + $0x94] ss:$8 sps:$4 sm:$0xff]  }
  0x10   :  { %v1639_v45 = vld [vmem:[%s2461_s0 + $0x180] ss:$8 sps:$4 sm:$0xff]   ;;  %v1640_v47 = vld [vmem:[%s2461_s0 + $0x194] ss:$8 sps:$4 sm:$0xff]   ;;  %v1600_v48 = vld [vmem:[%s2461_s0 + $0x90] ss:$8 sps:$4 sm:$0xff]  }
  0x11   :  { %v1642_v49 = vld [vmem:[%s2461_s0 + $0x190] ss:$8 sps:$4 sm:$0xff]   ;;  %v1604_v50 = vld [vmem:[%s2461_s0 + $0xa4] ss:$8 sps:$4 sm:$0xff]   ;;  %v1606_v52 = vld [vmem:[%s2461_s0 + $0xa0] ss:$8 sps:$4 sm:$0xff]  }
  0x12   :  { %677 = vmatpush1.bf16.msra.mxu0 %v1560_v6  ;;  %1550 = vmatpush1.bf16.msra.mxu1 %v1560_v6  ;;  %v1643_v51 = vld [vmem:[%s2461_s0 + $0x1a4] ss:$8 sps:$4 sm:$0xff]   ;;  %v1645_v53 = vld [vmem:[%s2461_s0 + $0x1a0] ss:$8 sps:$4 sm:$0xff]   ;;  %v1610_v54 = vld [vmem:[%s2461_s0 + $0xb4] ss:$8 sps:$4 sm:$0xff]  }
  0x13   :  { %678 = vmatprep.subr.bf16.mxu0 %v1661_v0  ;;  %1542 = vmatprep.subr.bf16.mxu1 %v1661_v0  ;;  %v1646_v55 = vld [vmem:[%s2461_s0 + $0x1b4] ss:$8 sps:$4 sm:$0xff]   ;;  %v1612_v56 = vld [vmem:[%s2461_s0 + $0xb0] ss:$8 sps:$4 sm:$0xff]   ;;  %v1616_v58 = vld [vmem:[%s2461_s0 + $0xc4] ss:$8 sps:$4 sm:$0xff]  }
  0x14   :  { %v1648_v57 = vld [vmem:[%s2461_s0 + $0x1b0] ss:$8 sps:$4 sm:$0xff]   ;;  %v1649_v59 = vld [vmem:[%s2461_s0 + $0x1c4] ss:$8 sps:$4 sm:$0xff]   ;;  %v1618_v60 = vld [vmem:[%s2461_s0 + $0xc0] ss:$8 sps:$4 sm:$0xff]  }
  0x15   :  { %v1651_v61 = vld [vmem:[%s2461_s0 + $0x1c0] ss:$8 sps:$4 sm:$0xff]   ;;  %v1622_v62 = vld [vmem:[%s2461_s0 + $0xd4] ss:$8 sps:$4 sm:$0xff]   ;;  %v1654_v1 = vld [vmem:[%s2461_s0 + $0x1d0] ss:$8 sps:$4 sm:$0xff]  }
  0x16   :  { %679 = vmatpush1.bf16.msra.mxu0 %v1561_v7  ;;  %1551 = vmatpush1.bf16.msra.mxu1 %v1561_v7  ;;  %v1652_v63 = vld [vmem:[%s2461_s0 + $0x1d4] ss:$8 sps:$4 sm:$0xff]   ;;  %v1628_v2 = vld [vmem:[%s2461_s0 + $0xe4] ss:$8 sps:$4 sm:$0xff]   ;;  %v1630_v4 = vld [vmem:[%s2461_s0 + $0xe0] ss:$8 sps:$4 sm:$0xff]  }
  0x17   :  { %680 = vmatprep.subr.bf16.mxu0 %v1661_v0  ;;  %1543 = vmatprep.subr.bf16.mxu1 %v1661_v0  ;;  %v1655_v3 = vld [vmem:[%s2461_s0 + $0x1e4] ss:$8 sps:$4 sm:$0xff]   ;;  %v1657_v5 = vld [vmem:[%s2461_s0 + $0x1e0] ss:$8 sps:$4 sm:$0xff]   ;;  %v1634_v6 = vld [vmem:[%s2461_s0 + $0xf4] ss:$8 sps:$4 sm:$0xff]  }
  0x18   :  { %v1658_v7 = vld [vmem:[%s2461_s0 + $0x1f4] ss:$8 sps:$4 sm:$0xff]   ;;  %v1636_v8 = vld [vmem:[%s2461_s0 + $0xf0] ss:$8 sps:$4 sm:$0xff]  }
  0x1a   :  { %681 = vmatpush1.bf16.msra.mxu0 %v1562_v9  ;;  %1552 = vmatpush1.bf16.msra.mxu1 %v1562_v9  ;;  %v1660_v9 = vld [vmem:[%s2461_s0 + $0x1f0] ss:$8 sps:$4 sm:$0xff]  }
  0x1b   :  { %682 = vmatprep.subr.bf16.mxu0 %v1661_v0  ;;  %1544 = vmatprep.subr.bf16.mxu1 %v1661_v0 }
  0x1e   :  { %683 = vmatpush1.bf16.msra.mxu0 %v1563_v10  ;;  %1553 = vmatpush1.bf16.msra.mxu1 %v1563_v10 }
  0x1f   :  { %698 = vmatprep.subr.bf16.mxu0 %v1661_v0  ;;  %1545 = vmatprep.subr.bf16.mxu1 %v1661_v0  ;;  %v1624_v0 = vld [vmem:[%s2461_s0 + $0xd0] ss:$8 sps:$4 sm:$0xff]  }
  0x22   :  { %699 = vmatpush2.bf16.msra.mxu0 %v1564_v11  ;;  %1554 = vmatpush2.bf16.msra.mxu1 %v1564_v11 }
  0x25   :  { %701 = vmatmul.mubr.bf16.vlgmr.msra.gmra.mxu0 %v1565_v12  ;;  %829 = vmatmul.mubr.bf16.vlgmr.msra.gmra.mxu1 %v1589_v14 }
  0x26   :  { %1506 = vmatprep.mubr.msk.bf16.mxu0 %vm571_vm0, %v1568_v13  ;;  %1522 = vmatprep.mubr.msk.bf16.mxu1 %vm571_vm0, %v1595_v15 }
  0x2d   :  { %709 = vmatmul.mubr.bf16.gmra.mxu0 %v1570_v16  ;;  %837 = vmatmul.mubr.bf16.gmra.mxu1 %v1597_v18 }
  0x2e   :  { %1507 = vmatprep.mubr.msk.bf16.mxu0 %vm571_vm0, %v1571_v17  ;;  %1523 = vmatprep.mubr.msk.bf16.mxu1 %vm571_vm0, %v1601_v19 }
  0x35   :  { %717 = vmatmul.mubr.bf16.gmra.mxu0 %v1573_v20  ;;  %845 = vmatmul.mubr.bf16.gmra.mxu1 %v1603_v22 }
  0x36   :  { %1508 = vmatprep.mubr.msk.bf16.mxu0 %vm571_vm0, %v1574_v21  ;;  %1524 = vmatprep.mubr.msk.bf16.mxu1 %vm571_vm0, %v1607_v23 }
  0x3d   :  { %725 = vmatmul.mubr.bf16.gmra.mxu0 %v1576_v24  ;;  %853 = vmatmul.mubr.bf16.gmra.mxu1 %v1609_v25 }
  0x3e   :  { %1509 = vmatprep.mubr.msk.bf16.mxu0 %vm571_vm0, %v1577_v26  ;;  %1525 = vmatprep.mubr.msk.bf16.mxu1 %vm571_vm0, %v1613_v27 }
  0x45   :  { %733 = vmatmul.mubr.bf16.gmra.mxu0 %v1579_v28  ;;  %861 = vmatmul.mubr.bf16.gmra.mxu1 %v1615_v29 }
  0x46   :  { %1510 = vmatprep.mubr.msk.bf16.mxu0 %vm571_vm0, %v1580_v30  ;;  %1526 = vmatprep.mubr.msk.bf16.mxu1 %vm571_vm0, %v1619_v31 }
  0x4d   :  { %741 = vmatmul.mubr.bf16.gmra.mxu0 %v1582_v32  ;;  %869 = vmatmul.mubr.bf16.gmra.mxu1 %v1621_v33 }
  0x4e   :  { %1511 = vmatprep.mubr.msk.bf16.mxu0 %vm571_vm0, %v1583_v34  ;;  %1527 = vmatprep.mubr.msk.bf16.mxu1 %vm571_vm0, %v1625_v35 }
  0x55   :  { %749 = vmatmul.mubr.bf16.gmra.mxu0 %v1585_v36  ;;  %877 = vmatmul.mubr.bf16.gmra.mxu1 %v1627_v37 }
  0x56   :  { %1512 = vmatprep.mubr.msk.bf16.mxu0 %vm571_vm0, %v1586_v38  ;;  %1528 = vmatprep.mubr.msk.bf16.mxu1 %vm571_vm0, %v1631_v39 }
  0x5d   :  { %757 = vmatmul.mubr.bf16.gmra.mxu0 %v1588_v40  ;;  %885 = vmatmul.mubr.bf16.gmra.mxu1 %v1633_v41 }
  0x5e   :  { %1513 = vmatprep.mubr.msk.bf16.mxu0 %vm571_vm0, %v1592_v42  ;;  %1529 = vmatprep.mubr.msk.bf16.mxu1 %vm571_vm0, %v1637_v43 }
  0x65   :  { %765 = vmatmul.mubr.bf16.gmra.mxu0 %v1594_v44  ;;  %893 = vmatmul.mubr.bf16.gmra.mxu1 %v1639_v45 }
  0x66   :  { %1514 = vmatprep.mubr.msk.bf16.mxu0 %vm571_vm0, %v1598_v46  ;;  %1530 = vmatprep.mubr.msk.bf16.mxu1 %vm571_vm0, %v1640_v47 }
  0x6d   :  { %773 = vmatmul.mubr.bf16.gmra.mxu0 %v1600_v48  ;;  %901 = vmatmul.mubr.bf16.gmra.mxu1 %v1642_v49 }
  0x6e   :  { %1515 = vmatprep.mubr.msk.bf16.mxu0 %vm571_vm0, %v1604_v50  ;;  %1531 = vmatprep.mubr.msk.bf16.mxu1 %vm571_vm0, %v1643_v51 }
  0x75   :  { %781 = vmatmul.mubr.bf16.gmra.mxu0 %v1606_v52  ;;  %909 = vmatmul.mubr.bf16.gmra.mxu1 %v1645_v53 }
  0x76   :  { %1516 = vmatprep.mubr.msk.bf16.mxu0 %vm571_vm0, %v1610_v54  ;;  %1532 = vmatprep.mubr.msk.bf16.mxu1 %vm571_vm0, %v1646_v55 }
  0x7d   :  { %789 = vmatmul.mubr.bf16.gmra.mxu0 %v1612_v56  ;;  %917 = vmatmul.mubr.bf16.gmra.mxu1 %v1648_v57 }
  0x7e   :  { %1517 = vmatprep.mubr.msk.bf16.mxu0 %vm571_vm0, %v1616_v58  ;;  %1533 = vmatprep.mubr.msk.bf16.mxu1 %vm571_vm0, %v1649_v59 }
  0x85   :  { %797 = vmatmul.mubr.bf16.gmra.mxu0 %v1618_v60  ;;  %925 = vmatmul.mubr.bf16.gmra.mxu1 %v1651_v61 }
  0x86   :  { %1518 = vmatprep.mubr.msk.bf16.mxu0 %vm571_vm0, %v1622_v62  ;;  %1534 = vmatprep.mubr.msk.bf16.mxu1 %vm571_vm0, %v1652_v63 }
  0x8d   :  { %805 = vmatmul.mubr.bf16.gmra.mxu0 %v1624_v0  ;;  %933 = vmatmul.mubr.bf16.gmra.mxu1 %v1654_v1 }
  0x8e   :  { %1519 = vmatprep.mubr.msk.bf16.mxu0 %vm571_vm0, %v1628_v2  ;;  %1535 = vmatprep.mubr.msk.bf16.mxu1 %vm571_vm0, %v1655_v3 }
  0x95   :  { %813 = vmatmul.mubr.bf16.gmra.mxu0 %v1630_v4  ;;  %941 = vmatmul.mubr.bf16.gmra.mxu1 %v1657_v5 }
  0x96   :  { %1520 = vmatprep.mubr.msk.bf16.mxu0 %vm571_vm0, %v1634_v6  ;;  %1536 = vmatprep.mubr.msk.bf16.mxu1 %vm571_vm0, %v1658_v7 }
  0x9d   :  { %821 = vmatmul.mubr.bf16.gmra.mxu0 %v1636_v8  ;;  %949 = vmatmul.mubr.bf16.gmra.mxu1 %v1660_v9 }
  0xe5   :  { %v1938_v10 = vpop.f32.mrf.mxu0  ;;  %v1940_v11 = vpop.f32.mrf.mxu1 }
  0xe6   :  { %1152 = vst [vmem:[%s2462_s2] sm:$0xff] %v1938_v10  ;;  %1184 = vst [vmem:[%s2462_s2 + $0x100] sm:$0xff] %v1940_v11 }
  0xe7   :  { %v704_v12 = vpop.f32.mrf.mxu0  ;;  %v832_v13 = vpop.f32.mrf.mxu1 }
  0xe9   :  { %v1950_v14 = vpop.f32.mrf.mxu0  ;;  %v1952_v15 = vpop.f32.mrf.mxu1 }
  0xea   :  { %1153 = vst [vmem:[%s2462_s2 + $0x8] sm:$0xff] %v1950_v14  ;;  %1185 = vst [vmem:[%s2462_s2 + $0x108] sm:$0xff] %v1952_v15  ;;  %v1287_v12 = vmul.f32 %v1950_v14, %v1950_v14 }
  0xeb   :  { %v707_v16 = vpop.f32.mrf.mxu0  ;;  %v835_v17 = vpop.f32.mrf.mxu1 }
  0xec   :  { %v1286_v17 = vmul.f32 %v1938_v10, %v1938_v10 }
  0xed   :  { %v1962_v18 = vpop.f32.mrf.mxu0  ;;  %v1964_v19 = vpop.f32.mrf.mxu1 }
  0xee   :  { %1154 = vst [vmem:[%s2462_s2 + $0x10] sm:$0xff] %v1962_v18  ;;  %1186 = vst [vmem:[%s2462_s2 + $0x110] sm:$0xff] %v1964_v19 }
  0xef   :  { %v712_v20 = vpop.f32.mrf.mxu0  ;;  %v840_v21 = vpop.f32.mrf.mxu1 }
  0xf0   :  { %v1216_v20 = vadd.f32 %v1950_v14, %v1938_v10  ;;  %v1288_v21 = vmul.f32 %v1962_v18, %v1962_v18 }
  0xf1   :  { %v1974_v22 = vpop.f32.mrf.mxu0  ;;  %v1976_v23 = vpop.f32.mrf.mxu1 }
  0xf2   :  { %1155 = vst [vmem:[%s2462_s2 + $0x18] sm:$0xff] %v1974_v22  ;;  %1187 = vst [vmem:[%s2462_s2 + $0x118] sm:$0xff] %v1976_v23  ;;  %v1289_v10 = vmul.f32 %v1974_v22, %v1974_v22 }
  0xf3   :  { %v715_v24 = vpop.f32.mrf.mxu0  ;;  %v843_v25 = vpop.f32.mrf.mxu1 }
  0xf5   :  { %v1986_v26 = vpop.f32.mrf.mxu0  ;;  %v1988_v27 = vpop.f32.mrf.mxu1 }
  0xf6   :  { %1156 = vst [vmem:[%s2462_s2 + $0x20] sm:$0xff] %v1986_v26  ;;  %1188 = vst [vmem:[%s2462_s2 + $0x120] sm:$0xff] %v1988_v27 }
  0xf7   :  { %v720_v28 = vpop.f32.mrf.mxu0  ;;  %v848_v29 = vpop.f32.mrf.mxu1 }
  0xf8   :  { %v1350_v28 = vadd.f32 %v1287_v12, %v1286_v17  ;;  %v1217_v29 = vadd.f32 %v1216_v20, %v1962_v18 }
  0xf9   :  { %v1998_v30 = vpop.f32.mrf.mxu0  ;;  %v2000_v31 = vpop.f32.mrf.mxu1 }
  0xfa   :  { %1157 = vst [vmem:[%s2462_s2 + $0x28] sm:$0xff] %v1998_v30  ;;  %1189 = vst [vmem:[%s2462_s2 + $0x128] sm:$0xff] %v2000_v31 }
  0xfb   :  { %v723_v32 = vpop.f32.mrf.mxu0  ;;  %v851_v33 = vpop.f32.mrf.mxu1 }
  0xfc   :  { %v1351_v33 = vadd.f32 %v1350_v28, %v1288_v21 }
  0xfd   :  { %v2010_v34 = vpop.f32.mrf.mxu0  ;;  %v2012_v35 = vpop.f32.mrf.mxu1 }
  0xfe   :  { %1158 = vst [vmem:[%s2462_s2 + $0x30] sm:$0xff] %v2010_v34  ;;  %1190 = vst [vmem:[%s2462_s2 + $0x130] sm:$0xff] %v2012_v35 }
  0xff   :  { %v728_v36 = vpop.f32.mrf.mxu0  ;;  %v856_v37 = vpop.f32.mrf.mxu1 }
 0x100   :  { %v1218_v36 = vadd.f32 %v1217_v29, %v1974_v22  ;;  %v1290_v37 = vmul.f32 %v1986_v26, %v1986_v26  ;;  %v1291_v22 = vmul.f32 %v1998_v30, %v1998_v30 }
 0x101   :  { %v2022_v38 = vpop.f32.mrf.mxu0  ;;  %v2024_v39 = vpop.f32.mrf.mxu1 }
 0x102   :  { %1159 = vst [vmem:[%s2462_s2 + $0x38] sm:$0xff] %v2022_v38  ;;  %1191 = vst [vmem:[%s2462_s2 + $0x138] sm:$0xff] %v2024_v39 }
 0x103   :  { %v731_v40 = vpop.f32.mrf.mxu0  ;;  %v859_v41 = vpop.f32.mrf.mxu1 }
 0x104   :  { %v1352_v41 = vadd.f32 %v1351_v33, %v1289_v10 }
 0x105   :  { %v2034_v42 = vpop.f32.mrf.mxu0  ;;  %v2036_v43 = vpop.f32.mrf.mxu1 }
 0x106   :  { %1160 = vst [vmem:[%s2462_s2 + $0x40] sm:$0xff] %v2034_v42  ;;  %1192 = vst [vmem:[%s2462_s2 + $0x140] sm:$0xff] %v2036_v43 }
 0x107   :  { %v736_v44 = vpop.f32.mrf.mxu0  ;;  %v864_v45 = vpop.f32.mrf.mxu1 }
 0x108   :  { %v1219_v44 = vadd.f32 %v1218_v36, %v1986_v26 }
 0x109   :  { %v2046_v46 = vpop.f32.mrf.mxu0  ;;  %v2048_v47 = vpop.f32.mrf.mxu1 }
 0x10a   :  { %1161 = vst [vmem:[%s2462_s2 + $0x48] sm:$0xff] %v2046_v46  ;;  %1193 = vst [vmem:[%s2462_s2 + $0x148] sm:$0xff] %v2048_v47 }
 0x10b   :  { %v739_v48 = vpop.f32.mrf.mxu0  ;;  %v867_v49 = vpop.f32.mrf.mxu1 }
 0x10c   :  { %v1353_v49 = vadd.f32 %v1352_v41, %v1290_v37 }
 0x10d   :  { %v2058_v50 = vpop.f32.mrf.mxu0  ;;  %v2060_v51 = vpop.f32.mrf.mxu1 }
 0x10e   :  { %1162 = vst [vmem:[%s2462_s2 + $0x50] sm:$0xff] %v2058_v50  ;;  %1194 = vst [vmem:[%s2462_s2 + $0x150] sm:$0xff] %v2060_v51 }
 0x10f   :  { %v744_v52 = vpop.f32.mrf.mxu0  ;;  %v872_v53 = vpop.f32.mrf.mxu1 }
 0x110   :  { %v1220_v52 = vadd.f32 %v1219_v44, %v1998_v30  ;;  %v1292_v53 = vmul.f32 %v2010_v34, %v2010_v34  ;;  %v1293_v30 = vmul.f32 %v2022_v38, %v2022_v38 }
 0x111   :  { %v2070_v54 = vpop.f32.mrf.mxu0  ;;  %v2072_v55 = vpop.f32.mrf.mxu1 }
 0x112   :  { %1163 = vst [vmem:[%s2462_s2 + $0x58] sm:$0xff] %v2070_v54  ;;  %1195 = vst [vmem:[%s2462_s2 + $0x158] sm:$0xff] %v2072_v55 }
 0x113   :  { %v747_v56 = vpop.f32.mrf.mxu0  ;;  %v875_v57 = vpop.f32.mrf.mxu1 }
 0x114   :  { %v1354_v57 = vadd.f32 %v1353_v49, %v1291_v22 }
 0x115   :  { %v2082_v58 = vpop.f32.mrf.mxu0  ;;  %v2084_v59 = vpop.f32.mrf.mxu1 }
 0x116   :  { %1164 = vst [vmem:[%s2462_s2 + $0x60] sm:$0xff] %v2082_v58  ;;  %1196 = vst [vmem:[%s2462_s2 + $0x160] sm:$0xff] %v2084_v59 }
 0x117   :  { %v752_v60 = vpop.f32.mrf.mxu0  ;;  %v880_v61 = vpop.f32.mrf.mxu1 }
 0x118   :  { %v1221_v60 = vadd.f32 %v1220_v52, %v2010_v34 }
 0x119   :  { %v2094_v62 = vpop.f32.mrf.mxu0  ;;  %v2096_v63 = vpop.f32.mrf.mxu1 }
 0x11a   :  { %1165 = vst [vmem:[%s2462_s2 + $0x68] sm:$0xff] %v2094_v62  ;;  %1197 = vst [vmem:[%s2462_s2 + $0x168] sm:$0xff] %v2096_v63 }
 0x11b   :  { %v755_v0 = vpop.f32.mrf.mxu0  ;;  %v883_v1 = vpop.f32.mrf.mxu1 }
 0x11c   :  { %v1355_v1 = vadd.f32 %v1354_v57, %v1292_v53 }
 0x11d   :  { %v2106_v2 = vpop.f32.mrf.mxu0  ;;  %v2108_v3 = vpop.f32.mrf.mxu1 }
 0x11e   :  { %1166 = vst [vmem:[%s2462_s2 + $0x70] sm:$0xff] %v2106_v2  ;;  %1198 = vst [vmem:[%s2462_s2 + $0x170] sm:$0xff] %v2108_v3 }
 0x11f   :  { %v760_v4 = vpop.f32.mrf.mxu0  ;;  %v888_v5 = vpop.f32.mrf.mxu1 }
 0x120   :  { %v1222_v4 = vadd.f32 %v1221_v60, %v2022_v38  ;;  %v1294_v5 = vmul.f32 %v2034_v42, %v2034_v42  ;;  %v1295_v38 = vmul.f32 %v2046_v46, %v2046_v46 }
 0x121   :  { %v2118_v6 = vpop.f32.mrf.mxu0  ;;  %v2120_v7 = vpop.f32.mrf.mxu1 }
 0x122   :  { %1167 = vst [vmem:[%s2462_s2 + $0x78] sm:$0xff] %v2118_v6  ;;  %1199 = vst [vmem:[%s2462_s2 + $0x178] sm:$0xff] %v2120_v7  ;;  %v1223_v12 = vadd.f32 %v1222_v4, %v2034_v42 }
 0x123   :  { %v763_v8 = vpop.f32.mrf.mxu0  ;;  %v891_v9 = vpop.f32.mrf.mxu1 }
 0x124   :  { %v1356_v9 = vadd.f32 %v1355_v1, %v1293_v30 }
 0x125   :  { %v2132_v13 = vpop.f32.mrf.mxu0  ;;  %v2134_v16 = vpop.f32.mrf.mxu1 }
 0x126   :  { %1168 = vst [vmem:[%s2462_s2 + $0x80] sm:$0xff] %v2132_v13  ;;  %1200 = vst [vmem:[%s2462_s2 + $0x180] sm:$0xff] %v2134_v16  ;;  %v1357_v21 = vadd.f32 %v1356_v9, %v1294_v5 }
 0x127   :  { %v768_v24 = vpop.f32.mrf.mxu0  ;;  %v896_v25 = vpop.f32.mrf.mxu1 }
 0x128   :  { %v1224_v24 = vadd.f32 %v1223_v12, %v2046_v46  ;;  %v1296_v25 = vmul.f32 %v2058_v50, %v2058_v50  ;;  %v1358_v29 = vadd.f32 %v1357_v21, %v1295_v38  ;;  %v1297_v46 = vmul.f32 %v2070_v54, %v2070_v54 }
 0x129   :  { %v2153_v14 = vpop.f32.mrf.mxu0  ;;  %v2155_v32 = vpop.f32.mrf.mxu1 }
 0x12a   :  { %1169 = vst [vmem:[%s2462_s2 + $0x88] sm:$0xff] %v2153_v14  ;;  %1201 = vst [vmem:[%s2462_s2 + $0x188] sm:$0xff] %v2155_v32  ;;  %v1225_v10 = vadd.f32 %v1224_v24, %v2058_v50  ;;  %v1359_v37 = vadd.f32 %v1358_v29, %v1296_v25 }
 0x12b   :  { %v771_v18 = vpop.f32.mrf.mxu0  ;;  %v899_v40 = vpop.f32.mrf.mxu1 }
 0x12c   :  { %v1226_v18 = vadd.f32 %v1225_v10, %v2070_v54  ;;  %v1298_v40 = vmul.f32 %v2082_v58, %v2082_v58  ;;  %v1360_v44 = vadd.f32 %v1359_v37, %v1297_v46  ;;  %v1299_v54 = vmul.f32 %v2094_v62, %v2094_v62 }
 0x12d   :  { %v2171_v45 = vpop.f32.mrf.mxu0  ;;  %v2173_v48 = vpop.f32.mrf.mxu1 }
 0x12e   :  { %1170 = vst [vmem:[%s2462_s2 + $0x90] sm:$0xff] %v2171_v45  ;;  %1202 = vst [vmem:[%s2462_s2 + $0x190] sm:$0xff] %v2173_v48  ;;  %v1227_v22 = vadd.f32 %v1226_v18, %v2082_v58  ;;  %v1361_v53 = vadd.f32 %v1360_v44, %v1298_v40 }
 0x12f   :  { %v776_v26 = vpop.f32.mrf.mxu0  ;;  %v904_v56 = vpop.f32.mrf.mxu1 }
 0x130   :  { %v1228_v26 = vadd.f32 %v1227_v22, %v2094_v62  ;;  %v1300_v56 = vmul.f32 %v2106_v2, %v2106_v2  ;;  %v1362_v60 = vadd.f32 %v1361_v53, %v1299_v54  ;;  %v1301_v62 = vmul.f32 %v2118_v6, %v2118_v6 }
 0x131   :  { %v2189_v61 = vpop.f32.mrf.mxu0  ;;  %v2191_v0 = vpop.f32.mrf.mxu1 }
 0x132   :  { %1171 = vst [vmem:[%s2462_s2 + $0x98] sm:$0xff] %v2189_v61  ;;  %1203 = vst [vmem:[%s2462_s2 + $0x198] sm:$0xff] %v2191_v0  ;;  %v1229_v30 = vadd.f32 %v1228_v26, %v2106_v2  ;;  %v1363_v5 = vadd.f32 %v1362_v60, %v1300_v56 }
 0x133   :  { %v779_v34 = vpop.f32.mrf.mxu0  ;;  %v907_v8 = vpop.f32.mrf.mxu1 }
 0x134   :  { %v1230_v34 = vadd.f32 %v1229_v30, %v2118_v6  ;;  %v1302_v8 = vmul.f32 %v2132_v13, %v2132_v13  ;;  %v1364_v12 = vadd.f32 %v1363_v5, %v1301_v62  ;;  %v1303_v6 = vmul.f32 %v2153_v14, %v2153_v14 }
 0x135   :  { %v2207_v17 = vpop.f32.mrf.mxu0  ;;  %v2209_v20 = vpop.f32.mrf.mxu1 }
 0x136   :  { %1172 = vst [vmem:[%s2462_s2 + $0xa0] sm:$0xff] %v2207_v17  ;;  %1204 = vst [vmem:[%s2462_s2 + $0x1a0] sm:$0xff] %v2209_v20  ;;  %v1231_v38 = vadd.f32 %v1230_v34, %v2132_v13  ;;  %v1365_v25 = vadd.f32 %v1364_v12, %v1302_v8 }
 0x137   :  { %v784_v42 = vpop.f32.mrf.mxu0  ;;  %v912_v28 = vpop.f32.mrf.mxu1 }
 0x138   :  { %v1232_v42 = vadd.f32 %v1231_v38, %v2153_v14  ;;  %v1304_v28 = vmul.f32 %v2171_v45, %v2171_v45  ;;  %v1366_v10 = vadd.f32 %v1365_v25, %v1303_v6  ;;  %v1305_v14 = vmul.f32 %v2189_v61, %v2189_v61 }
 0x139   :  { %v2225_v33 = vpop.f32.mrf.mxu0  ;;  %v2227_v36 = vpop.f32.mrf.mxu1 }
 0x13a   :  { %1173 = vst [vmem:[%s2462_s2 + $0xa8] sm:$0xff] %v2225_v33  ;;  %1205 = vst [vmem:[%s2462_s2 + $0x1a8] sm:$0xff] %v2227_v36  ;;  %v1233_v46 = vadd.f32 %v1232_v42, %v2171_v45  ;;  %v1367_v40 = vadd.f32 %v1366_v10, %v1304_v28 }
 0x13b   :  { %v787_v50 = vpop.f32.mrf.mxu0  ;;  %v915_v41 = vpop.f32.mrf.mxu1 }
 0x13c   :  { %v1234_v50 = vadd.f32 %v1233_v46, %v2189_v61  ;;  %v1306_v41 = vmul.f32 %v2207_v17, %v2207_v17  ;;  %v1368_v22 = vadd.f32 %v1367_v40, %v1305_v14  ;;  %v1307_v61 = vmul.f32 %v2225_v33, %v2225_v33 }
 0x13d   :  { %v790_v49 = vpop.f32.mrf.mxu0  ;;  %v2243_v52 = vpop.f32.mrf.mxu1 }
 0x13e   :  { %1174 = vst [vmem:[%s2462_s2 + $0xb0] sm:$0xff] %v790_v49  ;;  %1206 = vst [vmem:[%s2462_s2 + $0x1b0] sm:$0xff] %v2243_v52  ;;  %v1235_v54 = vadd.f32 %v1234_v50, %v2207_v17  ;;  %v1369_v56 = vadd.f32 %v1368_v22, %v1306_v41 }
 0x13f   :  { %v792_v58 = vpop.f32.mrf.mxu0  ;;  %v920_v57 = vpop.f32.mrf.mxu1 }
 0x140   :  { %v1236_v58 = vadd.f32 %v1235_v54, %v2225_v33  ;;  %v1308_v57 = vmul.f32 %v790_v49, %v790_v49  ;;  %v1370_v30 = vadd.f32 %v1369_v56, %v1307_v61 }
 0x141   :  { %v793_v1 = vpop.f32.mrf.mxu0  ;;  %v2258_v4 = vpop.f32.mrf.mxu1 }
 0x142   :  { %1175 = vst [vmem:[%s2462_s2 + $0xb8] sm:$0xff] %v793_v1  ;;  %1207 = vst [vmem:[%s2462_s2 + $0x1b8] sm:$0xff] %v2258_v4  ;;  %v1237_v62 = vadd.f32 %v1236_v58, %v790_v49  ;;  %v1309_v5 = vmul.f32 %v793_v1, %v793_v1 }
 0x143   :  { %v795_v2 = vpop.f32.mrf.mxu0  ;;  %v923_v9 = vpop.f32.mrf.mxu1 }
 0x144   :  { %v1371_v2 = vadd.f32 %v1370_v30, %v1308_v57  ;;  %v1238_v33 = vadd.f32 %v1237_v62, %v793_v1 }
 0x145   :  { %v798_v21 = vpop.f32.mrf.mxu0  ;;  %v2273_v24 = vpop.f32.mrf.mxu1 }
 0x146   :  { %1176 = vst [vmem:[%s2462_s2 + $0xc0] sm:$0xff] %v798_v21  ;;  %1208 = vst [vmem:[%s2462_s2 + $0x1c0] sm:$0xff] %v2273_v24  ;;  %v1310_v9 = vmul.f32 %v798_v21, %v798_v21  ;;  %v1372_v6 = vadd.f32 %v1371_v2, %v1309_v5  ;;  %v1239_v49 = vadd.f32 %v1238_v33, %v798_v21 }
 0x147   :  { %v800_v13 = vpop.f32.mrf.mxu0  ;;  %v928_v29 = vpop.f32.mrf.mxu1 }
 0x148   :  { %v1373_v13 = vadd.f32 %v1372_v6, %v1310_v9 }
 0x149   :  { %v801_v37 = vpop.f32.mrf.mxu0  ;;  %v2288_v18 = vpop.f32.mrf.mxu1 }
 0x14a   :  { %1177 = vst [vmem:[%s2462_s2 + $0xc8] sm:$0xff] %v801_v37  ;;  %1209 = vst [vmem:[%s2462_s2 + $0x1c8] sm:$0xff] %v2288_v18  ;;  %v1311_v25 = vmul.f32 %v801_v37, %v801_v37  ;;  %v1240_v1 = vadd.f32 %v1239_v49, %v801_v37 }
 0x14b   :  { %v803_v45 = vpop.f32.mrf.mxu0  ;;  %v931_v44 = vpop.f32.mrf.mxu1 }
 0x14c   :  { %v1374_v14 = vadd.f32 %v1373_v13, %v1311_v25 }
 0x14d   :  { %v806_v53 = vpop.f32.mrf.mxu0  ;;  %v2303_v26 = vpop.f32.mrf.mxu1 }
 0x14e   :  { %1178 = vst [vmem:[%s2462_s2 + $0xd0] sm:$0xff] %v806_v53  ;;  %1210 = vst [vmem:[%s2462_s2 + $0x1d0] sm:$0xff] %v2303_v26  ;;  %v1312_v29 = vmul.f32 %v806_v53, %v806_v53  ;;  %v1241_v21 = vadd.f32 %v1240_v1, %v806_v53 }
 0x14f   :  { %v808_v17 = vpop.f32.mrf.mxu0  ;;  %v936_v60 = vpop.f32.mrf.mxu1 }
 0x150   :  { %v1375_v45 = vadd.f32 %v1374_v14, %v1312_v29  ;;  %v1319_v29 = vmul.f32 %v1952_v15, %v1952_v15  ;;  %v1320_v14 = vmul.f32 %v1964_v19, %v1964_v19 }
 0x151   :  { %v809_v34 = vpop.f32.mrf.mxu0  ;;  %v2313_v8 = vpop.f32.mrf.mxu1 }
 0x152   :  { %1179 = vst [vmem:[%s2462_s2 + $0xd8] sm:$0xff] %v809_v34  ;;  %1211 = vst [vmem:[%s2462_s2 + $0x1d8] sm:$0xff] %v2313_v8  ;;  %v1313_v40 = vmul.f32 %v809_v34, %v809_v34  ;;  %v1242_v37 = vadd.f32 %v1241_v21, %v809_v34 }
 0x153   :  { %v811_v12 = vpop.f32.mrf.mxu0  ;;  %v939_v38 = vpop.f32.mrf.mxu1 }
 0x154   :  { %v1376_v61 = vadd.f32 %v1375_v45, %v1313_v40 }
 0x155   :  { %v814_v42 = vpop.f32.mrf.mxu0  ;;  %v2322_v28 = vpop.f32.mrf.mxu1 }
 0x156   :  { %1180 = vst [vmem:[%s2462_s2 + $0xe0] sm:$0xff] %v814_v42  ;;  %1212 = vst [vmem:[%s2462_s2 + $0x1e0] sm:$0xff] %v2322_v28  ;;  %v1314_v44 = vmul.f32 %v814_v42, %v814_v42  ;;  %v1243_v53 = vadd.f32 %v1242_v37, %v814_v42  ;;  %v1318_v42 = vmul.f32 %v1940_v11, %v1940_v11 }
 0x157   :  { %v816_v10 = vpop.f32.mrf.mxu0  ;;  %v944_v46 = vpop.f32.mrf.mxu1 }
 0x158   :  { %v1377_v17 = vadd.f32 %v1376_v61, %v1314_v44 }
 0x159   :  { %v817_v50 = vpop.f32.mrf.mxu0  ;;  %v2331_v41 = vpop.f32.mrf.mxu1 }
 0x15a   :  { %1181 = vst [vmem:[%s2462_s2 + $0xe8] sm:$0xff] %v817_v50  ;;  %1213 = vst [vmem:[%s2462_s2 + $0x1e8] sm:$0xff] %v2331_v41  ;;  %v1315_v56 = vmul.f32 %v817_v50, %v817_v50  ;;  %v1244_v60 = vadd.f32 %v1243_v53, %v817_v50  ;;  %v1321_v50 = vmul.f32 %v1976_v23, %v1976_v23 }
 0x15b   :  { %v819_v22 = vpop.f32.mrf.mxu0  ;;  %v947_v54 = vpop.f32.mrf.mxu1 }
 0x15c   :  { %v1378_v34 = vadd.f32 %v1377_v17, %v1315_v56 }
 0x15d   :  { %v822_v58 = vpop.f32.mrf.mxu0  ;;  %v2340_v57 = vpop.f32.mrf.mxu1 }
 0x15e   :  { %1182 = vst [vmem:[%s2462_s2 + $0xf0] sm:$0xff] %v822_v58  ;;  %v1316_v30 = vmul.f32 %v822_v58, %v822_v58  ;;  %1214 = vst [vmem:[%s2462_s2 + $0x1f0] sm:$0xff] %v2340_v57  ;;  %v1245_v2 = vadd.f32 %v1244_v60, %v822_v58 }
 0x15f   :  { %v824_v62 = vpop.f32.mrf.mxu0  ;;  %v952_v5 = vpop.f32.mrf.mxu1 }
 0x160   :  { %v1379_v12 = vadd.f32 %v1378_v34, %v1316_v30 }
 0x161   :  { %v825_v33 = vpop.f32.mrf.mxu0  ;;  %v2349_v9 = vpop.f32.mrf.mxu1 }
 0x162   :  { %1183 = vst [vmem:[%s2462_s2 + $0xf8] sm:$0xff] %v825_v33  ;;  %v1246_v38 = vadd.f32 %v1245_v2, %v825_v33  ;;  %v1317_v6 = vmul.f32 %v825_v33, %v825_v33  ;;  %1215 = vst [vmem:[%s2462_s2 + $0x1f8] sm:$0xff] %v2349_v9 }
 0x163   :  { %v827_v49 = vpop.f32.mrf.mxu0  ;;  %v955_v25 = vpop.f32.mrf.mxu1 }
 0x164   :  { %v1247_v13 = vadd.f32 %v1246_v38, %v1940_v11  ;;  %v1380_v1 = vadd.f32 %v1379_v12, %v1317_v6  ;;  %v1322_v11 = vmul.f32 %v1988_v27, %v1988_v27 }
 0x166   :  { %v1248_v10 = vadd.f32 %v1247_v13, %v1952_v15  ;;  %v1381_v46 = vadd.f32 %v1380_v1, %v1318_v42  ;;  %v1323_v15 = vmul.f32 %v2000_v31, %v2000_v31 }
 0x168   :  { %v1249_v21 = vadd.f32 %v1248_v10, %v1964_v19  ;;  %v1382_v40 = vadd.f32 %v1381_v46, %v1319_v29  ;;  %v1324_v19 = vmul.f32 %v2012_v35, %v2012_v35 }
 0x16a   :  { %v1250_v45 = vadd.f32 %v1249_v21, %v1976_v23  ;;  %v1383_v37 = vadd.f32 %v1382_v40, %v1320_v14  ;;  %v1325_v23 = vmul.f32 %v2024_v39, %v2024_v39  ;;  %v1335_v14 = vmul.f32 %v2155_v32, %v2155_v32 }
 0x16c   :  { %v1251_v44 = vadd.f32 %v1250_v45, %v1988_v27  ;;  %v1384_v22 = vadd.f32 %v1383_v37, %v1321_v50  ;;  %v1326_v27 = vmul.f32 %v2036_v43, %v2036_v43  ;;  %v1336_v50 = vmul.f32 %v2173_v48, %v2173_v48 }
 0x16d   :  { %v1337_v37 = vmul.f32 %v2191_v0, %v2191_v0 }
 0x16e   :  { %v1252_v54 = vadd.f32 %v1251_v44, %v2000_v31  ;;  %v1385_v61 = vadd.f32 %v1384_v22, %v1322_v11  ;;  %v1327_v31 = vmul.f32 %v2048_v47, %v2048_v47  ;;  %v1338_v44 = vmul.f32 %v2209_v20, %v2209_v20 }
 0x170   :  { %v1253_v53 = vadd.f32 %v1252_v54, %v2012_v35  ;;  %v1386_v56 = vadd.f32 %v1385_v61, %v1323_v15  ;;  %v1328_v35 = vmul.f32 %v2060_v51, %v2060_v51  ;;  %v1339_v15 = vmul.f32 %v2227_v36, %v2227_v36 }
 0x171   :  { %v1340_v61 = vmul.f32 %v2243_v52, %v2243_v52 }
 0x172   :  { %v1254_v58 = vadd.f32 %v1253_v53, %v2024_v39  ;;  %v1387_v17 = vadd.f32 %v1386_v56, %v1324_v19  ;;  %v1329_v39 = vmul.f32 %v2072_v55, %v2072_v55  ;;  %v1341_v53 = vmul.f32 %v2258_v4, %v2258_v4 }
 0x174   :  { %v1388_v60 = vadd.f32 %v1387_v17, %v1325_v23  ;;  %v1255_v30 = vadd.f32 %v1254_v58, %v2036_v43  ;;  %v1330_v43 = vmul.f32 %v2084_v59, %v2084_v59  ;;  %v1342_v23 = vmul.f32 %v2273_v24, %v2273_v24 }
 0x175   :  { %v1343_v17 = vmul.f32 %v2288_v18, %v2288_v18 }
 0x176   :  { %v1256_v62 = vadd.f32 %v1255_v30, %v2048_v47  ;;  %v1389_v5 = vadd.f32 %v1388_v60, %v1326_v27  ;;  %v1331_v47 = vmul.f32 %v2096_v63, %v2096_v63  ;;  %v1344_v60 = vmul.f32 %v2303_v26, %v2303_v26 }
 0x178   :  { %v1257_v34 = vadd.f32 %v1256_v62, %v2060_v51  ;;  %v1390_v2 = vadd.f32 %v1389_v5, %v1327_v31  ;;  %v1332_v51 = vmul.f32 %v2108_v3, %v2108_v3  ;;  %v1345_v31 = vmul.f32 %v2313_v8, %v2313_v8 }
 0x179   :  { %v1346_v5 = vmul.f32 %v2322_v28, %v2322_v28 }
 0x17a   :  { %v1258_v33 = vadd.f32 %v1257_v34, %v2072_v55  ;;  %v1391_v12 = vadd.f32 %v1390_v2, %v1328_v35  ;;  %v1333_v55 = vmul.f32 %v2120_v7, %v2120_v7  ;;  %v1347_v34 = vmul.f32 %v2331_v41, %v2331_v41 }
 0x17c   :  { %v1259_v38 = vadd.f32 %v1258_v33, %v2084_v59  ;;  %v1392_v6 = vadd.f32 %v1391_v12, %v1329_v39  ;;  %v1334_v59 = vmul.f32 %v2134_v16, %v2134_v16  ;;  %v1348_v39 = vmul.f32 %v2340_v57, %v2340_v57 }
 0x17d   :  { %v1349_v12 = vmul.f32 %v2349_v9, %v2349_v9 }
 0x17e   :  { %v1260_v49 = vadd.f32 %v1259_v38, %v2096_v63  ;;  %v1393_v25 = vadd.f32 %v1392_v6, %v1330_v43 }
 0x180   :  { %v1261_v42 = vadd.f32 %v1260_v49, %v2108_v3  ;;  %v1394_v13 = vadd.f32 %v1393_v25, %v1331_v47 }
 0x182   :  { %v1262_v1 = vadd.f32 %v1261_v42, %v2120_v7  ;;  %v1395_v29 = vadd.f32 %v1394_v13, %v1332_v51 }
 0x184   :  { %v1263_v10 = vadd.f32 %v1262_v1, %v2134_v16  ;;  %v1396_v46 = vadd.f32 %v1395_v29, %v1333_v55 }
 0x186   :  { %v1264_v63 = vadd.f32 %v1263_v10, %v2155_v32  ;;  %v1397_v21 = vadd.f32 %v1396_v46, %v1334_v59 }
 0x188   :  { %v1398_v3 = vadd.f32 %v1397_v21, %v1335_v14  ;;  %v1265_v40 = vadd.f32 %v1264_v63, %v2173_v48 }
 0x18a   :  { %v1399_v7 = vadd.f32 %v1398_v3, %v1336_v50  ;;  %v1266_v45 = vadd.f32 %v1265_v40, %v2191_v0 }
 0x18c   :  { %v1400_v16 = vadd.f32 %v1399_v7, %v1337_v37  ;;  %v1267_v11 = vadd.f32 %v1266_v45, %v2209_v20 }
 0x18e   :  { %v1401_v32 = vadd.f32 %v1400_v16, %v1338_v44  ;;  %v1268_v22 = vadd.f32 %v1267_v11, %v2227_v36 }
 0x190   :  { %v1402_v54 = vadd.f32 %v1401_v32, %v1339_v15  ;;  %v1269_v48 = vadd.f32 %v1268_v22, %v2243_v52 }
 0x192   :  { %v1403_v19 = vadd.f32 %v1402_v54, %v1340_v61  ;;  %v1270_v0 = vadd.f32 %v1269_v48, %v2258_v4 }
 0x194   :  { %v1404_v56 = vadd.f32 %v1403_v19, %v1341_v53  ;;  %v1271_v20 = vadd.f32 %v1270_v0, %v2273_v24 }
 0x196   :  { %v1405_v58 = vadd.f32 %v1404_v56, %v1342_v23  ;;  %v1272_v36 = vadd.f32 %v1271_v20, %v2288_v18 }
 0x198   :  { %v1406_v27 = vadd.f32 %v1405_v58, %v1343_v17  ;;  %v1273_v52 = vadd.f32 %v1272_v36, %v2303_v26 }
 0x19a   :  { %v1407_v30 = vadd.f32 %v1406_v27, %v1344_v60  ;;  %v1274_v4 = vadd.f32 %v1273_v52, %v2313_v8 }
 0x19c   :  { %v1408_v62 = vadd.f32 %v1407_v30, %v1345_v31  ;;  %v1275_v24 = vadd.f32 %v1274_v4, %v2322_v28 }
 0x19e   :  { %v1409_v35 = vadd.f32 %v1408_v62, %v1346_v5  ;;  %v1276_v18 = vadd.f32 %v1275_v24, %v2331_v41 }
 0x1a0   :  { %v1410_v2 = vadd.f32 %v1409_v35, %v1347_v34  ;;  %v1277_v26 = vadd.f32 %v1276_v18, %v2340_v57 }
 0x1a2   :  { %v1411_v33 = vadd.f32 %v1410_v2, %v1348_v39  ;;  %v1278_v8 = vadd.f32 %v1277_v26, %v2349_v9 }
 0x1a4   :  { %v1279_v43 = vrot.slane %v1278_v8, 4  ;;  %v1412_v28 = vadd.f32 %v1411_v33, %v1349_v12 }
 0x1a6   :  { %v1280_v38 = vadd.f32 %v1279_v43, %v1278_v8  ;;  %v1413_v6 = vrot.slane %v1412_v28, 4 }
 0x1a8   :  { %v1281_v47 = vrot.slane %v1280_v38, 2  ;;  %v1414_v49 = vadd.f32 %v1413_v6, %v1412_v28 }
 0x1aa   :  { %v1282_v25 = vadd.f32 %v1281_v47, %v1280_v38  ;;  %v1415_v41 = vrot.slane %v1414_v49, 2 }
 0x1ac   :  { %v1283_v51 = vrot.slane %v1282_v25, 1  ;;  %v1416_v42 = vadd.f32 %v1415_v41, %v1414_v49 }
 0x1ae   :  { %v1284_v13 = vadd.f32 %v1283_v51, %v1282_v25  ;;  %v1417_v55 = vrot.slane %v1416_v42, 1 }
 0x1b0   :  { %1285 = vst [vmem:[%s2463_s3] sm:$0x1] %v1284_v13  ;;  %v1418_v57 = vadd.f32 %v1417_v55, %v1416_v42 }
 0x1b2   :  { %1419 = vst [vmem:[%s2464_s4] sm:$0x1] %v1418_v57 }

// kernel: _lambda_.17
= control target key start
LH: loop header
LB: loop body
LE: loop exit
PB: predicated region body
PF: predicated region fallthrough
CT: control target
= control target key end

     0   :  { %s3157_s9 = smov 0   ;;  %s3159_s10 = smov 0   ;;  %s3469_s0 = inlined_call_operand.vmem [shape: bf16[2048,72], index: 0, kind: input, shape index: {}]   ;;  %s3470_s1 = inlined_call_operand.vmem [shape: bf16[72,128], index: 1, kind: input, shape index: {}]   ;;  %s3471_s2 = inlined_call_operand.vmem [shape: f32[2048,128], index: 2, kind: output, shape index: {}]  }
   0x1   :  { %s3161_s11 = smov 0  }
   0x2 LB: > { %s24_s12 = sadd.s32 1, %s3136_s10  ;;  %p2410_p0 = scmp.ge.s32.totalorder %s3140_s11, 1  ;;  %s3140_s11 = sphi %s3161_s11, %s12_s11   ;;  %s3136_s10 = sphi %s3159_s10, %s3473_s10   ;;  %s3132_s9 = sphi %s3157_s9, %s3472_s9  }
   0x3   : > { %p26_p1 = scmp.ge.s32.totalorder %s24_s12, 2  ;;  %p141_p2 = scmp.lt.s32.totalorder %s3140_s11, 3 }
   0x5   : > { %s3475_s12 = smov (%p26_p1, %s24_s12), 0  ;;  %p142_p3 = pnand %p2410_p0, %p141_p2 }
   0x6   : > { %s2411_s17 = sshll.u32 (!%p142_p3), %s3132_s9, 7 }
   0x7   : > { %145 = sbr.rel (%p142_p3) target bundleno = 368 (0x170), region = 28  ;;  %p172_p4 = scmp.lt.s32.totalorder (!%p142_p3), %s2411_s17, 255 }
   0xc   : > { %v2793_v0 = vld [vmem:[%s3470_s1 + $0x20] ss:$0 sps:$4 sm:$0xff]   ;;  %vm1130_vm0 = vcmask 1043456   ;;  %v2794_v1 = vld [vmem:[%s3470_s1 + $0x18] sm:$0xff]   ;;  %v2795_v3 = vld [vmem:[%s3470_s1 + $0x10] sm:$0xff]   ;;  %s3477_s17 = smov (!%p172_p4, %s2411_s17), 255 }
   0xd   : > { %2767 = vmatprep.subr.msk.bf16.mxu0 %vm1130_vm0, %v2793_v0  ;;  %2768 = vmatprep.subr.msk.bf16.mxu1 %vm1130_vm0, %v2793_v0  ;;  %v1132_v2 = vsel %vm1130_vm0, %v2793_v0, 0  ;;  %v2796_v4 = vld [vmem:[%s3470_s1 + $0x8] sm:$0xff]   ;;  %s2412_s22 = sshll.u32 %s3477_s17, 2  ;;  %vm937_vm1 = vcmask 588800   ;;  %v2797_v7 = vld [vmem:[%s3470_s1] sm:$0xff]   ;;  %s2414_s28 = sshll.u32 %s3477_s17, 3 }
   0xe   : > { %2620 = vmatpush3.bf16.msra.mxu0 %v1132_v2  ;;  %2762 = vmatpush3.bf16.msra.mxu1 %v1132_v2  ;;  %s3193_s25 = scalar_lea.vmem %s3469_s0, %s2412_s22  ;;  %s3330_s3 = scalar_lea.vmem %s3471_s2, %s2414_s28 }
   0xf   : > { %2621 = vmatprep.subr.bf16.mxu0 %v2794_v1  ;;  %2758 = vmatprep.subr.bf16.mxu1 %v2794_v1  ;;  %v2798_v5 = vld [vmem:[%s3193_s25] sm:$0xff]   ;;  %v2800_v8 = vld [vmem:[%s3193_s25 + $0x8] sm:$0xff]   ;;  %v2802_v10 = vld [vmem:[%s3193_s25 + $0x10] sm:$0xff]  }
  0x10   : > { %v2799_v6 = vld [vmem:[%s3193_s25 + $0x100] sm:$0xff]   ;;  %2629 = vmatprep.mubr.msk.bf16.mxu0 %vm937_vm1, %v2798_v5  ;;  %v2801_v9 = vld [vmem:[%s3193_s25 + $0x108] sm:$0xff]   ;;  %v2803_v11 = vld [vmem:[%s3193_s25 + $0x110] sm:$0xff]  }
  0x11   : > { %2693 = vmatprep.mubr.msk.bf16.mxu1 %vm937_vm1, %v2799_v6  ;;  %v2804_v12 = vld [vmem:[%s3193_s25 + $0x18] sm:$0xff]   ;;  %v2806_v14 = vld [vmem:[%s3193_s25 + $0x20] sm:$0xff]   ;;  %v2808_v16 = vld [vmem:[%s3193_s25 + $0x28] sm:$0xff]  }
  0x12   : > { %2622 = vmatpush3.bf16.msra.mxu0 %v2794_v1  ;;  %2763 = vmatpush3.bf16.msra.mxu1 %v2794_v1  ;;  %v2805_v13 = vld [vmem:[%s3193_s25 + $0x118] sm:$0xff]   ;;  %v2807_v15 = vld [vmem:[%s3193_s25 + $0x120] sm:$0xff]   ;;  %v2809_v17 = vld [vmem:[%s3193_s25 + $0x128] sm:$0xff]  }
  0x13   : > { %2623 = vmatprep.subr.bf16.mxu0 %v2795_v3  ;;  %2759 = vmatprep.subr.bf16.mxu1 %v2795_v3  ;;  %v2810_v18 = vld [vmem:[%s3193_s25 + $0x30] sm:$0xff]   ;;  %v2812_v20 = vld [vmem:[%s3193_s25 + $0x38] sm:$0xff]   ;;  %v2814_v22 = vld [vmem:[%s3193_s25 + $0x40] sm:$0xff]  }
  0x14   : > { %v2811_v19 = vld [vmem:[%s3193_s25 + $0x130] sm:$0xff]   ;;  %v2813_v21 = vld [vmem:[%s3193_s25 + $0x138] sm:$0xff]   ;;  %v2815_v23 = vld [vmem:[%s3193_s25 + $0x140] sm:$0xff]  }
  0x15   : > { %v2816_v24 = vld [vmem:[%s3193_s25 + $0x48] sm:$0xff]   ;;  %v2818_v26 = vld [vmem:[%s3193_s25 + $0x50] sm:$0xff]   ;;  %v2820_v28 = vld [vmem:[%s3193_s25 + $0x58] sm:$0xff]  }
  0x16   : > { %2624 = vmatpush3.bf16.msra.mxu0 %v2795_v3  ;;  %2764 = vmatpush3.bf16.msra.mxu1 %v2795_v3  ;;  %v2817_v25 = vld [vmem:[%s3193_s25 + $0x148] sm:$0xff]   ;;  %v2819_v27 = vld [vmem:[%s3193_s25 + $0x150] sm:$0xff]   ;;  %v2821_v29 = vld [vmem:[%s3193_s25 + $0x158] sm:$0xff]  }
  0x17   : > { %2625 = vmatprep.subr.bf16.mxu0 %v2796_v4  ;;  %2760 = vmatprep.subr.bf16.mxu1 %v2796_v4  ;;  %v2822_v30 = vld [vmem:[%s3193_s25 + $0x60] sm:$0xff]   ;;  %v2824_v32 = vld [vmem:[%s3193_s25 + $0x68] sm:$0xff]   ;;  %v2826_v34 = vld [vmem:[%s3193_s25 + $0x70] sm:$0xff]  }
  0x18   : > { %v2823_v31 = vld [vmem:[%s3193_s25 + $0x160] sm:$0xff]   ;;  %v2825_v33 = vld [vmem:[%s3193_s25 + $0x168] sm:$0xff]   ;;  %v2827_v35 = vld [vmem:[%s3193_s25 + $0x170] sm:$0xff]  }
  0x19   : > { %v2828_v36 = vld [vmem:[%s3193_s25 + $0x78] sm:$0xff]   ;;  %v2830_v38 = vld [vmem:[%s3193_s25 + $0x80] sm:$0xff]   ;;  %v2832_v40 = vld [vmem:[%s3193_s25 + $0x88] sm:$0xff]  }
  0x1a   : > { %2626 = vmatpush3.bf16.msra.mxu0 %v2796_v4  ;;  %2765 = vmatpush3.bf16.msra.mxu1 %v2796_v4  ;;  %v2829_v37 = vld [vmem:[%s3193_s25 + $0x178] sm:$0xff]   ;;  %v2831_v39 = vld [vmem:[%s3193_s25 + $0x180] sm:$0xff]   ;;  %v2833_v41 = vld [vmem:[%s3193_s25 + $0x188] sm:$0xff]  }
  0x1b   : > { %2627 = vmatprep.subr.bf16.mxu0 %v2797_v7  ;;  %2761 = vmatprep.subr.bf16.mxu1 %v2797_v7  ;;  %v2834_v42 = vld [vmem:[%s3193_s25 + $0x90] sm:$0xff]   ;;  %v2836_v44 = vld [vmem:[%s3193_s25 + $0x98] sm:$0xff]   ;;  %v2838_v46 = vld [vmem:[%s3193_s25 + $0xa0] sm:$0xff]  }
  0x1c   : > { %v2835_v43 = vld [vmem:[%s3193_s25 + $0x190] sm:$0xff]   ;;  %v2837_v45 = vld [vmem:[%s3193_s25 + $0x198] sm:$0xff]   ;;  %v2839_v47 = vld [vmem:[%s3193_s25 + $0x1a0] sm:$0xff]  }
  0x1d   : > { %v2840_v48 = vld [vmem:[%s3193_s25 + $0xa8] sm:$0xff]   ;;  %v2842_v50 = vld [vmem:[%s3193_s25 + $0xb0] sm:$0xff]   ;;  %v2844_v52 = vld [vmem:[%s3193_s25 + $0xb8] sm:$0xff]  }
  0x1e   : > { %2628 = vmatpush3.bf16.msra.mxu0 %v2797_v7  ;;  %2766 = vmatpush3.bf16.msra.mxu1 %v2797_v7  ;;  %v2841_v49 = vld [vmem:[%s3193_s25 + $0x1a8] sm:$0xff]   ;;  %v2843_v51 = vld [vmem:[%s3193_s25 + $0x1b0] sm:$0xff]   ;;  %v2845_v53 = vld [vmem:[%s3193_s25 + $0x1b8] sm:$0xff]  }
  0x1f   : > { %v2846_v54 = vld [vmem:[%s3193_s25 + $0xc0] sm:$0xff]   ;;  %v2848_v56 = vld [vmem:[%s3193_s25 + $0xc8] sm:$0xff]   ;;  %v2850_v58 = vld [vmem:[%s3193_s25 + $0xd0] sm:$0xff]  }
  0x20   : > { %v2847_v55 = vld [vmem:[%s3193_s25 + $0x1c0] sm:$0xff]   ;;  %v2849_v57 = vld [vmem:[%s3193_s25 + $0x1c8] sm:$0xff]   ;;  %v2851_v59 = vld [vmem:[%s3193_s25 + $0x1d0] sm:$0xff]  }
  0x21   : > { %2630 = vmatmul.mubr.msk.bf16.vlgmr.msra.gmra.mxu0 %vm937_vm1, %v2800_v8  ;;  %2694 = vmatmul.mubr.msk.bf16.vlgmr.msra.gmra.mxu1 %vm937_vm1, %v2801_v9  ;;  %v2852_v60 = vld [vmem:[%s3193_s25 + $0xd8] sm:$0xff]   ;;  %v2854_v62 = vld [vmem:[%s3193_s25 + $0xe0] sm:$0xff]   ;;  %v2856_v0 = vld [vmem:[%s3193_s25 + $0xe8] sm:$0xff]  }
  0x22   : > { %2633 = vmatprep.mubr.msk.bf16.mxu0 %vm937_vm1, %v2802_v10  ;;  %2697 = vmatprep.mubr.msk.bf16.mxu1 %vm937_vm1, %v2803_v11  ;;  %v2853_v61 = vld [vmem:[%s3193_s25 + $0x1d8] sm:$0xff]   ;;  %v2855_v63 = vld [vmem:[%s3193_s25 + $0x1e0] sm:$0xff]   ;;  %v2857_v1 = vld [vmem:[%s3193_s25 + $0x1e8] sm:$0xff]  }
  0x23   : > { %v2858_v2 = vld [vmem:[%s3193_s25 + $0xf0] sm:$0xff]   ;;  %v2860_v4 = vld [vmem:[%s3193_s25 + $0xf8] sm:$0xff]  }
  0x24   : > { %v2859_v3 = vld [vmem:[%s3193_s25 + $0x1f0] sm:$0xff]   ;;  %v2861_v5 = vld [vmem:[%s3193_s25 + $0x1f8] sm:$0xff]  }
  0x29   : > { %2634 = vmatmul.mubr.msk.bf16.gmra.mxu0 %vm937_vm1, %v2804_v12  ;;  %2698 = vmatmul.mubr.msk.bf16.gmra.mxu1 %vm937_vm1, %v2805_v13 }
  0x2a   : > { %2637 = vmatprep.mubr.msk.bf16.mxu0 %vm937_vm1, %v2806_v14  ;;  %2701 = vmatprep.mubr.msk.bf16.mxu1 %vm937_vm1, %v2807_v15 }
  0x31   : > { %2638 = vmatmul.mubr.msk.bf16.gmra.mxu0 %vm937_vm1, %v2808_v16  ;;  %2702 = vmatmul.mubr.msk.bf16.gmra.mxu1 %vm937_vm1, %v2809_v17 }
  0x32   : > { %2641 = vmatprep.mubr.msk.bf16.mxu0 %vm937_vm1, %v2810_v18  ;;  %2705 = vmatprep.mubr.msk.bf16.mxu1 %vm937_vm1, %v2811_v19 }
  0x39   : > { %2642 = vmatmul.mubr.msk.bf16.gmra.mxu0 %vm937_vm1, %v2812_v20  ;;  %2706 = vmatmul.mubr.msk.bf16.gmra.mxu1 %vm937_vm1, %v2813_v21 }
  0x3a   : > { %2645 = vmatprep.mubr.msk.bf16.mxu0 %vm937_vm1, %v2814_v22  ;;  %2709 = vmatprep.mubr.msk.bf16.mxu1 %vm937_vm1, %v2815_v23 }
  0x41   : > { %2646 = vmatmul.mubr.msk.bf16.gmra.mxu0 %vm937_vm1, %v2816_v24  ;;  %2710 = vmatmul.mubr.msk.bf16.gmra.mxu1 %vm937_vm1, %v2817_v25 }
  0x42   : > { %2649 = vmatprep.mubr.msk.bf16.mxu0 %vm937_vm1, %v2818_v26  ;;  %2713 = vmatprep.mubr.msk.bf16.mxu1 %vm937_vm1, %v2819_v27 }
  0x49   : > { %2650 = vmatmul.mubr.msk.bf16.gmra.mxu0 %vm937_vm1, %v2820_v28  ;;  %2714 = vmatmul.mubr.msk.bf16.gmra.mxu1 %vm937_vm1, %v2821_v29 }
  0x4a   : > { %2653 = vmatprep.mubr.msk.bf16.mxu0 %vm937_vm1, %v2822_v30  ;;  %2717 = vmatprep.mubr.msk.bf16.mxu1 %vm937_vm1, %v2823_v31 }
  0x51   : > { %2654 = vmatmul.mubr.msk.bf16.gmra.mxu0 %vm937_vm1, %v2824_v32  ;;  %2718 = vmatmul.mubr.msk.bf16.gmra.mxu1 %vm937_vm1, %v2825_v33 }
  0x52   : > { %2657 = vmatprep.mubr.msk.bf16.mxu0 %vm937_vm1, %v2826_v34  ;;  %2721 = vmatprep.mubr.msk.bf16.mxu1 %vm937_vm1, %v2827_v35 }
  0x59   : > { %2658 = vmatmul.mubr.msk.bf16.gmra.mxu0 %vm937_vm1, %v2828_v36  ;;  %2722 = vmatmul.mubr.msk.bf16.gmra.mxu1 %vm937_vm1, %v2829_v37 }
  0x5a   : > { %2661 = vmatprep.mubr.msk.bf16.mxu0 %vm937_vm1, %v2830_v38  ;;  %2725 = vmatprep.mubr.msk.bf16.mxu1 %vm937_vm1, %v2831_v39 }
  0x61   : > { %2662 = vmatmul.mubr.msk.bf16.gmra.mxu0 %vm937_vm1, %v2832_v40  ;;  %2726 = vmatmul.mubr.msk.bf16.gmra.mxu1 %vm937_vm1, %v2833_v41 }
  0x62   : > { %2665 = vmatprep.mubr.msk.bf16.mxu0 %vm937_vm1, %v2834_v42  ;;  %2729 = vmatprep.mubr.msk.bf16.mxu1 %vm937_vm1, %v2835_v43 }
  0x69   : > { %2666 = vmatmul.mubr.msk.bf16.gmra.mxu0 %vm937_vm1, %v2836_v44  ;;  %2730 = vmatmul.mubr.msk.bf16.gmra.mxu1 %vm937_vm1, %v2837_v45 }
  0x6a   : > { %2669 = vmatprep.mubr.msk.bf16.mxu0 %vm937_vm1, %v2838_v46  ;;  %2733 = vmatprep.mubr.msk.bf16.mxu1 %vm937_vm1, %v2839_v47 }
  0x71   : > { %2670 = vmatmul.mubr.msk.bf16.gmra.mxu0 %vm937_vm1, %v2840_v48  ;;  %2734 = vmatmul.mubr.msk.bf16.gmra.mxu1 %vm937_vm1, %v2841_v49 }
  0x72   : > { %2673 = vmatprep.mubr.msk.bf16.mxu0 %vm937_vm1, %v2842_v50  ;;  %2737 = vmatprep.mubr.msk.bf16.mxu1 %vm937_vm1, %v2843_v51 }
  0x79   : > { %2674 = vmatmul.mubr.msk.bf16.gmra.mxu0 %vm937_vm1, %v2844_v52  ;;  %2738 = vmatmul.mubr.msk.bf16.gmra.mxu1 %vm937_vm1, %v2845_v53 }
  0x7a   : > { %2677 = vmatprep.mubr.msk.bf16.mxu0 %vm937_vm1, %v2846_v54  ;;  %2741 = vmatprep.mubr.msk.bf16.mxu1 %vm937_vm1, %v2847_v55 }
  0x81   : > { %2678 = vmatmul.mubr.msk.bf16.gmra.mxu0 %vm937_vm1, %v2848_v56  ;;  %2742 = vmatmul.mubr.msk.bf16.gmra.mxu1 %vm937_vm1, %v2849_v57 }
  0x82   : > { %2681 = vmatprep.mubr.msk.bf16.mxu0 %vm937_vm1, %v2850_v58  ;;  %2745 = vmatprep.mubr.msk.bf16.mxu1 %vm937_vm1, %v2851_v59 }
  0x89   : > { %2682 = vmatmul.mubr.msk.bf16.gmra.mxu0 %vm937_vm1, %v2852_v60  ;;  %2746 = vmatmul.mubr.msk.bf16.gmra.mxu1 %vm937_vm1, %v2853_v61 }
  0x8a   : > { %2685 = vmatprep.mubr.msk.bf16.mxu0 %vm937_vm1, %v2854_v62  ;;  %2749 = vmatprep.mubr.msk.bf16.mxu1 %vm937_vm1, %v2855_v63 }
  0x91   : > { %2686 = vmatmul.mubr.msk.bf16.gmra.mxu0 %vm937_vm1, %v2856_v0  ;;  %2750 = vmatmul.mubr.msk.bf16.gmra.mxu1 %vm937_vm1, %v2857_v1 }
  0x92   : > { %2689 = vmatprep.mubr.msk.bf16.mxu0 %vm937_vm1, %v2858_v2  ;;  %2753 = vmatprep.mubr.msk.bf16.mxu1 %vm937_vm1, %v2859_v3 }
  0x99   : > { %2690 = vmatmul.mubr.msk.bf16.gmra.mxu0 %vm937_vm1, %v2860_v4  ;;  %2754 = vmatmul.mubr.msk.bf16.gmra.mxu1 %vm937_vm1, %v2861_v5 }
  0xe1   : > { %v2631_v6 = vpop.f32.mrf.mxu0  ;;  %v2695_v7 = vpop.f32.mrf.mxu1 }
  0xe2   : > { %2862 = vtanh.f32 %v2631_v6 }
  0xe3   : > { %2864 = vtanh.f32 %v2695_v7  ;;  %v1168_v8 = vpop.f32.mrf.mxu0  ;;  %v1424_v9 = vpop.f32.mrf.mxu1 }
  0xe4   : > { %2866 = vtanh.f32 %v1168_v8 }
  0xe5   : > { %2868 = vtanh.f32 %v1424_v9  ;;  %v2632_v10 = vpop.f32.mrf.mxu0  ;;  %v2696_v11 = vpop.f32.mrf.mxu1 }
  0xe6   : > { %2870 = vtanh.f32 %v2632_v10 }
  0xe7   : > { %2872 = vtanh.f32 %v2696_v11  ;;  %v1171_v12 = vpop.f32.mrf.mxu0  ;;  %v1427_v13 = vpop.f32.mrf.mxu1 }
  0xe8   : > { %2874 = vtanh.f32 %v1171_v12 }
  0xe9   : > { %2876 = vtanh.f32 %v1427_v13  ;;  %v2635_v14 = vpop.f32.mrf.mxu0  ;;  %v2699_v15 = vpop.f32.mrf.mxu1 }
  0xea   : > { %2878 = vtanh.f32 %v2635_v14 }
  0xeb   : > { %2880 = vtanh.f32 %v2699_v15  ;;  %v1184_v16 = vpop.f32.mrf.mxu0  ;;  %v1440_v17 = vpop.f32.mrf.mxu1 }
  0xec   : > { %2882 = vtanh.f32 %v1184_v16 }
  0xed   : > { %2884 = vtanh.f32 %v1440_v17  ;;  %v2636_v18 = vpop.f32.mrf.mxu0  ;;  %v2700_v19 = vpop.f32.mrf.mxu1 }
  0xee   : > { %2886 = vtanh.f32 %v2636_v18 }
  0xef   : > { %v2863_v20 = vpop.eup %2862  ;;  %2888 = vtanh.f32 %v2700_v19  ;;  %v1187_v21 = vpop.f32.mrf.mxu0 }
  0xf0   : > { %v1443_v22 = vpop.f32.mrf.mxu1  ;;  %v2865_v23 = vpop.eup %2864  ;;  %2196 = vst [vmem:[%s3330_s3 + $0x10] sm:$0xff] %v2863_v20  ;;  %2890 = vtanh.f32 %v1187_v21 }
  0xf1   : > { %v2867_v24 = vpop.eup %2866  ;;  %2260 = vst [vmem:[%s3330_s3 + $0x210] sm:$0xff] %v2865_v23  ;;  %2892 = vtanh.f32 %v1443_v22  ;;  %v2639_v25 = vpop.f32.mrf.mxu0 }
  0xf2   : > { %v2703_v26 = vpop.f32.mrf.mxu1  ;;  %v2869_v27 = vpop.eup %2868  ;;  %2194 = vst [vmem:[%s3330_s3] sm:$0xff] %v2867_v24  ;;  %2894 = vtanh.f32 %v2639_v25 }
  0xf3   : > { %v2871_v28 = vpop.eup %2870  ;;  %2258 = vst [vmem:[%s3330_s3 + $0x200] sm:$0xff] %v2869_v27  ;;  %2896 = vtanh.f32 %v2703_v26  ;;  %v1200_v29 = vpop.f32.mrf.mxu0 }
  0xf4   : > { %v1456_v30 = vpop.f32.mrf.mxu1  ;;  %v2873_v31 = vpop.eup %2872  ;;  %2197 = vst [vmem:[%s3330_s3 + $0x18] sm:$0xff] %v2871_v28  ;;  %2898 = vtanh.f32 %v1200_v29 }
  0xf5   : > { %v2875_v32 = vpop.eup %2874  ;;  %2261 = vst [vmem:[%s3330_s3 + $0x218] sm:$0xff] %v2873_v31  ;;  %2900 = vtanh.f32 %v1456_v30  ;;  %v2640_v33 = vpop.f32.mrf.mxu0 }
  0xf6   : > { %v2704_v34 = vpop.f32.mrf.mxu1  ;;  %v2877_v35 = vpop.eup %2876  ;;  %2195 = vst [vmem:[%s3330_s3 + $0x8] sm:$0xff] %v2875_v32  ;;  %2902 = vtanh.f32 %v2640_v33 }
  0xf7   : > { %v2879_v36 = vpop.eup %2878  ;;  %2259 = vst [vmem:[%s3330_s3 + $0x208] sm:$0xff] %v2877_v35  ;;  %2904 = vtanh.f32 %v2704_v34  ;;  %v1203_v37 = vpop.f32.mrf.mxu0 }
  0xf8   : > { %v1459_v38 = vpop.f32.mrf.mxu1  ;;  %v2881_v39 = vpop.eup %2880  ;;  %2200 = vst [vmem:[%s3330_s3 + $0x30] sm:$0xff] %v2879_v36  ;;  %2906 = vtanh.f32 %v1203_v37 }
  0xf9   : > { %v2883_v40 = vpop.eup %2882  ;;  %2264 = vst [vmem:[%s3330_s3 + $0x230] sm:$0xff] %v2881_v39  ;;  %2908 = vtanh.f32 %v1459_v38  ;;  %v2643_v41 = vpop.f32.mrf.mxu0 }
  0xfa   : > { %v2707_v42 = vpop.f32.mrf.mxu1  ;;  %v2885_v43 = vpop.eup %2884  ;;  %2198 = vst [vmem:[%s3330_s3 + $0x20] sm:$0xff] %v2883_v40  ;;  %2910 = vtanh.f32 %v2643_v41 }
  0xfb   : > { %v2887_v44 = vpop.eup %2886  ;;  %2262 = vst [vmem:[%s3330_s3 + $0x220] sm:$0xff] %v2885_v43  ;;  %2912 = vtanh.f32 %v2707_v42  ;;  %v1216_v45 = vpop.f32.mrf.mxu0 }
  0xfc   : > { %v1472_v46 = vpop.f32.mrf.mxu1  ;;  %v2889_v47 = vpop.eup %2888  ;;  %2201 = vst [vmem:[%s3330_s3 + $0x38] sm:$0xff] %v2887_v44  ;;  %2914 = vtanh.f32 %v1216_v45 }
  0xfd   : > { %v2891_v48 = vpop.eup %2890  ;;  %2265 = vst [vmem:[%s3330_s3 + $0x238] sm:$0xff] %v2889_v47  ;;  %2916 = vtanh.f32 %v1472_v46  ;;  %v2644_v49 = vpop.f32.mrf.mxu0 }
  0xfe   : > { %v2708_v50 = vpop.f32.mrf.mxu1  ;;  %v2893_v51 = vpop.eup %2892  ;;  %2199 = vst [vmem:[%s3330_s3 + $0x28] sm:$0xff] %v2891_v48  ;;  %2918 = vtanh.f32 %v2644_v49 }
  0xff   : > { %v2895_v52 = vpop.eup %2894  ;;  %2263 = vst [vmem:[%s3330_s3 + $0x228] sm:$0xff] %v2893_v51  ;;  %2920 = vtanh.f32 %v2708_v50  ;;  %v1219_v53 = vpop.f32.mrf.mxu0 }
 0x100   : > { %v1475_v54 = vpop.f32.mrf.mxu1  ;;  %v2897_v55 = vpop.eup %2896  ;;  %2204 = vst [vmem:[%s3330_s3 + $0x50] sm:$0xff] %v2895_v52  ;;  %2922 = vtanh.f32 %v1219_v53 }
 0x101   : > { %v2899_v56 = vpop.eup %2898  ;;  %2268 = vst [vmem:[%s3330_s3 + $0x250] sm:$0xff] %v2897_v55  ;;  %2924 = vtanh.f32 %v1475_v54  ;;  %v2647_v57 = vpop.f32.mrf.mxu0 }
 0x102   : > { %v2711_v58 = vpop.f32.mrf.mxu1  ;;  %v2901_v59 = vpop.eup %2900  ;;  %2202 = vst [vmem:[%s3330_s3 + $0x40] sm:$0xff] %v2899_v56  ;;  %2926 = vtanh.f32 %v2647_v57 }
 0x103   : > { %v2903_v60 = vpop.eup %2902  ;;  %2266 = vst [vmem:[%s3330_s3 + $0x240] sm:$0xff] %v2901_v59  ;;  %2928 = vtanh.f32 %v2711_v58  ;;  %v1232_v61 = vpop.f32.mrf.mxu0 }
 0x104   : > { %v1488_v62 = vpop.f32.mrf.mxu1  ;;  %v2905_v63 = vpop.eup %2904  ;;  %2205 = vst [vmem:[%s3330_s3 + $0x58] sm:$0xff] %v2903_v60  ;;  %2930 = vtanh.f32 %v1232_v61 }
 0x105   : > { %v2907_v0 = vpop.eup %2906  ;;  %2269 = vst [vmem:[%s3330_s3 + $0x258] sm:$0xff] %v2905_v63  ;;  %2932 = vtanh.f32 %v1488_v62  ;;  %v2648_v1 = vpop.f32.mrf.mxu0 }
 0x106   : > { %v2712_v2 = vpop.f32.mrf.mxu1  ;;  %v2909_v3 = vpop.eup %2908  ;;  %2203 = vst [vmem:[%s3330_s3 + $0x48] sm:$0xff] %v2907_v0  ;;  %2934 = vtanh.f32 %v2648_v1 }
 0x107   : > { %v2911_v4 = vpop.eup %2910  ;;  %2267 = vst [vmem:[%s3330_s3 + $0x248] sm:$0xff] %v2909_v3  ;;  %2936 = vtanh.f32 %v2712_v2  ;;  %v1235_v5 = vpop.f32.mrf.mxu0 }
 0x108   : > { %v1491_v6 = vpop.f32.mrf.mxu1  ;;  %v2913_v7 = vpop.eup %2912  ;;  %2208 = vst [vmem:[%s3330_s3 + $0x70] sm:$0xff] %v2911_v4  ;;  %2938 = vtanh.f32 %v1235_v5 }
 0x109   : > { %v2915_v8 = vpop.eup %2914  ;;  %2272 = vst [vmem:[%s3330_s3 + $0x270] sm:$0xff] %v2913_v7  ;;  %2940 = vtanh.f32 %v1491_v6  ;;  %v2651_v9 = vpop.f32.mrf.mxu0 }
 0x10a   : > { %v2715_v10 = vpop.f32.mrf.mxu1  ;;  %v2917_v11 = vpop.eup %2916  ;;  %2206 = vst [vmem:[%s3330_s3 + $0x60] sm:$0xff] %v2915_v8  ;;  %2942 = vtanh.f32 %v2651_v9 }
 0x10b   : > { %v2919_v12 = vpop.eup %2918  ;;  %2270 = vst [vmem:[%s3330_s3 + $0x260] sm:$0xff] %v2917_v11  ;;  %2944 = vtanh.f32 %v2715_v10  ;;  %v1248_v13 = vpop.f32.mrf.mxu0 }
 0x10c   : > { %v1504_v14 = vpop.f32.mrf.mxu1  ;;  %v2921_v15 = vpop.eup %2920  ;;  %2209 = vst [vmem:[%s3330_s3 + $0x78] sm:$0xff] %v2919_v12  ;;  %2946 = vtanh.f32 %v1248_v13 }
 0x10d   : > { %v2923_v16 = vpop.eup %2922  ;;  %2273 = vst [vmem:[%s3330_s3 + $0x278] sm:$0xff] %v2921_v15  ;;  %2948 = vtanh.f32 %v1504_v14  ;;  %v2652_v17 = vpop.f32.mrf.mxu0 }
 0x10e   : > { %v2716_v18 = vpop.f32.mrf.mxu1  ;;  %v2925_v19 = vpop.eup %2924  ;;  %2207 = vst [vmem:[%s3330_s3 + $0x68] sm:$0xff] %v2923_v16  ;;  %2950 = vtanh.f32 %v2652_v17 }
 0x10f   : > { %v2927_v20 = vpop.eup %2926  ;;  %2271 = vst [vmem:[%s3330_s3 + $0x268] sm:$0xff] %v2925_v19  ;;  %2952 = vtanh.f32 %v2716_v18  ;;  %v1251_v21 = vpop.f32.mrf.mxu0 }
 0x110   : > { %v1507_v22 = vpop.f32.mrf.mxu1  ;;  %v2929_v23 = vpop.eup %2928  ;;  %2212 = vst [vmem:[%s3330_s3 + $0x90] sm:$0xff] %v2927_v20  ;;  %2954 = vtanh.f32 %v1251_v21 }
 0x111   : > { %v2931_v24 = vpop.eup %2930  ;;  %2276 = vst [vmem:[%s3330_s3 + $0x290] sm:$0xff] %v2929_v23  ;;  %2956 = vtanh.f32 %v1507_v22  ;;  %v2655_v25 = vpop.f32.mrf.mxu0 }
 0x112   : > { %v2719_v26 = vpop.f32.mrf.mxu1  ;;  %v2933_v27 = vpop.eup %2932  ;;  %2210 = vst [vmem:[%s3330_s3 + $0x80] sm:$0xff] %v2931_v24  ;;  %2958 = vtanh.f32 %v2655_v25 }
 0x113   : > { %v2935_v28 = vpop.eup %2934  ;;  %2274 = vst [vmem:[%s3330_s3 + $0x280] sm:$0xff] %v2933_v27  ;;  %2960 = vtanh.f32 %v2719_v26  ;;  %v1264_v29 = vpop.f32.mrf.mxu0 }
 0x114   : > { %v1520_v30 = vpop.f32.mrf.mxu1  ;;  %v2937_v31 = vpop.eup %2936  ;;  %2213 = vst [vmem:[%s3330_s3 + $0x98] sm:$0xff] %v2935_v28  ;;  %2962 = vtanh.f32 %v1264_v29 }
 0x115   : > { %v2939_v32 = vpop.eup %2938  ;;  %2277 = vst [vmem:[%s3330_s3 + $0x298] sm:$0xff] %v2937_v31  ;;  %2964 = vtanh.f32 %v1520_v30  ;;  %v2656_v33 = vpop.f32.mrf.mxu0 }
 0x116   : > { %v2720_v34 = vpop.f32.mrf.mxu1  ;;  %v2941_v35 = vpop.eup %2940  ;;  %2211 = vst [vmem:[%s3330_s3 + $0x88] sm:$0xff] %v2939_v32  ;;  %2966 = vtanh.f32 %v2656_v33 }
 0x117   : > { %v2943_v36 = vpop.eup %2942  ;;  %2275 = vst [vmem:[%s3330_s3 + $0x288] sm:$0xff] %v2941_v35  ;;  %2968 = vtanh.f32 %v2720_v34  ;;  %v1267_v37 = vpop.f32.mrf.mxu0 }
 0x118   : > { %v1523_v38 = vpop.f32.mrf.mxu1  ;;  %v2945_v39 = vpop.eup %2944  ;;  %2216 = vst [vmem:[%s3330_s3 + $0xb0] sm:$0xff] %v2943_v36  ;;  %2970 = vtanh.f32 %v1267_v37 }
 0x119   : > { %v2947_v40 = vpop.eup %2946  ;;  %2280 = vst [vmem:[%s3330_s3 + $0x2b0] sm:$0xff] %v2945_v39  ;;  %2972 = vtanh.f32 %v1523_v38  ;;  %v2659_v41 = vpop.f32.mrf.mxu0 }
 0x11a   : > { %v2723_v42 = vpop.f32.mrf.mxu1  ;;  %v2949_v43 = vpop.eup %2948  ;;  %2214 = vst [vmem:[%s3330_s3 + $0xa0] sm:$0xff] %v2947_v40  ;;  %2974 = vtanh.f32 %v2659_v41 }
 0x11b   : > { %v2951_v44 = vpop.eup %2950  ;;  %2278 = vst [vmem:[%s3330_s3 + $0x2a0] sm:$0xff] %v2949_v43  ;;  %2976 = vtanh.f32 %v2723_v42  ;;  %v1280_v45 = vpop.f32.mrf.mxu0 }
 0x11c   : > { %v1536_v46 = vpop.f32.mrf.mxu1  ;;  %v2953_v47 = vpop.eup %2952  ;;  %2217 = vst [vmem:[%s3330_s3 + $0xb8] sm:$0xff] %v2951_v44  ;;  %2978 = vtanh.f32 %v1280_v45 }
 0x11d   : > { %v2955_v48 = vpop.eup %2954  ;;  %2281 = vst [vmem:[%s3330_s3 + $0x2b8] sm:$0xff] %v2953_v47  ;;  %2980 = vtanh.f32 %v1536_v46  ;;  %v2660_v49 = vpop.f32.mrf.mxu0 }
 0x11e   : > { %v2724_v50 = vpop.f32.mrf.mxu1  ;;  %v2957_v51 = vpop.eup %2956  ;;  %2215 = vst [vmem:[%s3330_s3 + $0xa8] sm:$0xff] %v2955_v48  ;;  %2982 = vtanh.f32 %v2660_v49 }
 0x11f   : > { %v2959_v52 = vpop.eup %2958  ;;  %2279 = vst [vmem:[%s3330_s3 + $0x2a8] sm:$0xff] %v2957_v51  ;;  %2984 = vtanh.f32 %v2724_v50  ;;  %v1283_v53 = vpop.f32.mrf.mxu0 }
 0x120   : > { %v1539_v54 = vpop.f32.mrf.mxu1  ;;  %v2961_v55 = vpop.eup %2960  ;;  %2220 = vst [vmem:[%s3330_s3 + $0xd0] sm:$0xff] %v2959_v52  ;;  %2986 = vtanh.f32 %v1283_v53 }
 0x121   : > { %v2963_v56 = vpop.eup %2962  ;;  %2284 = vst [vmem:[%s3330_s3 + $0x2d0] sm:$0xff] %v2961_v55  ;;  %2988 = vtanh.f32 %v1539_v54  ;;  %v2663_v57 = vpop.f32.mrf.mxu0 }
 0x122   : > { %v2727_v58 = vpop.f32.mrf.mxu1  ;;  %v2965_v59 = vpop.eup %2964  ;;  %2218 = vst [vmem:[%s3330_s3 + $0xc0] sm:$0xff] %v2963_v56  ;;  %2990 = vtanh.f32 %v2663_v57 }
 0x123   : > { %v2967_v60 = vpop.eup %2966  ;;  %2282 = vst [vmem:[%s3330_s3 + $0x2c0] sm:$0xff] %v2965_v59  ;;  %2992 = vtanh.f32 %v2727_v58  ;;  %v1296_v61 = vpop.f32.mrf.mxu0 }
 0x124   : > { %v1552_v62 = vpop.f32.mrf.mxu1  ;;  %v2969_v63 = vpop.eup %2968  ;;  %2221 = vst [vmem:[%s3330_s3 + $0xd8] sm:$0xff] %v2967_v60  ;;  %2994 = vtanh.f32 %v1296_v61 }
 0x125   : > { %v2971_v0 = vpop.eup %2970  ;;  %2285 = vst [vmem:[%s3330_s3 + $0x2d8] sm:$0xff] %v2969_v63  ;;  %2996 = vtanh.f32 %v1552_v62  ;;  %v2664_v1 = vpop.f32.mrf.mxu0 }
 0x126   : > { %v2728_v2 = vpop.f32.mrf.mxu1  ;;  %v2973_v3 = vpop.eup %2972  ;;  %2219 = vst [vmem:[%s3330_s3 + $0xc8] sm:$0xff] %v2971_v0  ;;  %2998 = vtanh.f32 %v2664_v1 }
 0x127   : > { %v2975_v4 = vpop.eup %2974  ;;  %2283 = vst [vmem:[%s3330_s3 + $0x2c8] sm:$0xff] %v2973_v3  ;;  %3000 = vtanh.f32 %v2728_v2  ;;  %v1299_v5 = vpop.f32.mrf.mxu0 }
 0x128   : > { %v1555_v6 = vpop.f32.mrf.mxu1  ;;  %v2977_v7 = vpop.eup %2976  ;;  %2224 = vst [vmem:[%s3330_s3 + $0xf0] sm:$0xff] %v2975_v4  ;;  %3002 = vtanh.f32 %v1299_v5 }
 0x129   : > { %v2979_v8 = vpop.eup %2978  ;;  %2288 = vst [vmem:[%s3330_s3 + $0x2f0] sm:$0xff] %v2977_v7  ;;  %3004 = vtanh.f32 %v1555_v6  ;;  %v2667_v9 = vpop.f32.mrf.mxu0 }
 0x12a   : > { %v2731_v10 = vpop.f32.mrf.mxu1  ;;  %v2981_v11 = vpop.eup %2980  ;;  %2222 = vst [vmem:[%s3330_s3 + $0xe0] sm:$0xff] %v2979_v8  ;;  %3006 = vtanh.f32 %v2667_v9 }
 0x12b   : > { %v2983_v12 = vpop.eup %2982  ;;  %2286 = vst [vmem:[%s3330_s3 + $0x2e0] sm:$0xff] %v2981_v11  ;;  %3008 = vtanh.f32 %v2731_v10  ;;  %v1312_v13 = vpop.f32.mrf.mxu0 }
 0x12c   : > { %v1568_v14 = vpop.f32.mrf.mxu1  ;;  %v2985_v15 = vpop.eup %2984  ;;  %2225 = vst [vmem:[%s3330_s3 + $0xf8] sm:$0xff] %v2983_v12  ;;  %3010 = vtanh.f32 %v1312_v13 }
 0x12d   : > { %v2987_v16 = vpop.eup %2986  ;;  %2289 = vst [vmem:[%s3330_s3 + $0x2f8] sm:$0xff] %v2985_v15  ;;  %3012 = vtanh.f32 %v1568_v14  ;;  %v2668_v17 = vpop.f32.mrf.mxu0 }
 0x12e   : > { %v2732_v18 = vpop.f32.mrf.mxu1  ;;  %v2989_v19 = vpop.eup %2988  ;;  %2223 = vst [vmem:[%s3330_s3 + $0xe8] sm:$0xff] %v2987_v16  ;;  %3014 = vtanh.f32 %v2668_v17 }
 0x12f   : > { %v2991_v20 = vpop.eup %2990  ;;  %2287 = vst [vmem:[%s3330_s3 + $0x2e8] sm:$0xff] %v2989_v19  ;;  %3016 = vtanh.f32 %v2732_v18  ;;  %v1315_v21 = vpop.f32.mrf.mxu0 }
 0x130   : > { %v1571_v22 = vpop.f32.mrf.mxu1  ;;  %v2993_v23 = vpop.eup %2992  ;;  %2228 = vst [vmem:[%s3330_s3 + $0x110] sm:$0xff] %v2991_v20  ;;  %3018 = vtanh.f32 %v1315_v21 }
 0x131   : > { %v2995_v24 = vpop.eup %2994  ;;  %2292 = vst [vmem:[%s3330_s3 + $0x310] sm:$0xff] %v2993_v23  ;;  %3020 = vtanh.f32 %v1571_v22  ;;  %v2671_v25 = vpop.f32.mrf.mxu0 }
 0x132   : > { %v2735_v26 = vpop.f32.mrf.mxu1  ;;  %v2997_v27 = vpop.eup %2996  ;;  %2226 = vst [vmem:[%s3330_s3 + $0x100] sm:$0xff] %v2995_v24  ;;  %3022 = vtanh.f32 %v2671_v25 }
 0x133   : > { %v2999_v28 = vpop.eup %2998  ;;  %2290 = vst [vmem:[%s3330_s3 + $0x300] sm:$0xff] %v2997_v27  ;;  %3024 = vtanh.f32 %v2735_v26  ;;  %v1328_v29 = vpop.f32.mrf.mxu0 }
 0x134   : > { %v1584_v30 = vpop.f32.mrf.mxu1  ;;  %v3001_v31 = vpop.eup %3000  ;;  %2229 = vst [vmem:[%s3330_s3 + $0x118] sm:$0xff] %v2999_v28  ;;  %3026 = vtanh.f32 %v1328_v29 }
 0x135   : > { %v3003_v32 = vpop.eup %3002  ;;  %2293 = vst [vmem:[%s3330_s3 + $0x318] sm:$0xff] %v3001_v31  ;;  %3028 = vtanh.f32 %v1584_v30  ;;  %v2672_v33 = vpop.f32.mrf.mxu0 }
 0x136   : > { %v2736_v34 = vpop.f32.mrf.mxu1  ;;  %v3005_v35 = vpop.eup %3004  ;;  %2227 = vst [vmem:[%s3330_s3 + $0x108] sm:$0xff] %v3003_v32  ;;  %3030 = vtanh.f32 %v2672_v33 }
 0x137   : > { %v3007_v36 = vpop.eup %3006  ;;  %2291 = vst [vmem:[%s3330_s3 + $0x308] sm:$0xff] %v3005_v35  ;;  %3032 = vtanh.f32 %v2736_v34  ;;  %v1331_v37 = vpop.f32.mrf.mxu0 }
 0x138   : > { %v1587_v38 = vpop.f32.mrf.mxu1  ;;  %v3009_v39 = vpop.eup %3008  ;;  %2232 = vst [vmem:[%s3330_s3 + $0x130] sm:$0xff] %v3007_v36  ;;  %3034 = vtanh.f32 %v1331_v37 }
 0x139   : > { %v3011_v40 = vpop.eup %3010  ;;  %2296 = vst [vmem:[%s3330_s3 + $0x330] sm:$0xff] %v3009_v39  ;;  %3036 = vtanh.f32 %v1587_v38  ;;  %v2675_v41 = vpop.f32.mrf.mxu0 }
 0x13a   : > { %v2739_v42 = vpop.f32.mrf.mxu1  ;;  %v3013_v43 = vpop.eup %3012  ;;  %2230 = vst [vmem:[%s3330_s3 + $0x120] sm:$0xff] %v3011_v40  ;;  %3038 = vtanh.f32 %v2675_v41 }
 0x13b   : > { %v3015_v44 = vpop.eup %3014  ;;  %2294 = vst [vmem:[%s3330_s3 + $0x320] sm:$0xff] %v3013_v43  ;;  %3040 = vtanh.f32 %v2739_v42  ;;  %v1344_v45 = vpop.f32.mrf.mxu0 }
 0x13c   : > { %v1600_v46 = vpop.f32.mrf.mxu1  ;;  %v3017_v47 = vpop.eup %3016  ;;  %2233 = vst [vmem:[%s3330_s3 + $0x138] sm:$0xff] %v3015_v44  ;;  %3042 = vtanh.f32 %v1344_v45 }
 0x13d   : > { %v3019_v48 = vpop.eup %3018  ;;  %2297 = vst [vmem:[%s3330_s3 + $0x338] sm:$0xff] %v3017_v47  ;;  %3044 = vtanh.f32 %v1600_v46  ;;  %v2676_v49 = vpop.f32.mrf.mxu0 }
 0x13e   : > { %v2740_v50 = vpop.f32.mrf.mxu1  ;;  %v3021_v51 = vpop.eup %3020  ;;  %2231 = vst [vmem:[%s3330_s3 + $0x128] sm:$0xff] %v3019_v48  ;;  %3046 = vtanh.f32 %v2676_v49 }
 0x13f   : > { %v3023_v52 = vpop.eup %3022  ;;  %2295 = vst [vmem:[%s3330_s3 + $0x328] sm:$0xff] %v3021_v51  ;;  %3048 = vtanh.f32 %v2740_v50  ;;  %v1347_v53 = vpop.f32.mrf.mxu0 }
 0x140   : > { %v1603_v54 = vpop.f32.mrf.mxu1  ;;  %v3025_v55 = vpop.eup %3024  ;;  %2236 = vst [vmem:[%s3330_s3 + $0x150] sm:$0xff] %v3023_v52  ;;  %3050 = vtanh.f32 %v1347_v53 }
 0x141   : > { %v3027_v56 = vpop.eup %3026  ;;  %2300 = vst [vmem:[%s3330_s3 + $0x350] sm:$0xff] %v3025_v55  ;;  %3052 = vtanh.f32 %v1603_v54  ;;  %v2679_v57 = vpop.f32.mrf.mxu0 }
 0x142   : > { %v2743_v58 = vpop.f32.mrf.mxu1  ;;  %v3029_v59 = vpop.eup %3028  ;;  %2234 = vst [vmem:[%s3330_s3 + $0x140] sm:$0xff] %v3027_v56  ;;  %3054 = vtanh.f32 %v2679_v57 }
 0x143   : > { %v3031_v60 = vpop.eup %3030  ;;  %2298 = vst [vmem:[%s3330_s3 + $0x340] sm:$0xff] %v3029_v59  ;;  %3056 = vtanh.f32 %v2743_v58  ;;  %v1360_v61 = vpop.f32.mrf.mxu0 }
 0x144   : > { %v1616_v62 = vpop.f32.mrf.mxu1  ;;  %v3033_v63 = vpop.eup %3032  ;;  %2237 = vst [vmem:[%s3330_s3 + $0x158] sm:$0xff] %v3031_v60  ;;  %3058 = vtanh.f32 %v1360_v61 }
 0x145   : > { %v3035_v0 = vpop.eup %3034  ;;  %2301 = vst [vmem:[%s3330_s3 + $0x358] sm:$0xff] %v3033_v63  ;;  %3060 = vtanh.f32 %v1616_v62  ;;  %v2680_v1 = vpop.f32.mrf.mxu0 }
 0x146   : > { %v2744_v2 = vpop.f32.mrf.mxu1  ;;  %v3037_v3 = vpop.eup %3036  ;;  %2235 = vst [vmem:[%s3330_s3 + $0x148] sm:$0xff] %v3035_v0  ;;  %3062 = vtanh.f32 %v2680_v1 }
 0x147   : > { %v3039_v4 = vpop.eup %3038  ;;  %2299 = vst [vmem:[%s3330_s3 + $0x348] sm:$0xff] %v3037_v3  ;;  %3064 = vtanh.f32 %v2744_v2  ;;  %v1363_v5 = vpop.f32.mrf.mxu0 }
 0x148   : > { %v1619_v6 = vpop.f32.mrf.mxu1  ;;  %v3041_v7 = vpop.eup %3040  ;;  %2240 = vst [vmem:[%s3330_s3 + $0x170] sm:$0xff] %v3039_v4  ;;  %3066 = vtanh.f32 %v1363_v5 }
 0x149   : > { %v3043_v8 = vpop.eup %3042  ;;  %2304 = vst [vmem:[%s3330_s3 + $0x370] sm:$0xff] %v3041_v7  ;;  %3068 = vtanh.f32 %v1619_v6  ;;  %v2683_v9 = vpop.f32.mrf.mxu0 }
 0x14a   : > { %v2747_v10 = vpop.f32.mrf.mxu1  ;;  %v3045_v11 = vpop.eup %3044  ;;  %2238 = vst [vmem:[%s3330_s3 + $0x160] sm:$0xff] %v3043_v8  ;;  %3070 = vtanh.f32 %v2683_v9 }
 0x14b   : > { %v3047_v12 = vpop.eup %3046  ;;  %2302 = vst [vmem:[%s3330_s3 + $0x360] sm:$0xff] %v3045_v11  ;;  %3072 = vtanh.f32 %v2747_v10  ;;  %v1376_v13 = vpop.f32.mrf.mxu0 }
 0x14c   : > { %v1632_v14 = vpop.f32.mrf.mxu1  ;;  %v3049_v15 = vpop.eup %3048  ;;  %2241 = vst [vmem:[%s3330_s3 + $0x178] sm:$0xff] %v3047_v12  ;;  %3074 = vtanh.f32 %v1376_v13 }
 0x14d   : > { %v3051_v16 = vpop.eup %3050  ;;  %2305 = vst [vmem:[%s3330_s3 + $0x378] sm:$0xff] %v3049_v15  ;;  %3076 = vtanh.f32 %v1632_v14  ;;  %v2684_v17 = vpop.f32.mrf.mxu0 }
 0x14e   : > { %v2748_v18 = vpop.f32.mrf.mxu1  ;;  %v3053_v19 = vpop.eup %3052  ;;  %2239 = vst [vmem:[%s3330_s3 + $0x168] sm:$0xff] %v3051_v16  ;;  %3078 = vtanh.f32 %v2684_v17 }
 0x14f   : > { %v3055_v20 = vpop.eup %3054  ;;  %2303 = vst [vmem:[%s3330_s3 + $0x368] sm:$0xff] %v3053_v19  ;;  %3080 = vtanh.f32 %v2748_v18  ;;  %v1379_v21 = vpop.f32.mrf.mxu0 }
 0x150   : > { %v1635_v22 = vpop.f32.mrf.mxu1  ;;  %v3057_v23 = vpop.eup %3056  ;;  %2244 = vst [vmem:[%s3330_s3 + $0x190] sm:$0xff] %v3055_v20  ;;  %3082 = vtanh.f32 %v1379_v21 }
 0x151   : > { %v3059_v24 = vpop.eup %3058  ;;  %2308 = vst [vmem:[%s3330_s3 + $0x390] sm:$0xff] %v3057_v23  ;;  %3084 = vtanh.f32 %v1635_v22  ;;  %v2687_v25 = vpop.f32.mrf.mxu0 }
 0x152   : > { %v2751_v26 = vpop.f32.mrf.mxu1  ;;  %v3061_v27 = vpop.eup %3060  ;;  %2242 = vst [vmem:[%s3330_s3 + $0x180] sm:$0xff] %v3059_v24  ;;  %3086 = vtanh.f32 %v2687_v25 }
 0x153   : > { %v3063_v28 = vpop.eup %3062  ;;  %2306 = vst [vmem:[%s3330_s3 + $0x380] sm:$0xff] %v3061_v27  ;;  %3088 = vtanh.f32 %v2751_v26  ;;  %v1392_v29 = vpop.f32.mrf.mxu0 }
 0x154   : > { %v1648_v30 = vpop.f32.mrf.mxu1  ;;  %v3065_v31 = vpop.eup %3064  ;;  %2245 = vst [vmem:[%s3330_s3 + $0x198] sm:$0xff] %v3063_v28  ;;  %3090 = vtanh.f32 %v1392_v29 }
 0x155   : > { %v3067_v32 = vpop.eup %3066  ;;  %2309 = vst [vmem:[%s3330_s3 + $0x398] sm:$0xff] %v3065_v31  ;;  %3092 = vtanh.f32 %v1648_v30  ;;  %v2688_v33 = vpop.f32.mrf.mxu0 }
 0x156   : > { %v2752_v34 = vpop.f32.mrf.mxu1  ;;  %v3069_v35 = vpop.eup %3068  ;;  %2243 = vst [vmem:[%s3330_s3 + $0x188] sm:$0xff] %v3067_v32  ;;  %3094 = vtanh.f32 %v2688_v33 }
 0x157   : > { %v3071_v36 = vpop.eup %3070  ;;  %2307 = vst [vmem:[%s3330_s3 + $0x388] sm:$0xff] %v3069_v35  ;;  %3096 = vtanh.f32 %v2752_v34  ;;  %v1395_v37 = vpop.f32.mrf.mxu0 }
 0x158   : > { %v1651_v38 = vpop.f32.mrf.mxu1  ;;  %v3073_v39 = vpop.eup %3072  ;;  %2248 = vst [vmem:[%s3330_s3 + $0x1b0] sm:$0xff] %v3071_v36  ;;  %3098 = vtanh.f32 %v1395_v37 }
 0x159   : > { %v3075_v40 = vpop.eup %3074  ;;  %2312 = vst [vmem:[%s3330_s3 + $0x3b0] sm:$0xff] %v3073_v39  ;;  %3100 = vtanh.f32 %v1651_v38  ;;  %v2691_v41 = vpop.f32.mrf.mxu0 }
 0x15a   : > { %v2755_v42 = vpop.f32.mrf.mxu1  ;;  %v3077_v43 = vpop.eup %3076  ;;  %2246 = vst [vmem:[%s3330_s3 + $0x1a0] sm:$0xff] %v3075_v40  ;;  %3102 = vtanh.f32 %v2691_v41 }
 0x15b   : > { %v3079_v44 = vpop.eup %3078  ;;  %2310 = vst [vmem:[%s3330_s3 + $0x3a0] sm:$0xff] %v3077_v43  ;;  %3104 = vtanh.f32 %v2755_v42  ;;  %v1408_v45 = vpop.f32.mrf.mxu0 }
 0x15c   : > { %v1664_v46 = vpop.f32.mrf.mxu1  ;;  %v3081_v47 = vpop.eup %3080  ;;  %2249 = vst [vmem:[%s3330_s3 + $0x1b8] sm:$0xff] %v3079_v44  ;;  %3106 = vtanh.f32 %v1408_v45 }
 0x15d   : > { %v3083_v48 = vpop.eup %3082  ;;  %2313 = vst [vmem:[%s3330_s3 + $0x3b8] sm:$0xff] %v3081_v47  ;;  %3108 = vtanh.f32 %v1664_v46  ;;  %v2692_v49 = vpop.f32.mrf.mxu0 }
 0x15e   : > { %v2756_v50 = vpop.f32.mrf.mxu1  ;;  %v3085_v51 = vpop.eup %3084  ;;  %2247 = vst [vmem:[%s3330_s3 + $0x1a8] sm:$0xff] %v3083_v48  ;;  %3110 = vtanh.f32 %v2692_v49 }
 0x15f   : > { %v3087_v52 = vpop.eup %3086  ;;  %2311 = vst [vmem:[%s3330_s3 + $0x3a8] sm:$0xff] %v3085_v51  ;;  %3112 = vtanh.f32 %v2756_v50  ;;  %v1411_v53 = vpop.f32.mrf.mxu0 }
 0x160   : > { %v1667_v54 = vpop.f32.mrf.mxu1  ;;  %v3089_v55 = vpop.eup %3088  ;;  %2252 = vst [vmem:[%s3330_s3 + $0x1d0] sm:$0xff] %v3087_v52  ;;  %3114 = vtanh.f32 %v1411_v53 }
 0x161   : > { %v3091_v56 = vpop.eup %3090  ;;  %2316 = vst [vmem:[%s3330_s3 + $0x3d0] sm:$0xff] %v3089_v55  ;;  %3116 = vtanh.f32 %v1667_v54 }
 0x162   : > { %v3093_v57 = vpop.eup %3092  ;;  %2250 = vst [vmem:[%s3330_s3 + $0x1c0] sm:$0xff] %v3091_v56 }
 0x163   : > { %v3095_v58 = vpop.eup %3094  ;;  %2314 = vst [vmem:[%s3330_s3 + $0x3c0] sm:$0xff] %v3093_v57 }
 0x164   : > { %v3097_v59 = vpop.eup %3096  ;;  %2253 = vst [vmem:[%s3330_s3 + $0x1d8] sm:$0xff] %v3095_v58 }
 0x165   : > { %v3099_v60 = vpop.eup %3098  ;;  %2317 = vst [vmem:[%s3330_s3 + $0x3d8] sm:$0xff] %v3097_v59 }
 0x166   : > { %v3101_v61 = vpop.eup %3100  ;;  %2251 = vst [vmem:[%s3330_s3 + $0x1c8] sm:$0xff] %v3099_v60 }
 0x167   : > { %v3103_v62 = vpop.eup %3102  ;;  %2315 = vst [vmem:[%s3330_s3 + $0x3c8] sm:$0xff] %v3101_v61 }
 0x168   : > { %v3105_v63 = vpop.eup %3104  ;;  %2256 = vst [vmem:[%s3330_s3 + $0x1f0] sm:$0xff] %v3103_v62 }
 0x169   : > { %v3107_v0 = vpop.eup %3106  ;;  %2320 = vst [vmem:[%s3330_s3 + $0x3f0] sm:$0xff] %v3105_v63 }
 0x16a   : > { %v3109_v1 = vpop.eup %3108  ;;  %2254 = vst [vmem:[%s3330_s3 + $0x1e0] sm:$0xff] %v3107_v0 }
 0x16b   : > { %v3111_v2 = vpop.eup %3110  ;;  %2318 = vst [vmem:[%s3330_s3 + $0x3e0] sm:$0xff] %v3109_v1 }
 0x16c   : > { %v3113_v3 = vpop.eup %3112  ;;  %2257 = vst [vmem:[%s3330_s3 + $0x1f8] sm:$0xff] %v3111_v2 }
 0x16d   : > { %v3115_v4 = vpop.eup %3114  ;;  %2321 = vst [vmem:[%s3330_s3 + $0x3f8] sm:$0xff] %v3113_v3 }
 0x16e   : > { %v3117_v5 = vpop.eup %3116  ;;  %2255 = vst [vmem:[%s3330_s3 + $0x1e8] sm:$0xff] %v3115_v4 }
 0x16f   : > { %2319 = vst [vmem:[%s3330_s3 + $0x3e8] sm:$0xff] %v3117_v5 }
 0x170 PF: > { %s12_s11 = sadd.s32 1, %s3140_s11   ;;  %s3472_s9 = smov %s3136_s10 }
 0x171   : > { %p9_p5 = scmp.ge.s32.totalorder %s12_s11, 4   ;;  %s3473_s10 = smov %s3475_s12 }
 0x173   :  { %11 = sbr.rel (!%p9_p5) target bundleno = 2 (0x2), region = 69 }

</bundles_post_ra>
